<compile_context>
chip_gen: v5e
topology: v5e:2x2
jax: 0.10.0
libtpu: 0.0.40
codegen_flags: <defaults>
</compile_context>

<pallas_src>
import functools
import numpy as np

import jax
import jax.numpy as jnp
from jax.experimental import pallas as pl
from jax.experimental.pallas import tpu as pltpu


VMEM_LIMIT = 48 * 1024 * 1024      # safe on v7x (64 MiB), good BW on v5e/v6e
_MAX_ROW_TILE = 512                # row (M) tile for per-position kernels


def _cparams(*sem):
    return pltpu.CompilerParams(
        dimension_semantics=sem if sem else None,
        vmem_limit_bytes=VMEM_LIMIT)


def _row_tile(m):
    return m if m <= _MAX_ROW_TILE else _MAX_ROW_TILE


def _apply_act(x, act):
    if act == "relu":
        return jnp.maximum(x, 0.0)
    if act == "none":
        return x
    raise ValueError(act)


# ----------------------------------------------------------------------------
# Pallas kernels
# ----------------------------------------------------------------------------

def _dense_kernel(x_ref, w_ref, b_ref, o_ref, *, act):
    y = jnp.dot(x_ref[...], w_ref[...], preferred_element_type=jnp.float32)
    o_ref[...] = _apply_act(y + b_ref[...], act).astype(o_ref.dtype)


def dense(x2d, w, b, act="none", out_dtype=jnp.float32):
    """y = act(x2d @ w + b); x2d: (M, K), w: (K, N), b: (N,).  Row-tiled grid."""
    M, Kd = x2d.shape
    N = w.shape[1]
    TM = _row_tile(M)
    return pl.pallas_call(
        functools.partial(_dense_kernel, act=act),
        grid=(pl.cdiv(M, TM),),
        out_shape=jax.ShapeDtypeStruct((M, N), out_dtype),
        in_specs=[pl.BlockSpec((TM, Kd), lambda i: (i, 0)),
                  pl.BlockSpec((Kd, N), lambda i: (0, 0)),
                  pl.BlockSpec((1, N), lambda i: (0, 0))],
        out_specs=pl.BlockSpec((TM, N), lambda i: (i, 0)),
        compiler_params=_cparams("parallel"),
    )(x2d.astype(jnp.bfloat16), w.astype(jnp.bfloat16),
      b.reshape(1, N).astype(jnp.float32))


def _mlp_kernel(x_ref, w1_ref, b1_ref, w2_ref, b2_ref, o_ref, *, act_out):
    h = jnp.dot(x_ref[...], w1_ref[...], preferred_element_type=jnp.float32)
    h = jnp.maximum(h + b1_ref[...], 0.0)
    y = jnp.dot(h.astype(jnp.bfloat16), w2_ref[...],
                preferred_element_type=jnp.float32)
    o_ref[...] = _apply_act(y + b2_ref[...], act_out).astype(o_ref.dtype)


def mlp(x2d, w1, b1, w2, b2, act_out="none"):
    """Fused 2-layer per-position MLP: act_out((relu(x@w1+b1))@w2+b2)."""
    M, Cin = x2d.shape
    Hd = w1.shape[1]
    Cout = w2.shape[1]
    TM = _row_tile(M)
    return pl.pallas_call(
        functools.partial(_mlp_kernel, act_out=act_out),
        grid=(pl.cdiv(M, TM),),
        out_shape=jax.ShapeDtypeStruct((M, Cout), jnp.float32),
        in_specs=[pl.BlockSpec((TM, Cin), lambda i: (i, 0)),
                  pl.BlockSpec((Cin, Hd), lambda i: (0, 0)),
                  pl.BlockSpec((1, Hd), lambda i: (0, 0)),
                  pl.BlockSpec((Hd, Cout), lambda i: (0, 0)),
                  pl.BlockSpec((1, Cout), lambda i: (0, 0))],
        out_specs=pl.BlockSpec((TM, Cout), lambda i: (i, 0)),
        compiler_params=_cparams("parallel"),
    )(x2d.astype(jnp.bfloat16), w1.astype(jnp.bfloat16),
      b1.reshape(1, Hd).astype(jnp.float32), w2.astype(jnp.bfloat16),
      b2.reshape(1, Cout).astype(jnp.float32))


def _qkv_kernel(x_ref, w_ref, b_ref, q_ref, k_ref, v_ref, *, D):
    y = jnp.dot(x_ref[...], w_ref[...], preferred_element_type=jnp.float32)
    y = y + b_ref[...]
    q_ref[...] = y[:, 0:D].astype(q_ref.dtype)
    k_ref[...] = y[:, D:2 * D].astype(k_ref.dtype)
    v_ref[...] = y[:, 2 * D:3 * D].astype(v_ref.dtype)


def qkv_dense(x2d, w, b):
    """Fused qkv projection -> three lane-dense bf16 outputs (M, D) each."""
    M, D = x2d.shape
    TM = _row_tile(M)
    shp = jax.ShapeDtypeStruct((M, D), jnp.bfloat16)
    row_spec = pl.BlockSpec((TM, D), lambda i: (i, 0))
    return pl.pallas_call(
        functools.partial(_qkv_kernel, D=D),
        grid=(pl.cdiv(M, TM),),
        out_shape=(shp, shp, shp),
        in_specs=[pl.BlockSpec((TM, D), lambda i: (i, 0)),
                  pl.BlockSpec((D, 3 * D), lambda i: (0, 0)),
                  pl.BlockSpec((1, 3 * D), lambda i: (0, 0))],
        out_specs=(row_spec, row_spec, row_spec),
        compiler_params=_cparams("parallel"),
    )(x2d.astype(jnp.bfloat16), w.astype(jnp.bfloat16),
      b.reshape(1, 3 * D).astype(jnp.float32))


def _proj_add_ln_kernel(a_ref, x_ref, w_ref, b_ref, g_ref, bb_ref, o_ref):
    y = jnp.dot(a_ref[...], w_ref[...], preferred_element_type=jnp.float32)
    y = y + b_ref[...] + x_ref[...]
    mu = jnp.mean(y, axis=-1, keepdims=True)
    var = jnp.mean(jnp.square(y - mu), axis=-1, keepdims=True)
    o_ref[...] = ((y - mu) * jax.lax.rsqrt(var + 1e-5) * g_ref[...]
                  + bb_ref[...]).astype(o_ref.dtype)


def proj_add_ln(a, x, w, b, g, beta):
    """LayerNorm(x + a @ w + b): fused attention out-proj + residual + LN."""
    M, D = x.shape
    TM = _row_tile(M)
    vec = lambda t: t.reshape(1, D).astype(jnp.float32)
    return pl.pallas_call(
        _proj_add_ln_kernel,
        grid=(pl.cdiv(M, TM),),
        out_shape=jax.ShapeDtypeStruct((M, D), jnp.float32),
        in_specs=[pl.BlockSpec((TM, D), lambda i: (i, 0)),
                  pl.BlockSpec((TM, D), lambda i: (i, 0)),
                  pl.BlockSpec((D, D), lambda i: (0, 0)),
                  pl.BlockSpec((1, D), lambda i: (0, 0)),
                  pl.BlockSpec((1, D), lambda i: (0, 0)),
                  pl.BlockSpec((1, D), lambda i: (0, 0))],
        out_specs=pl.BlockSpec((TM, D), lambda i: (i, 0)),
        compiler_params=_cparams("parallel"),
    )(a.astype(jnp.bfloat16), x.astype(jnp.float32), w.astype(jnp.bfloat16),
      vec(b), vec(g), vec(beta))


def _ff_add_ln_kernel(x_ref, w1_ref, b1_ref, w2_ref, b2_ref, g_ref, bb_ref, o_ref):
    xv = x_ref[...]
    h = jnp.dot(xv.astype(jnp.bfloat16), w1_ref[...],
                preferred_element_type=jnp.float32)
    h = jnp.maximum(h + b1_ref[...], 0.0)
    y = jnp.dot(h.astype(jnp.bfloat16), w2_ref[...],
                preferred_element_type=jnp.float32)
    y = y + b2_ref[...] + xv
    mu = jnp.mean(y, axis=-1, keepdims=True)
    var = jnp.mean(jnp.square(y - mu), axis=-1, keepdims=True)
    o_ref[...] = ((y - mu) * jax.lax.rsqrt(var + 1e-5) * g_ref[...]
                  + bb_ref[...]).astype(o_ref.dtype)


def ff_add_ln(x, w1, b1, w2, b2, g, beta):
    """LayerNorm(x + relu(x@w1+b1)@w2+b2): fused transformer feed-forward block."""
    # TODO(synk): add a reduction-axis grid over Hf (with an f32 accumulator) for
    # very large D on v7x's 64 MiB VMEM.
    M, D = x.shape
    Hf = w1.shape[1]
    TM = _row_tile(M)
    return pl.pallas_call(
        _ff_add_ln_kernel,
        grid=(pl.cdiv(M, TM),),
        out_shape=jax.ShapeDtypeStruct((M, D), jnp.float32),
        in_specs=[pl.BlockSpec((TM, D), lambda i: (i, 0)),
                  pl.BlockSpec((D, Hf), lambda i: (0, 0)),
                  pl.BlockSpec((1, Hf), lambda i: (0, 0)),
                  pl.BlockSpec((Hf, D), lambda i: (0, 0)),
                  pl.BlockSpec((1, D), lambda i: (0, 0)),
                  pl.BlockSpec((1, D), lambda i: (0, 0)),
                  pl.BlockSpec((1, D), lambda i: (0, 0))],
        out_specs=pl.BlockSpec((TM, D), lambda i: (i, 0)),
        compiler_params=_cparams("parallel"),
    )(x.astype(jnp.float32), w1.astype(jnp.bfloat16),
      b1.reshape(1, Hf).astype(jnp.float32), w2.astype(jnp.bfloat16),
      b2.reshape(1, D).astype(jnp.float32),
      g.reshape(1, D).astype(jnp.float32), beta.reshape(1, D).astype(jnp.float32))


def _conv_kernel(*refs, n_in, K, pad, Lout, act, pool):
    """Tap-accumulating 1D conv; optional fused max-pool as a 2nd output."""
    x_refs = refs[:n_in]
    w_refs = refs[n_in:2 * n_in]
    b_ref = refs[2 * n_in]
    o_ref = refs[2 * n_in + 1]
    Cout = o_ref.shape[-1]
    acc = jnp.zeros((Lout, Cout), jnp.float32)
    for x_ref, w_ref in zip(x_refs, w_refs):
        x = x_ref[0]                                      # (L, Cin) bf16
        if pad > 0:
            z = jnp.zeros((pad, x.shape[1]), x.dtype)
            x = jnp.concatenate([z, x, z], axis=0)        # in-kernel 'same' pad
        for t in range(K):                                # K small MXU matmuls
            acc = acc + jnp.dot(x[t:t + Lout, :], w_ref[t],
                                preferred_element_type=jnp.float32)
    y = _apply_act(acc + b_ref[...], act)
    o_ref[0] = y.astype(o_ref.dtype)
    if pool is not None:
        p_ref = refs[2 * n_in + 2]
        Lo = Lout // pool
        p_ref[0] = jnp.max(y[:Lo * pool].reshape(Lo, pool, Cout),
                           axis=1).astype(p_ref.dtype)


def conv1d(xs, ws, b, padding, act="none", pool=None):
    """1D conv with channel-last activations.

    xs: (B, L, Cin) array or list of arrays (implicit channel concat);
    ws: matching (K, Cin_i, Cout) weights; b: (Cout,).
    Returns (B, Lout, Cout), or (out, pooled) when `pool` is set.
    """
    # TODO(synk): add an L-tile grid axis with K-1 halos for very long sequences.
    if not isinstance(xs, (list, tuple)):
        xs, ws = [xs], [ws]
    B, L, _ = xs[0].shape
    K = ws[0].shape[0]
    Cout = ws[0].shape[2]
    Lout = L + 2 * padding - K + 1
    n_in = len(xs)

    in_specs, operands = [], []
    for x in xs:
        Cin = x.shape[2]
        in_specs.append(pl.BlockSpec((1, L, Cin), lambda i: (i, 0, 0)))
        operands.append(x.astype(jnp.bfloat16))
    for w in ws:
        Cin = w.shape[1]
        in_specs.append(pl.BlockSpec((K, Cin, Cout), lambda i: (0, 0, 0)))
        operands.append(w.astype(jnp.bfloat16))
    in_specs.append(pl.BlockSpec((1, Cout), lambda i: (0, 0)))
    operands.append(b.reshape(1, Cout).astype(jnp.float32))

    out_shape = [jax.ShapeDtypeStruct((B, Lout, Cout), jnp.float32)]
    out_specs = [pl.BlockSpec((1, Lout, Cout), lambda i: (i, 0, 0))]
    if pool is not None:
        Lo = Lout // pool
        out_shape.append(jax.ShapeDtypeStruct((B, Lo, Cout), jnp.float32))
        out_specs.append(pl.BlockSpec((1, Lo, Cout), lambda i: (i, 0, 0)))

    return pl.pallas_call(
        functools.partial(_conv_kernel, n_in=n_in, K=K, pad=padding,
                          Lout=Lout, act=act, pool=pool),
        grid=(B,),
        out_shape=tuple(out_shape) if pool is not None else out_shape[0],
        in_specs=in_specs,
        out_specs=tuple(out_specs) if pool is not None else out_specs[0],
        compiler_params=_cparams("parallel"),
    )(*operands)


def _attn_kernel(q_ref, k_ref, v_ref, o_ref, *, num_heads, scale):
    D = q_ref.shape[-1]
    Dh = D // num_heads
    # fold the 1/sqrt(Dh) scale into q once (cheaper than scaling (TQ, L) scores)
    q = (q_ref[0].astype(jnp.float32) * scale).astype(jnp.bfloat16)   # (TQ, D)
    k = k_ref[0]                                                      # (L, D)
    v = v_ref[0]
    outs = []
    for h in range(num_heads):
        sl = slice(h * Dh, (h + 1) * Dh)
        s = jax.lax.dot_general(q[:, sl], k[:, sl], (((1,), (1,)), ((), ())),
                                preferred_element_type=jnp.float32)
        s = s - jnp.max(s, axis=-1, keepdims=True)
        p = jnp.exp(s)
        denom = jnp.sum(p, axis=-1, keepdims=True)
        oh = jax.lax.dot_general(p.astype(jnp.bfloat16), v[:, sl],
                                 (((1,), (0,)), ((), ())),
                                 preferred_element_type=jnp.float32)
        outs.append(oh * pl.reciprocal(denom, approx=True))
    # one lane-dense (TQ, D) store (no per-head masked partial stores)
    o_ref[0] = jnp.concatenate(outs, axis=-1).astype(o_ref.dtype)


def attention(q, k, v, num_heads, scale):
    """q, k, v: (B, L, D) bf16 -> (B, L, D) bf16; all heads handled in-kernel."""
    # TODO(synk): add kv-tile online-softmax (flash) accumulation for very long L.
    B, L, D = q.shape
    TQ = L if L <= 128 else 128
    q_spec = pl.BlockSpec((1, TQ, D), lambda b, j: (b, j, 0))
    kv_spec = pl.BlockSpec((1, L, D), lambda b, j: (b, 0, 0))
    return pl.pallas_call(
        functools.partial(_attn_kernel, num_heads=num_heads, scale=scale),
        grid=(B, pl.cdiv(L, TQ)),
        out_shape=jax.ShapeDtypeStruct((B, L, D), jnp.bfloat16),
        in_specs=[q_spec, kv_spec, kv_spec],
        out_specs=q_spec,
        compiler_params=_cparams("parallel", "parallel"),
    )(q.astype(jnp.bfloat16), k.astype(jnp.bfloat16), v.astype(jnp.bfloat16))


def _gru_kernel(xp_ref, w_ref, b_ref, o_ref, *, L, H, B):
    """Bidirectional GRU recurrence.  Both directions fused: hidden state is
    (B, 2H) = [h_fwd | h_bwd], the hidden matmul is ONE bf16 MXU op against a
    block-diagonal (2H, 6H) weight with gate-grouped lanes [rf rb zf zb nf nb]."""
    H2 = 2 * H

    def step(t, h):
        hp = jnp.dot(h.astype(jnp.bfloat16), w_ref[...],
                     preferred_element_type=jnp.float32) + b_ref[...]
        xp = xp_ref[t]                                    # (B, 6H) f32
        r = 1.0 / (1.0 + jnp.exp(-(xp[:, 0:H2] + hp[:, 0:H2])))
        z = 1.0 / (1.0 + jnp.exp(-(xp[:, H2:2 * H2] + hp[:, H2:2 * H2])))
        n = jnp.tanh(xp[:, 2 * H2:3 * H2] + r * hp[:, 2 * H2:3 * H2])
        h_new = (1.0 - z) * n + z * h
        o_ref[t] = h_new
        return h_new

    h0 = jnp.zeros((B, H2), jnp.float32)
    jax.lax.fori_loop(0, L, step, h0)


def bigru(x, p):
    """Bidirectional GRU.  Input projections via the gridded dense kernel, the
    sequential recurrence in one Pallas kernel (weights + state VMEM-resident)."""
    B, L, D = x.shape
    H = p["fwd"]["w_hh"].shape[0]

    # input projection for both directions in one matmul
    w_ih = jnp.concatenate([p["fwd"]["w_ih"], p["bwd"]["w_ih"]], axis=1)
    b_ih = jnp.concatenate([p["fwd"]["b_ih"], p["bwd"]["b_ih"]], axis=0)
    xp = dense(x.reshape(B * L, D), w_ih, b_ih).reshape(B, L, 2, 3, H)
    xp_f = xp[:, :, 0]                       # (B, L, 3, H)
    xp_b = xp[:, :, 1][:, ::-1]              # backward direction: time-reversed
    # gate-grouped lane layout [rf rb | zf zb | nf nb]
    xp_k = jnp.stack([xp_f, xp_b], axis=3).reshape(B, L, 6 * H)
    xp_k = jnp.transpose(xp_k, (1, 0, 2))    # (L, B, 6H)

    zeros = jnp.zeros((H, H), jnp.float32)
    wf, wb = p["fwd"]["w_hh"], p["bwd"]["w_hh"]
    top = jnp.concatenate([wf[:, 0:H], zeros, wf[:, H:2 * H], zeros,
                           wf[:, 2 * H:3 * H], zeros], axis=1)
    bot = jnp.concatenate([zeros, wb[:, 0:H], zeros, wb[:, H:2 * H],
                           zeros, wb[:, 2 * H:3 * H]], axis=1)
    w_bd = jnp.concatenate([top, bot], axis=0)            # (2H, 6H)
    bf, bb = p["fwd"]["b_hh"], p["bwd"]["b_hh"]
    b_bd = jnp.concatenate([bf[0:H], bb[0:H], bf[H:2 * H], bb[H:2 * H],
                            bf[2 * H:3 * H], bb[2 * H:3 * H]])

    # TODO(synk): chunk xp_k / the output along L via manual DMA double-buffering
    # for very long sequences (v7x 64 MiB VMEM).
    out = pl.pallas_call(
        functools.partial(_gru_kernel, L=L, H=H, B=B),
        out_shape=jax.ShapeDtypeStruct((L, B, 2 * H), jnp.float32),
        compiler_params=_cparams(),
    )(xp_k.astype(jnp.float32),
      w_bd.astype(jnp.bfloat16),
      b_bd.reshape(1, 6 * H).astype(jnp.float32))

    out_f = jnp.transpose(out[:, :, :H], (1, 0, 2))        # (B, L, H)
    out_b = jnp.transpose(out[::-1, :, H:], (1, 0, 2))     # un-reverse time
    return jnp.concatenate([out_f, out_b], axis=-1)


# ----------------------------------------------------------------------------
# Glue ops (kept in plain jnp: tiny / gather-style)
# ----------------------------------------------------------------------------

def _bn_fold(w, b, bn, eps=1e-5):
    """Fold eval-mode BatchNorm into (K, Cin, Cout) conv weights + bias."""
    s = bn["gamma"] / jnp.sqrt(bn["var"] + eps)
    t = bn["beta"] - bn["mean"] * s
    return w * s, b * s + t


def interp_linear(x, out_len):
    """F.interpolate(mode='linear', align_corners=False) along L (channel-last)."""
    B, L, C = x.shape
    if out_len == L:
        return x
    coords = (jnp.arange(out_len) + 0.5) * (L / out_len) - 0.5
    coords = jnp.clip(coords, 0.0, L - 1)
    lo = jnp.floor(coords).astype(jnp.int32)
    hi = jnp.minimum(lo + 1, L - 1)
    w = (coords - lo)[None, :, None]
    return x[:, lo, :] * (1.0 - w) + x[:, hi, :] * w


def conv_transpose1d(x, wt, b, stride, padding, bn=None, eps=1e-5):
    """ConvTranspose1d, direct formulation.  wt: PyTorch layout (Cin, Cout, K).
    Optional eval-mode BN folded in.  Tap combination done by a reshape +
    shifted-add (2 output passes) instead of a K-iteration scatter-add."""
    B, Lin, Cin = x.shape
    _, Cout, K = wt.shape
    w = jnp.transpose(wt, (0, 2, 1))                      # (Cin, K, Cout)
    if bn is not None:
        s = bn["gamma"] / jnp.sqrt(bn["var"] + eps)
        t = bn["beta"] - bn["mean"] * s
        w = w * s
        b = b * s + t
    wflat = w.reshape(Cin, K * Cout)
    # one matmul produces all K tap contributions per input position
    P = dense(x.reshape(B * Lin, Cin), wflat, jnp.zeros((K * Cout,), jnp.float32))
    P = P.reshape(B, Lin, K, Cout)
    Lfull = (Lin - 1) * stride + K
    if K == 2 * stride:
        s_ = stride
        zrow = jnp.zeros((B, 1, s_, Cout), P.dtype)
        y = (jnp.concatenate([P[:, :, :s_, :], zrow], axis=1)
             + jnp.concatenate([zrow, P[:, :, s_:, :]], axis=1))
        y = y.reshape(B, (Lin + 1) * s_, Cout)            # == (B, Lfull, Cout)
    else:                                                 # generic fallback
        y = jnp.zeros((B, Lfull, Cout), jnp.float32)
        for k in range(K):
            y = y.at[:, k:k + (Lin - 1) * stride + 1:stride, :].add(P[:, :, k, :])
    Lout = Lfull - 2 * padding
    return y[:, padding:padding + Lout, :] + b


# ----------------------------------------------------------------------------
# Model blocks
# ----------------------------------------------------------------------------

def contraction_layer(x, p, pad, pool):
    # MultiConv1D: conv->relu->conv ; BN folded into conv2 ; ReLU ; fused MaxPool.
    h = conv1d(x, p["conv1_w"], p["conv1_b"], padding=pad, act="relu")
    w2, b2 = _bn_fold(p["conv2_w"], p["conv2_b"], p["bn"])
    enc, pooled = conv1d(h, w2, b2, padding=pad, act="relu", pool=pool)
    return pooled, enc


def transformer_layer(x, p, num_heads):
    B, L, D = x.shape
    x2 = x.reshape(B * L, D)
    q, k, v = qkv_dense(x2, p["in_w"], p["in_b"])          # bf16, lane-dense
    scale = 1.0 / np.sqrt(D // num_heads)
    a = attention(q.reshape(B, L, D), k.reshape(B, L, D), v.reshape(B, L, D),
                  num_heads, scale)
    x1 = proj_add_ln(a.reshape(B * L, D), x2, p["out_w"], p["out_b"],
                     p["ln1_g"], p["ln1_b"])
    x2o = ff_add_ln(x1, p["ff1_w"], p["ff1_b"], p["ff2_w"], p["ff2_b"],
                    p["ln2_g"], p["ln2_b"])
    return x2o.reshape(B, L, D)


def bottleneck_layer(x, p, num_heads):
    B, L, D = x.shape
    x = x + p["pe"][:L][None, :, :]
    for lp in p["layers"]:
        x = transformer_layer(x, lp, num_heads)
    return x


def expansion_layer(x, enc, p, pad, pool):
    # Reference order: ConvT -> interp -> BN -> ReLU.  BN1 (per-channel affine)
    # commutes with linear interpolation, so it is folded into the ConvT.
    pt = pool // 2
    h = conv_transpose1d(x, p["ct_w"], p["ct_b"], stride=pool, padding=pt,
                         bn=p["bn1"])
    h = interp_linear(h, enc.shape[1])
    h = jnp.maximum(h, 0.0)
    # skip concat never materialized: conv1 weight split into W_h / W_enc halves
    Cin = h.shape[-1]
    w1h = p["conv1_w"][:, :Cin, :]
    w1e = p["conv1_w"][:, Cin:, :]
    h = conv1d([h, enc], [w1h, w1e], p["conv1_b"], padding=pad, act="relu")
    w2, b2 = _bn_fold(p["conv2_w"], p["conv2_b"], p["bn2"])
    return conv1d(h, w2, b2, padding=pad, act="relu")


def h20_forward(params, x, cfg, logits=False):
    """x: (B, input_size, L)  ->  (B, L) probabilities (or logits).
    `cfg` must be a plain Python dict (static); `params` holds only arrays."""
    B, Cin, L = x.shape
    x = jnp.transpose(x, (0, 2, 1)).astype(jnp.float32)    # (B, L, input_size)
    pad = (cfg["kernel_size"] - 1) // 2                    # modules.compute_padding
    pool = cfg["pool_size"]
    num_heads = cfg["num_heads"]

    # Embedding1D ('MLP'): input_size -> 4d -> d, fused in one kernel
    e = params["embed"]
    h = mlp(x.reshape(B * L, Cin), e["w1"], e["b1"], e["w2"], e["b2"]).reshape(B, L, -1)

    # bidirectional GRU
    h = bigru(h, params["gru"])

    # contraction path
    encs = []
    for cp in params["contractions"]:
        h, enc = contraction_layer(h, cp, pad, pool)
        encs.append(enc)

    # transformer bottleneck
    h = bottleneck_layer(h, params["bottleneck"], num_heads)

    # expansion path
    for ep, enc in zip(params["expansions"], reversed(encs)):
        h = expansion_layer(h, enc, ep, pad, pool)

    # unembed MLP: 2d -> 4d -> 1, squeeze, sigmoid
    B2, L2, C2 = h.shape
    u = params["unembed"]
    y1 = dense(h.reshape(B2 * L2, C2), u["w1"], u["b1"], act="relu")
    # final width-1 projection kept in plain jnp (lane-sparse output; launch > math)
    y = (y1 @ u["w2"] + u["b2"]).reshape(B2, L2)
    if logits:
        return y
    return jax.nn.sigmoid(y)


# ----------------------------------------------------------------------------
# Deterministic parameter initialization (arrays only — no Python ints inside)
# ----------------------------------------------------------------------------

def sinusoidal_pe(max_len, d):
    pos = np.arange(max_len)[:, None].astype(np.float32)
    i = np.arange(0, d, 2)[None, :].astype(np.float32)
    angle = pos / np.power(10000.0, i / d)
    pe = np.zeros((max_len, d), np.float32)
    pe[:, 0::2] = np.sin(angle)
    pe[:, 1::2] = np.cos(angle)
    return jnp.asarray(pe)


def init_params(key, cfg):
    keys = iter(jax.random.split(key, 512))

    def nrm(shape, scale=0.05):
        return jax.random.normal(next(keys), shape, dtype=jnp.float32) * scale

    def bn_params(c):
        return dict(gamma=jnp.ones((c,), jnp.float32),
                    beta=jnp.zeros((c,), jnp.float32),
                    mean=jnp.zeros((c,), jnp.float32),
                    var=jnp.ones((c,), jnp.float32))

    d = cfg["d_model"]
    inp = cfg["input_size"]
    K = cfg["kernel_size"]
    pool = cfg["pool_size"]
    kt = 2 * pool                              # modules.compute_convt

    P = {}
    P["embed"] = dict(w1=nrm((inp, 4 * d)), b1=nrm((4 * d,)),
                      w2=nrm((4 * d, d)), b2=nrm((d,)))

    def gru_dir():
        return dict(w_ih=nrm((d, 3 * d)), b_ih=nrm((3 * d,)),
                    w_hh=nrm((d, 3 * d)), b_hh=nrm((3 * d,)))
    P["gru"] = dict(fwd=gru_dir(), bwd=gru_dir())

    in_ch = 2 * d
    P["contractions"] = []
    for _ in range(cfg["network_depth"]):
        out_ch = in_ch * cfg["channel_rate"]
        P["contractions"].append(dict(
            conv1_w=nrm((K, in_ch, out_ch)), conv1_b=nrm((out_ch,)),
            conv2_w=nrm((K, out_ch, out_ch)), conv2_b=nrm((out_ch,)),
            bn=bn_params(out_ch)))
        in_ch = out_ch

    D = in_ch
    layers = []
    for _ in range(cfg["bottleneck_layers"]):
        layers.append(dict(
            in_w=nrm((D, 3 * D)), in_b=nrm((3 * D,)),
            out_w=nrm((D, D)), out_b=nrm((D,)),
            ff1_w=nrm((D, 4 * D)), ff1_b=nrm((4 * D,)),
            ff2_w=nrm((4 * D, D)), ff2_b=nrm((D,)),
            ln1_g=jnp.ones((D,), jnp.float32), ln1_b=jnp.zeros((D,), jnp.float32),
            ln2_g=jnp.ones((D,), jnp.float32), ln2_b=jnp.zeros((D,), jnp.float32)))
    P["bottleneck"] = dict(layers=layers, pe=sinusoidal_pe(cfg["max_len"], D))

    P["expansions"] = []
    for _ in range(cfg["network_depth"]):
        out_ch = in_ch // cfg["channel_rate"]
        P["expansions"].append(dict(
            ct_w=nrm((in_ch, in_ch, kt)), ct_b=nrm((in_ch,)),
            bn1=bn_params(in_ch),
            conv1_w=nrm((K, 2 * in_ch, out_ch)), conv1_b=nrm((out_ch,)),
            conv2_w=nrm((K, out_ch, out_ch)), conv2_b=nrm((out_ch,)),
            bn2=bn_params(out_ch)))
        in_ch = out_ch

    P["unembed"] = dict(w1=nrm((2 * d, 4 * d)), b1=nrm((4 * d,)),
                        w2=nrm((4 * d, 1)), b2=nrm((1,)))
    return P


# ----------------------------------------------------------------------------

if __name__ == "__main__":
    cfg = dict(network_depth=2, bottleneck_layers=1, input_size=4, max_len=64,
               d_model=8, kernel_size=3, pool_size=2, channel_rate=2,
               num_heads=4, activation="ReLU", dropout=0.0)

    key = jax.random.PRNGKey(0)
    pkey, xkey = jax.random.split(key)
    params = init_params(pkey, cfg)

    B, L = 2, 16
    x = jax.random.normal(xkey, (B, cfg["input_size"], L), dtype=jnp.float32)

    fwd = jax.jit(lambda p, inp: h20_forward(p, inp, cfg, logits=False))
    out = fwd(params, x)
    out = jax.block_until_ready(out)

    assert out.shape == (B, L), out.shape
    assert bool(jnp.all(jnp.isfinite(out)))
    assert bool(jnp.all((out >= 0.0) & (out <= 1.0)))
    print("KERNEL_OK")
</pallas_src>

<mosaic_0001>
module attributes {stable_mosaic.version = 11 : i64} {
  func.func @_dense_kernel(%arg0: i32, %arg1: memref<32x8xbf16, #tpu.memory_space<vmem>>, %arg2: memref<8x48xbf16, #tpu.memory_space<vmem>>, %arg3: memref<1x48xf32, #tpu.memory_space<vmem>>, %arg4: memref<32x48xf32, #tpu.memory_space<vmem>>) attributes {dimension_semantics = [#tpu.dimension_semantics<parallel>], iteration_bounds = array<i64: 1>, scalar_prefetch = 0 : i64, scratch_operands = 0 : i64, tpu.core_type = #tpu.core_type<tc>, window_params = [{transform_indices = @transform_0, window_bounds = array<i64: 32, 8>}, {pipeline_mode = #tpu.pipeline_mode<synchronous>, transform_indices = @transform_1, window_bounds = array<i64: 8, 48>}, {pipeline_mode = #tpu.pipeline_mode<synchronous>, transform_indices = @transform_2, window_bounds = array<i64: 1, 48>}, {transform_indices = @transform_3, window_bounds = array<i64: 32, 48>}]} {
    %c0 = arith.constant 0 : index
    %c0_0 = arith.constant 0 : index
    %0 = vector.load %arg1[%c0, %c0_0] : memref<32x8xbf16, #tpu.memory_space<vmem>>, vector<32x8xbf16>
    %c0_1 = arith.constant 0 : index
    %c0_2 = arith.constant 0 : index
    %1 = vector.load %arg2[%c0_1, %c0_2] : memref<8x48xbf16, #tpu.memory_space<vmem>>, vector<8x48xbf16>
    %cst = arith.constant dense<0.000000e+00> : vector<32x48xf32>
    %2 = tpu.matmul %0, %1, %cst {dimension_numbers = #tpu.dot_dimension_numbers<[1], [0], [0], [1], [0, 0, 1, 1], [], []>} : vector<32x8xbf16>, vector<8x48xbf16>, vector<32x48xf32> -> vector<32x48xf32>
    %c0_3 = arith.constant 0 : index
    %c0_4 = arith.constant 0 : index
    %3 = vector.load %arg3[%c0_3, %c0_4] : memref<1x48xf32, #tpu.memory_space<vmem>>, vector<1x48xf32>
    %4 = vector.broadcast %3 : vector<1x48xf32> to vector<32x48xf32>
    %5 = arith.addf %2, %4 : vector<32x48xf32>
    %c0_5 = arith.constant 0 : index
    %c0_6 = arith.constant 0 : index
    %6 = vector.load %arg4[%c0_5, %c0_6] : memref<32x48xf32, #tpu.memory_space<vmem>>, vector<32x48xf32>
    tpu.vector_store %arg4[%c0_5, %c0_6], %5 {strides = array<i32>} : memref<32x48xf32, #tpu.memory_space<vmem>>, vector<32x48xf32>,
    return
  }
  func.func @transform_0(%arg0: i32) -> (i32, i32) {
    %c0_i32 = arith.constant 0 : i32
    %c0_i32_0 = arith.constant 0 : i32
    return %arg0, %c0_i32 : i32, i32
  }
  func.func @transform_1(%arg0: i32) -> (i32, i32) {
    %c0_i32 = arith.constant 0 : i32
    %c0_i32_0 = arith.constant 0 : i32
    %c0_i32_1 = arith.constant 0 : i32
    return %c0_i32, %c0_i32_0 : i32, i32
  }
  func.func @transform_2(%arg0: i32) -> (i32, i32) {
    %c0_i32 = arith.constant 0 : i32
    %c0_i32_0 = arith.constant 0 : i32
    %c0_i32_1 = arith.constant 0 : i32
    return %c0_i32, %c0_i32_0 : i32, i32
  }
  func.func @transform_3(%arg0: i32) -> (i32, i32) {
    %c0_i32 = arith.constant 0 : i32
    %c0_i32_0 = arith.constant 0 : i32
    return %arg0, %c0_i32 : i32, i32
  }
}

module attributes {stable_mosaic.version = 11 : i64} {
  func.func @_mlp_kernel(%arg0: i32, %arg1: memref<32x4xbf16, #tpu.memory_space<vmem>>, %arg2: memref<4x32xbf16, #tpu.memory_space<vmem>>, %arg3: memref<1x32xf32, #tpu.memory_space<vmem>>, %arg4: memref<32x8xbf16, #tpu.memory_space<vmem>>, %arg5: memref<1x8xf32, #tpu.memory_space<vmem>>, %arg6: memref<32x8xf32, #tpu.memory_space<vmem>>) attributes {dimension_semantics = [#tpu.dimension_semantics<parallel>], iteration_bounds = array<i64: 1>, scalar_prefetch = 0 : i64, scratch_operands = 0 : i64, tpu.core_type = #tpu.core_type<tc>, window_params = [{transform_indices = @transform_0, window_bounds = array<i64: 32, 4>}, {pipeline_mode = #tpu.pipeline_mode<synchronous>, transform_indices = @transform_1, window_bounds = array<i64: 4, 32>}, {pipeline_mode = #tpu.pipeline_mode<synchronous>, transform_indices = @transform_2, window_bounds = array<i64: 1, 32>}, {pipeline_mode = #tpu.pipeline_mode<synchronous>, transform_indices = @transform_3, window_bounds = array<i64: 32, 8>}, {pipeline_mode = #tpu.pipeline_mode<synchronous>, transform_indices = @transform_4, window_bounds = array<i64: 1, 8>}, {transform_indices = @transform_5, window_bounds = array<i64: 32, 8>}]} {
    %c0 = arith.constant 0 : index
    %c0_0 = arith.constant 0 : index
    %0 = vector.load %arg1[%c0, %c0_0] : memref<32x4xbf16, #tpu.memory_space<vmem>>, vector<32x4xbf16>
    %c0_1 = arith.constant 0 : index
    %c0_2 = arith.constant 0 : index
    %1 = vector.load %arg2[%c0_1, %c0_2] : memref<4x32xbf16, #tpu.memory_space<vmem>>, vector<4x32xbf16>
    %cst = arith.constant dense<0.000000e+00> : vector<32x32xf32>
    %2 = tpu.matmul %0, %1, %cst {dimension_numbers = #tpu.dot_dimension_numbers<[1], [0], [0], [1], [0, 0, 1, 1], [], []>} : vector<32x4xbf16>, vector<4x32xbf16>, vector<32x32xf32> -> vector<32x32xf32>
    %c0_3 = arith.constant 0 : index
    %c0_4 = arith.constant 0 : index
    %3 = vector.load %arg3[%c0_3, %c0_4] : memref<1x32xf32, #tpu.memory_space<vmem>>, vector<1x32xf32>
    %4 = vector.broadcast %3 : vector<1x32xf32> to vector<32x32xf32>
    %5 = arith.addf %2, %4 : vector<32x32xf32>
    %cst_5 = arith.constant 0.000000e+00 : f32
    %6 = vector.broadcast %cst_5 : f32 to vector<32x32xf32>
    %7 = arith.maximumf %5, %6 : vector<32x32xf32>
    %8 = arith.truncf %7 : vector<32x32xf32> to vector<32x32xbf16>
    %c0_6 = arith.constant 0 : index
    %c0_7 = arith.constant 0 : index
    %9 = vector.load %arg4[%c0_6, %c0_7] : memref<32x8xbf16, #tpu.memory_space<vmem>>, vector<32x8xbf16>
    %cst_8 = arith.constant dense<0.000000e+00> : vector<32x8xf32>
    %10 = tpu.matmul %8, %9, %cst_8 {dimension_numbers = #tpu.dot_dimension_numbers<[1], [0], [0], [1], [0, 0, 1, 1], [], []>} : vector<32x32xbf16>, vector<32x8xbf16>, vector<32x8xf32> -> vector<32x8xf32>
    %c0_9 = arith.constant 0 : index
    %c0_10 = arith.constant 0 : index
    %11 = vector.load %arg5[%c0_9, %c0_10] : memref<1x8xf32, #tpu.memory_space<vmem>>, vector<1x8xf32>
    %12 = vector.broadcast %11 : vector<1x8xf32> to vector<32x8xf32>
    %13 = arith.addf %10, %12 : vector<32x8xf32>
    %c0_11 = arith.constant 0 : index
    %c0_12 = arith.constant 0 : index
    %14 = vector.load %arg6[%c0_11, %c0_12] : memref<32x8xf32, #tpu.memory_space<vmem>>, vector<32x8xf32>
    tpu.vector_store %arg6[%c0_11, %c0_12], %13 {strides = array<i32>} : memref<32x8xf32, #tpu.memory_space<vmem>>, vector<32x8xf32>,
    return
  }
  func.func @transform_0(%arg0: i32) -> (i32, i32) {
    %c0_i32 = arith.constant 0 : i32
    %c0_i32_0 = arith.constant 0 : i32
    return %arg0, %c0_i32 : i32, i32
  }
  func.func @transform_1(%arg0: i32) -> (i32, i32) {
    %c0_i32 = arith.constant 0 : i32
    %c0_i32_0 = arith.constant 0 : i32
    %c0_i32_1 = arith.constant 0 : i32
    return %c0_i32, %c0_i32_0 : i32, i32
  }
  func.func @transform_2(%arg0: i32) -> (i32, i32) {
    %c0_i32 = arith.constant 0 : i32
    %c0_i32_0 = arith.constant 0 : i32
    %c0_i32_1 = arith.constant 0 : i32
    return %c0_i32, %c0_i32_0 : i32, i32
  }
  func.func @transform_3(%arg0: i32) -> (i32, i32) {
    %c0_i32 = arith.constant 0 : i32
    %c0_i32_0 = arith.constant 0 : i32
    %c0_i32_1 = arith.constant 0 : i32
    return %c0_i32, %c0_i32_0 : i32, i32
  }
  func.func @transform_4(%arg0: i32) -> (i32, i32) {
    %c0_i32 = arith.constant 0 : i32
    %c0_i32_0 = arith.constant 0 : i32
    %c0_i32_1 = arith.constant 0 : i32
    return %c0_i32, %c0_i32_0 : i32, i32
  }
  func.func @transform_5(%arg0: i32) -> (i32, i32) {
    %c0_i32 = arith.constant 0 : i32
    %c0_i32_0 = arith.constant 0 : i32
    return %arg0, %c0_i32 : i32, i32
  }
}

module attributes {stable_mosaic.version = 11 : i64} {
  func.func @_gru_kernel(%arg0: memref<16x2x48xf32, #tpu.memory_space<vmem>>, %arg1: memref<16x48xbf16, #tpu.memory_space<vmem>>, %arg2: memref<1x48xf32, #tpu.memory_space<vmem>>, %arg3: memref<16x2x16xf32, #tpu.memory_space<vmem>>) attributes {dimension_semantics = [], scalar_prefetch = 0 : i64, scratch_operands = 0 : i64, tpu.core_type = #tpu.core_type<tc>} {
    %cst = arith.constant 0.000000e+00 : f32
    %0 = vector.broadcast %cst : f32 to vector<2x16xf32>
    %c0_i32 = arith.constant 0 : i32
    %c16_i32 = arith.constant 16 : i32
    %1 = arith.addi %c0_i32, %c16_i32 : i32
    %c1_i32 = arith.constant 1 : i32
    %2 = scf.for %arg4 = %c0_i32 to %1 step %c1_i32 iter_args(%arg5 = %0) -> (vector<2x16xf32>)  : i32 {
      %3 = arith.truncf %arg5 : vector<2x16xf32> to vector<2x16xbf16>
      %c0 = arith.constant 0 : index
      %c0_1 = arith.constant 0 : index
      %4 = vector.load %arg1[%c0, %c0_1] : memref<16x48xbf16, #tpu.memory_space<vmem>>, vector<16x48xbf16>
      %cst_2 = arith.constant dense<0.000000e+00> : vector<2x48xf32>
      %5 = tpu.matmul %3, %4, %cst_2 {dimension_numbers = #tpu.dot_dimension_numbers<[1], [0], [0], [1], [0, 0, 1, 1], [], []>} : vector<2x16xbf16>, vector<16x48xbf16>, vector<2x48xf32> -> vector<2x48xf32>
      %c0_3 = arith.constant 0 : index
      %c0_4 = arith.constant 0 : index
      %6 = vector.load %arg2[%c0_3, %c0_4] : memref<1x48xf32, #tpu.memory_space<vmem>>, vector<1x48xf32>
      %7 = vector.broadcast %6 : vector<1x48xf32> to vector<2x48xf32>
      %8 = arith.addf %5, %7 : vector<2x48xf32>
      %9 = arith.index_cast %arg4 : i32 to index
      %c0_5 = arith.constant 0 : index
      %c0_6 = arith.constant 0 : index
      %10 = vector.load %arg0[%9, %c0_5, %c0_6] : memref<16x2x48xf32, #tpu.memory_space<vmem>>, vector<1x2x48xf32>
      %11 = vector.shape_cast %10 : vector<1x2x48xf32> to vector<2x48xf32>
      %12 = vector.extract_strided_slice %11 {offsets = [0, 0], sizes = [2, 16], strides = [1, 1]} : vector<2x48xf32> to vector<2x16xf32>
      %13 = vector.extract_strided_slice %8 {offsets = [0, 0], sizes = [2, 16], strides = [1, 1]} : vector<2x48xf32> to vector<2x16xf32>
      %14 = arith.addf %12, %13 : vector<2x16xf32>
      %cst_7 = arith.constant 0.000000e+00 : f32
      %15 = vector.broadcast %cst_7 : f32 to vector<2x16xf32>
      %16 = arith.subf %15, %14 : vector<2x16xf32>
      %17 = math.exp %16 : vector<2x16xf32>
      %cst_8 = arith.constant 1.000000e+00 : f32
      %18 = vector.broadcast %cst_8 : f32 to vector<2x16xf32>
      %19 = arith.addf %18, %17 : vector<2x16xf32>
      %cst_9 = arith.constant 1.000000e+00 : f32
      %20 = vector.broadcast %cst_9 : f32 to vector<2x16xf32>
      %21 = arith.divf %20, %19 : vector<2x16xf32>
      %22 = vector.extract_strided_slice %11 {offsets = [0, 16], sizes = [2, 16], strides = [1, 1]} : vector<2x48xf32> to vector<2x16xf32>
      %23 = vector.extract_strided_slice %8 {offsets = [0, 16], sizes = [2, 16], strides = [1, 1]} : vector<2x48xf32> to vector<2x16xf32>
      %24 = arith.addf %22, %23 : vector<2x16xf32>
      %cst_10 = arith.constant 0.000000e+00 : f32
      %25 = vector.broadcast %cst_10 : f32 to vector<2x16xf32>
      %26 = arith.subf %25, %24 : vector<2x16xf32>
      %27 = math.exp %26 : vector<2x16xf32>
      %cst_11 = arith.constant 1.000000e+00 : f32
      %28 = vector.broadcast %cst_11 : f32 to vector<2x16xf32>
      %29 = arith.addf %28, %27 : vector<2x16xf32>
      %cst_12 = arith.constant 1.000000e+00 : f32
      %30 = vector.broadcast %cst_12 : f32 to vector<2x16xf32>
      %31 = arith.divf %30, %29 : vector<2x16xf32>
      %32 = vector.extract_strided_slice %11 {offsets = [0, 32], sizes = [2, 16], strides = [1, 1]} : vector<2x48xf32> to vector<2x16xf32>
      %33 = vector.extract_strided_slice %8 {offsets = [0, 32], sizes = [2, 16], strides = [1, 1]} : vector<2x48xf32> to vector<2x16xf32>
      %34 = arith.mulf %21, %33 : vector<2x16xf32>
      %35 = arith.addf %32, %34 : vector<2x16xf32>
      %36 = math.tanh %35 : vector<2x16xf32>
      %cst_13 = arith.constant 1.000000e+00 : f32
      %37 = vector.broadcast %cst_13 : f32 to vector<2x16xf32>
      %38 = arith.subf %37, %31 : vector<2x16xf32>
      %39 = arith.mulf %38, %36 : vector<2x16xf32>
      %40 = arith.mulf %31, %arg5 : vector<2x16xf32>
      %41 = arith.addf %39, %40 : vector<2x16xf32>
      %42 = arith.index_cast %arg4 : i32 to index
      %c0_14 = arith.constant 0 : index
      %c0_15 = arith.constant 0 : index
      %43 = vector.load %arg3[%42, %c0_14, %c0_15] : memref<16x2x16xf32, #tpu.memory_space<vmem>>, vector<1x2x16xf32>
      %44 = vector.shape_cast %43 : vector<1x2x16xf32> to vector<2x16xf32>
      %45 = vector.shape_cast %41 : vector<2x16xf32> to vector<1x2x16xf32>
      tpu.vector_store %arg3[%42, %c0_14, %c0_15], %45 {strides = array<i32>} : memref<16x2x16xf32, #tpu.memory_space<vmem>>, vector<1x2x16xf32>,
      scf.yield %41 : vector<2x16xf32>
    }
    %c16_i32_0 = arith.constant 16 : i32
    return
  }
}

module attributes {stable_mosaic.version = 11 : i64} {
  func.func @_conv_kernel(%arg0: i32, %arg1: memref<1x16x16xbf16, #tpu.memory_space<vmem>>, %arg2: memref<3x16x32xbf16, #tpu.memory_space<vmem>>, %arg3: memref<1x32xf32, #tpu.memory_space<vmem>>, %arg4: memref<1x16x32xf32, #tpu.memory_space<vmem>>) attributes {dimension_semantics = [#tpu.dimension_semantics<parallel>], iteration_bounds = array<i64: 2>, scalar_prefetch = 0 : i64, scratch_operands = 0 : i64, tpu.core_type = #tpu.core_type<tc>, window_params = [{transform_indices = @transform_0, window_bounds = array<i64: 1, 16, 16>}, {pipeline_mode = #tpu.pipeline_mode<synchronous>, transform_indices = @transform_1, window_bounds = array<i64: 3, 16, 32>}, {pipeline_mode = #tpu.pipeline_mode<synchronous>, transform_indices = @transform_2, window_bounds = array<i64: 1, 32>}, {transform_indices = @transform_3, window_bounds = array<i64: 1, 16, 32>}]} {
    %cst = arith.constant 0.000000e+00 : f32
    %0 = vector.broadcast %cst : f32 to vector<16x32xf32>
    %c0 = arith.constant 0 : index
    %c0_0 = arith.constant 0 : index
    %c0_1 = arith.constant 0 : index
    %1 = vector.load %arg1[%c0, %c0_0, %c0_1] : memref<1x16x16xbf16, #tpu.memory_space<vmem>>, vector<1x16x16xbf16>
    %2 = vector.shape_cast %1 : vector<1x16x16xbf16> to vector<16x16xbf16>
    %cst_2 = arith.constant 0.000000e+00 : bf16
    %3 = vector.broadcast %cst_2 : bf16 to vector<1x16xbf16>
    %4 = tpu.concatenate %3, %2, %3 in 0 : vector<1x16xbf16>, vector<16x16xbf16>, vector<1x16xbf16> -> vector<18x16xbf16>
    %5 = vector.extract_strided_slice %4 {offsets = [0, 0], sizes = [16, 16], strides = [1, 1]} : vector<18x16xbf16> to vector<16x16xbf16>
    %c0_3 = arith.constant 0 : index
    %c0_4 = arith.constant 0 : index
    %c0_5 = arith.constant 0 : index
    %6 = vector.load %arg2[%c0_3, %c0_4, %c0_5] : memref<3x16x32xbf16, #tpu.memory_space<vmem>>, vector<1x16x32xbf16>
    %7 = vector.shape_cast %6 : vector<1x16x32xbf16> to vector<16x32xbf16>
    %cst_6 = arith.constant dense<0.000000e+00> : vector<16x32xf32>
    %8 = tpu.matmul %5, %7, %cst_6 {dimension_numbers = #tpu.dot_dimension_numbers<[1], [0], [0], [1], [0, 0, 1, 1], [], []>} : vector<16x16xbf16>, vector<16x32xbf16>, vector<16x32xf32> -> vector<16x32xf32>
    %9 = arith.addf %0, %8 : vector<16x32xf32>
    %10 = vector.extract_strided_slice %4 {offsets = [1, 0], sizes = [16, 16], strides = [1, 1]} : vector<18x16xbf16> to vector<16x16xbf16>
    %c1 = arith.constant 1 : index
    %c0_7 = arith.constant 0 : index
    %c0_8 = arith.constant 0 : index
    %11 = vector.load %arg2[%c1, %c0_7, %c0_8] : memref<3x16x32xbf16, #tpu.memory_space<vmem>>, vector<1x16x32xbf16>
    %12 = vector.shape_cast %11 : vector<1x16x32xbf16> to vector<16x32xbf16>
    %cst_9 = arith.constant dense<0.000000e+00> : vector<16x32xf32>
    %13 = tpu.matmul %10, %12, %cst_9 {dimension_numbers = #tpu.dot_dimension_numbers<[1], [0], [0], [1], [0, 0, 1, 1], [], []>} : vector<16x16xbf16>, vector<16x32xbf16>, vector<16x32xf32> -> vector<16x32xf32>
    %14 = arith.addf %9, %13 : vector<16x32xf32>
    %15 = vector.extract_strided_slice %4 {offsets = [2, 0], sizes = [16, 16], strides = [1, 1]} : vector<18x16xbf16> to vector<16x16xbf16>
    %c2 = arith.constant 2 : index
    %c0_10 = arith.constant 0 : index
    %c0_11 = arith.constant 0 : index
    %16 = vector.load %arg2[%c2, %c0_10, %c0_11] : memref<3x16x32xbf16, #tpu.memory_space<vmem>>, vector<1x16x32xbf16>
    %17 = vector.shape_cast %16 : vector<1x16x32xbf16> to vector<16x32xbf16>
    %cst_12 = arith.constant dense<0.000000e+00> : vector<16x32xf32>
    %18 = tpu.matmul %15, %17, %cst_12 {dimension_numbers = #tpu.dot_dimension_numbers<[1], [0], [0], [1], [0, 0, 1, 1], [], []>} : vector<16x16xbf16>, vector<16x32xbf16>, vector<16x32xf32> -> vector<16x32xf32>
    %19 = arith.addf %14, %18 : vector<16x32xf32>
    %c0_13 = arith.constant 0 : index
    %c0_14 = arith.constant 0 : index
    %20 = vector.load %arg3[%c0_13, %c0_14] : memref<1x32xf32, #tpu.memory_space<vmem>>, vector<1x32xf32>
    %21 = vector.broadcast %20 : vector<1x32xf32> to vector<16x32xf32>
    %22 = arith.addf %19, %21 : vector<16x32xf32>
    %cst_15 = arith.constant 0.000000e+00 : f32
    %23 = vector.broadcast %cst_15 : f32 to vector<16x32xf32>
    %24 = arith.maximumf %22, %23 : vector<16x32xf32>
    %c0_16 = arith.constant 0 : index
    %c0_17 = arith.constant 0 : index
    %c0_18 = arith.constant 0 : index
    %25 = vector.load %arg4[%c0_16, %c0_17, %c0_18] : memref<1x16x32xf32, #tpu.memory_space<vmem>>, vector<1x16x32xf32>
    %26 = vector.shape_cast %25 : vector<1x16x32xf32> to vector<16x32xf32>
    %27 = vector.shape_cast %24 : vector<16x32xf32> to vector<1x16x32xf32>
    tpu.vector_store %arg4[%c0_16, %c0_17, %c0_18], %27 {strides = array<i32>} : memref<1x16x32xf32, #tpu.memory_space<vmem>>, vector<1x16x32xf32>,
    return
  }
  func.func @transform_0(%arg0: i32) -> (i32, i32, i32) {
    %c0_i32 = arith.constant 0 : i32
    %c0_i32_0 = arith.constant 0 : i32
    %c0_i32_1 = arith.constant 0 : i32
    return %arg0, %c0_i32, %c0_i32_0 : i32, i32, i32
  }
  func.func @transform_1(%arg0: i32) -> (i32, i32, i32) {
    %c0_i32 = arith.constant 0 : i32
    %c0_i32_0 = arith.constant 0 : i32
    %c0_i32_1 = arith.constant 0 : i32
    %c0_i32_2 = arith.constant 0 : i32
    return %c0_i32, %c0_i32_0, %c0_i32_1 : i32, i32, i32
  }
  func.func @transform_2(%arg0: i32) -> (i32, i32) {
    %c0_i32 = arith.constant 0 : i32
    %c0_i32_0 = arith.constant 0 : i32
    %c0_i32_1 = arith.constant 0 : i32
    return %c0_i32, %c0_i32_0 : i32, i32
  }
  func.func @transform_3(%arg0: i32) -> (i32, i32, i32) {
    %c0_i32 = arith.constant 0 : i32
    %c0_i32_0 = arith.constant 0 : i32
    %c0_i32_1 = arith.constant 0 : i32
    return %arg0, %c0_i32, %c0_i32_0 : i32, i32, i32
  }
}

module attributes {stable_mosaic.version = 11 : i64} {
  func.func @_conv_kernel(%arg0: i32, %arg1: memref<1x16x32xbf16, #tpu.memory_space<vmem>>, %arg2: memref<3x32x32xbf16, #tpu.memory_space<vmem>>, %arg3: memref<1x32xf32, #tpu.memory_space<vmem>>, %arg4: memref<1x16x32xf32, #tpu.memory_space<vmem>>, %arg5: memref<1x8x32xf32, #tpu.memory_space<vmem>>) attributes {dimension_semantics = [#tpu.dimension_semantics<parallel>], iteration_bounds = array<i64: 2>, scalar_prefetch = 0 : i64, scratch_operands = 0 : i64, tpu.core_type = #tpu.core_type<tc>, window_params = [{transform_indices = @transform_0, window_bounds = array<i64: 1, 16, 32>}, {pipeline_mode = #tpu.pipeline_mode<synchronous>, transform_indices = @transform_1, window_bounds = array<i64: 3, 32, 32>}, {pipeline_mode = #tpu.pipeline_mode<synchronous>, transform_indices = @transform_2, window_bounds = array<i64: 1, 32>}, {transform_indices = @transform_3, window_bounds = array<i64: 1, 16, 32>}, {transform_indices = @transform_4, window_bounds = array<i64: 1, 8, 32>}]} {
    %cst = arith.constant 0.000000e+00 : f32
    %0 = vector.broadcast %cst : f32 to vector<16x32xf32>
    %c0 = arith.constant 0 : index
    %c0_0 = arith.constant 0 : index
    %c0_1 = arith.constant 0 : index
    %1 = vector.load %arg1[%c0, %c0_0, %c0_1] : memref<1x16x32xbf16, #tpu.memory_space<vmem>>, vector<1x16x32xbf16>
    %2 = vector.shape_cast %1 : vector<1x16x32xbf16> to vector<16x32xbf16>
    %cst_2 = arith.constant 0.000000e+00 : bf16
    %3 = vector.broadcast %cst_2 : bf16 to vector<1x32xbf16>
    %4 = tpu.concatenate %3, %2, %3 in 0 : vector<1x32xbf16>, vector<16x32xbf16>, vector<1x32xbf16> -> vector<18x32xbf16>
    %5 = vector.extract_strided_slice %4 {offsets = [0, 0], sizes = [16, 32], strides = [1, 1]} : vector<18x32xbf16> to vector<16x32xbf16>
    %c0_3 = arith.constant 0 : index
    %c0_4 = arith.constant 0 : index
    %c0_5 = arith.constant 0 : index
    %6 = vector.load %arg2[%c0_3, %c0_4, %c0_5] : memref<3x32x32xbf16, #tpu.memory_space<vmem>>, vector<1x32x32xbf16>
    %7 = vector.shape_cast %6 : vector<1x32x32xbf16> to vector<32x32xbf16>
    %cst_6 = arith.constant dense<0.000000e+00> : vector<16x32xf32>
    %8 = tpu.matmul %5, %7, %cst_6 {dimension_numbers = #tpu.dot_dimension_numbers<[1], [0], [0], [1], [0, 0, 1, 1], [], []>} : vector<16x32xbf16>, vector<32x32xbf16>, vector<16x32xf32> -> vector<16x32xf32>
    %9 = arith.addf %0, %8 : vector<16x32xf32>
    %10 = vector.extract_strided_slice %4 {offsets = [1, 0], sizes = [16, 32], strides = [1, 1]} : vector<18x32xbf16> to vector<16x32xbf16>
    %c1 = arith.constant 1 : index
    %c0_7 = arith.constant 0 : index
    %c0_8 = arith.constant 0 : index
    %11 = vector.load %arg2[%c1, %c0_7, %c0_8] : memref<3x32x32xbf16, #tpu.memory_space<vmem>>, vector<1x32x32xbf16>
    %12 = vector.shape_cast %11 : vector<1x32x32xbf16> to vector<32x32xbf16>
    %cst_9 = arith.constant dense<0.000000e+00> : vector<16x32xf32>
    %13 = tpu.matmul %10, %12, %cst_9 {dimension_numbers = #tpu.dot_dimension_numbers<[1], [0], [0], [1], [0, 0, 1, 1], [], []>} : vector<16x32xbf16>, vector<32x32xbf16>, vector<16x32xf32> -> vector<16x32xf32>
    %14 = arith.addf %9, %13 : vector<16x32xf32>
    %15 = vector.extract_strided_slice %4 {offsets = [2, 0], sizes = [16, 32], strides = [1, 1]} : vector<18x32xbf16> to vector<16x32xbf16>
    %c2 = arith.constant 2 : index
    %c0_10 = arith.constant 0 : index
    %c0_11 = arith.constant 0 : index
    %16 = vector.load %arg2[%c2, %c0_10, %c0_11] : memref<3x32x32xbf16, #tpu.memory_space<vmem>>, vector<1x32x32xbf16>
    %17 = vector.shape_cast %16 : vector<1x32x32xbf16> to vector<32x32xbf16>
    %cst_12 = arith.constant dense<0.000000e+00> : vector<16x32xf32>
    %18 = tpu.matmul %15, %17, %cst_12 {dimension_numbers = #tpu.dot_dimension_numbers<[1], [0], [0], [1], [0, 0, 1, 1], [], []>} : vector<16x32xbf16>, vector<32x32xbf16>, vector<16x32xf32> -> vector<16x32xf32>
    %19 = arith.addf %14, %18 : vector<16x32xf32>
    %c0_13 = arith.constant 0 : index
    %c0_14 = arith.constant 0 : index
    %20 = vector.load %arg3[%c0_13, %c0_14] : memref<1x32xf32, #tpu.memory_space<vmem>>, vector<1x32xf32>
    %21 = vector.broadcast %20 : vector<1x32xf32> to vector<16x32xf32>
    %22 = arith.addf %19, %21 : vector<16x32xf32>
    %cst_15 = arith.constant 0.000000e+00 : f32
    %23 = vector.broadcast %cst_15 : f32 to vector<16x32xf32>
    %24 = arith.maximumf %22, %23 : vector<16x32xf32>
    %c0_16 = arith.constant 0 : index
    %c0_17 = arith.constant 0 : index
    %c0_18 = arith.constant 0 : index
    %25 = vector.load %arg4[%c0_16, %c0_17, %c0_18] : memref<1x16x32xf32, #tpu.memory_space<vmem>>, vector<1x16x32xf32>
    %26 = vector.shape_cast %25 : vector<1x16x32xf32> to vector<16x32xf32>
    %27 = vector.shape_cast %24 : vector<16x32xf32> to vector<1x16x32xf32>
    tpu.vector_store %arg4[%c0_16, %c0_17, %c0_18], %27 {strides = array<i32>} : memref<1x16x32xf32, #tpu.memory_space<vmem>>, vector<1x16x32xf32>,
    %28 = vector.shape_cast %24 : vector<16x32xf32> to vector<8x2x32xf32>
    %cst_19 = arith.constant dense<0xFF800000> : vector<8x32xf32>
    %29 = vector.multi_reduction <maximumf>, %28, %cst_19 [1] : vector<8x2x32xf32> to vector<8x32xf32>
    %c0_20 = arith.constant 0 : index
    %c0_21 = arith.constant 0 : index
    %c0_22 = arith.constant 0 : index
    %30 = vector.load %arg5[%c0_20, %c0_21, %c0_22] : memref<1x8x32xf32, #tpu.memory_space<vmem>>, vector<1x8x32xf32>
    %31 = vector.shape_cast %30 : vector<1x8x32xf32> to vector<8x32xf32>
    %32 = vector.shape_cast %29 : vector<8x32xf32> to vector<1x8x32xf32>
    tpu.vector_store %arg5[%c0_20, %c0_21, %c0_22], %32 {strides = array<i32>} : memref<1x8x32xf32, #tpu.memory_space<vmem>>, vector<1x8x32xf32>,
    return
  }
  func.func @transform_0(%arg0: i32) -> (i32, i32, i32) {
    %c0_i32 = arith.constant 0 : i32
    %c0_i32_0 = arith.constant 0 : i32
    %c0_i32_1 = arith.constant 0 : i32
    return %arg0, %c0_i32, %c0_i32_0 : i32, i32, i32
  }
  func.func @transform_1(%arg0: i32) -> (i32, i32, i32) {
    %c0_i32 = arith.constant 0 : i32
    %c0_i32_0 = arith.constant 0 : i32
    %c0_i32_1 = arith.constant 0 : i32
    %c0_i32_2 = arith.constant 0 : i32
    return %c0_i32, %c0_i32_0, %c0_i32_1 : i32, i32, i32
  }
  func.func @transform_2(%arg0: i32) -> (i32, i32) {
    %c0_i32 = arith.constant 0 : i32
    %c0_i32_0 = arith.constant 0 : i32
    %c0_i32_1 = arith.constant 0 : i32
    return %c0_i32, %c0_i32_0 : i32, i32
  }
  func.func @transform_3(%arg0: i32) -> (i32, i32, i32) {
    %c0_i32 = arith.constant 0 : i32
    %c0_i32_0 = arith.constant 0 : i32
    %c0_i32_1 = arith.constant 0 : i32
    return %arg0, %c0_i32, %c0_i32_0 : i32, i32, i32
  }
  func.func @transform_4(%arg0: i32) -> (i32, i32, i32) {
    %c0_i32 = arith.constant 0 : i32
    %c0_i32_0 = arith.constant 0 : i32
    %c0_i32_1 = arith.constant 0 : i32
    return %arg0, %c0_i32, %c0_i32_0 : i32, i32, i32
  }
}

module attributes {stable_mosaic.version = 11 : i64} {
  func.func @_conv_kernel(%arg0: i32, %arg1: memref<1x8x64xbf16, #tpu.memory_space<vmem>>, %arg2: memref<3x64x64xbf16, #tpu.memory_space<vmem>>, %arg3: memref<1x64xf32, #tpu.memory_space<vmem>>, %arg4: memref<1x8x64xf32, #tpu.memory_space<vmem>>, %arg5: memref<1x4x64xf32, #tpu.memory_space<vmem>>) attributes {dimension_semantics = [#tpu.dimension_semantics<parallel>], iteration_bounds = array<i64: 2>, scalar_prefetch = 0 : i64, scratch_operands = 0 : i64, tpu.core_type = #tpu.core_type<tc>, window_params = [{transform_indices = @transform_0, window_bounds = array<i64: 1, 8, 64>}, {pipeline_mode = #tpu.pipeline_mode<synchronous>, transform_indices = @transform_1, window_bounds = array<i64: 3, 64, 64>}, {pipeline_mode = #tpu.pipeline_mode<synchronous>, transform_indices = @transform_2, window_bounds = array<i64: 1, 64>}, {transform_indices = @transform_3, window_bounds = array<i64: 1, 8, 64>}, {transform_indices = @transform_4, window_bounds = array<i64: 1, 4, 64>}]} {
    %cst = arith.constant 0.000000e+00 : f32
    %0 = vector.broadcast %cst : f32 to vector<8x64xf32>
    %c0 = arith.constant 0 : index
    %c0_0 = arith.constant 0 : index
    %c0_1 = arith.constant 0 : index
    %1 = vector.load %arg1[%c0, %c0_0, %c0_1] : memref<1x8x64xbf16, #tpu.memory_space<vmem>>, vector<1x8x64xbf16>
    %2 = vector.shape_cast %1 : vector<1x8x64xbf16> to vector<8x64xbf16>
    %cst_2 = arith.constant 0.000000e+00 : bf16
    %3 = vector.broadcast %cst_2 : bf16 to vector<1x64xbf16>
    %4 = tpu.concatenate %3, %2, %3 in 0 : vector<1x64xbf16>, vector<8x64xbf16>, vector<1x64xbf16> -> vector<10x64xbf16>
    %5 = vector.extract_strided_slice %4 {offsets = [0, 0], sizes = [8, 64], strides = [1, 1]} : vector<10x64xbf16> to vector<8x64xbf16>
    %c0_3 = arith.constant 0 : index
    %c0_4 = arith.constant 0 : index
    %c0_5 = arith.constant 0 : index
    %6 = vector.load %arg2[%c0_3, %c0_4, %c0_5] : memref<3x64x64xbf16, #tpu.memory_space<vmem>>, vector<1x64x64xbf16>
    %7 = vector.shape_cast %6 : vector<1x64x64xbf16> to vector<64x64xbf16>
    %cst_6 = arith.constant dense<0.000000e+00> : vector<8x64xf32>
    %8 = tpu.matmul %5, %7, %cst_6 {dimension_numbers = #tpu.dot_dimension_numbers<[1], [0], [0], [1], [0, 0, 1, 1], [], []>} : vector<8x64xbf16>, vector<64x64xbf16>, vector<8x64xf32> -> vector<8x64xf32>
    %9 = arith.addf %0, %8 : vector<8x64xf32>
    %10 = vector.extract_strided_slice %4 {offsets = [1, 0], sizes = [8, 64], strides = [1, 1]} : vector<10x64xbf16> to vector<8x64xbf16>
    %c1 = arith.constant 1 : index
    %c0_7 = arith.constant 0 : index
    %c0_8 = arith.constant 0 : index
    %11 = vector.load %arg2[%c1, %c0_7, %c0_8] : memref<3x64x64xbf16, #tpu.memory_space<vmem>>, vector<1x64x64xbf16>
    %12 = vector.shape_cast %11 : vector<1x64x64xbf16> to vector<64x64xbf16>
    %cst_9 = arith.constant dense<0.000000e+00> : vector<8x64xf32>
    %13 = tpu.matmul %10, %12, %cst_9 {dimension_numbers = #tpu.dot_dimension_numbers<[1], [0], [0], [1], [0, 0, 1, 1], [], []>} : vector<8x64xbf16>, vector<64x64xbf16>, vector<8x64xf32> -> vector<8x64xf32>
    %14 = arith.addf %9, %13 : vector<8x64xf32>
    %15 = vector.extract_strided_slice %4 {offsets = [2, 0], sizes = [8, 64], strides = [1, 1]} : vector<10x64xbf16> to vector<8x64xbf16>
    %c2 = arith.constant 2 : index
    %c0_10 = arith.constant 0 : index
    %c0_11 = arith.constant 0 : index
    %16 = vector.load %arg2[%c2, %c0_10, %c0_11] : memref<3x64x64xbf16, #tpu.memory_space<vmem>>, vector<1x64x64xbf16>
    %17 = vector.shape_cast %16 : vector<1x64x64xbf16> to vector<64x64xbf16>
    %cst_12 = arith.constant dense<0.000000e+00> : vector<8x64xf32>
    %18 = tpu.matmul %15, %17, %cst_12 {dimension_numbers = #tpu.dot_dimension_numbers<[1], [0], [0], [1], [0, 0, 1, 1], [], []>} : vector<8x64xbf16>, vector<64x64xbf16>, vector<8x64xf32> -> vector<8x64xf32>
    %19 = arith.addf %14, %18 : vector<8x64xf32>
    %c0_13 = arith.constant 0 : index
    %c0_14 = arith.constant 0 : index
    %20 = vector.load %arg3[%c0_13, %c0_14] : memref<1x64xf32, #tpu.memory_space<vmem>>, vector<1x64xf32>
    %21 = vector.broadcast %20 : vector<1x64xf32> to vector<8x64xf32>
    %22 = arith.addf %19, %21 : vector<8x64xf32>
    %cst_15 = arith.constant 0.000000e+00 : f32
    %23 = vector.broadcast %cst_15 : f32 to vector<8x64xf32>
    %24 = arith.maximumf %22, %23 : vector<8x64xf32>
    %c0_16 = arith.constant 0 : index
    %c0_17 = arith.constant 0 : index
    %c0_18 = arith.constant 0 : index
    %25 = vector.load %arg4[%c0_16, %c0_17, %c0_18] : memref<1x8x64xf32, #tpu.memory_space<vmem>>, vector<1x8x64xf32>
    %26 = vector.shape_cast %25 : vector<1x8x64xf32> to vector<8x64xf32>
    %27 = vector.shape_cast %24 : vector<8x64xf32> to vector<1x8x64xf32>
    tpu.vector_store %arg4[%c0_16, %c0_17, %c0_18], %27 {strides = array<i32>} : memref<1x8x64xf32, #tpu.memory_space<vmem>>, vector<1x8x64xf32>,
    %28 = vector.shape_cast %24 : vector<8x64xf32> to vector<4x2x64xf32>
    %cst_19 = arith.constant dense<0xFF800000> : vector<4x64xf32>
    %29 = vector.multi_reduction <maximumf>, %28, %cst_19 [1] : vector<4x2x64xf32> to vector<4x64xf32>
    %c0_20 = arith.constant 0 : index
    %c0_21 = arith.constant 0 : index
    %c0_22 = arith.constant 0 : index
    %30 = vector.load %arg5[%c0_20, %c0_21, %c0_22] : memref<1x4x64xf32, #tpu.memory_space<vmem>>, vector<1x4x64xf32>
    %31 = vector.shape_cast %30 : vector<1x4x64xf32> to vector<4x64xf32>
    %32 = vector.shape_cast %29 : vector<4x64xf32> to vector<1x4x64xf32>
    tpu.vector_store %arg5[%c0_20, %c0_21, %c0_22], %32 {strides = array<i32>} : memref<1x4x64xf32, #tpu.memory_space<vmem>>, vector<1x4x64xf32>,
    return
  }
  func.func @transform_0(%arg0: i32) -> (i32, i32, i32) {
    %c0_i32 = arith.constant 0 : i32
    %c0_i32_0 = arith.constant 0 : i32
    %c0_i32_1 = arith.constant 0 : i32
    return %arg0, %c0_i32, %c0_i32_0 : i32, i32, i32
  }
  func.func @transform_1(%arg0: i32) -> (i32, i32, i32) {
    %c0_i32 = arith.constant 0 : i32
    %c0_i32_0 = arith.constant 0 : i32
    %c0_i32_1 = arith.constant 0 : i32
    %c0_i32_2 = arith.constant 0 : i32
    return %c0_i32, %c0_i32_0, %c0_i32_1 : i32, i32, i32
  }
  func.func @transform_2(%arg0: i32) -> (i32, i32) {
    %c0_i32 = arith.constant 0 : i32
    %c0_i32_0 = arith.constant 0 : i32
    %c0_i32_1 = arith.constant 0 : i32
    return %c0_i32, %c0_i32_0 : i32, i32
  }
  func.func @transform_3(%arg0: i32) -> (i32, i32, i32) {
    %c0_i32 = arith.constant 0 : i32
    %c0_i32_0 = arith.constant 0 : i32
    %c0_i32_1 = arith.constant 0 : i32
    return %arg0, %c0_i32, %c0_i32_0 : i32, i32, i32
  }
  func.func @transform_4(%arg0: i32) -> (i32, i32, i32) {
    %c0_i32 = arith.constant 0 : i32
    %c0_i32_0 = arith.constant 0 : i32
    %c0_i32_1 = arith.constant 0 : i32
    return %arg0, %c0_i32, %c0_i32_0 : i32, i32, i32
  }
}

module attributes {stable_mosaic.version = 11 : i64} {
  func.func @_conv_kernel(%arg0: i32, %arg1: memref<1x8x32xbf16, #tpu.memory_space<vmem>>, %arg2: memref<3x32x64xbf16, #tpu.memory_space<vmem>>, %arg3: memref<1x64xf32, #tpu.memory_space<vmem>>, %arg4: memref<1x8x64xf32, #tpu.memory_space<vmem>>) attributes {dimension_semantics = [#tpu.dimension_semantics<parallel>], iteration_bounds = array<i64: 2>, scalar_prefetch = 0 : i64, scratch_operands = 0 : i64, tpu.core_type = #tpu.core_type<tc>, window_params = [{transform_indices = @transform_0, window_bounds = array<i64: 1, 8, 32>}, {pipeline_mode = #tpu.pipeline_mode<synchronous>, transform_indices = @transform_1, window_bounds = array<i64: 3, 32, 64>}, {pipeline_mode = #tpu.pipeline_mode<synchronous>, transform_indices = @transform_2, window_bounds = array<i64: 1, 64>}, {transform_indices = @transform_3, window_bounds = array<i64: 1, 8, 64>}]} {
    %cst = arith.constant 0.000000e+00 : f32
    %0 = vector.broadcast %cst : f32 to vector<8x64xf32>
    %c0 = arith.constant 0 : index
    %c0_0 = arith.constant 0 : index
    %c0_1 = arith.constant 0 : index
    %1 = vector.load %arg1[%c0, %c0_0, %c0_1] : memref<1x8x32xbf16, #tpu.memory_space<vmem>>, vector<1x8x32xbf16>
    %2 = vector.shape_cast %1 : vector<1x8x32xbf16> to vector<8x32xbf16>
    %cst_2 = arith.constant 0.000000e+00 : bf16
    %3 = vector.broadcast %cst_2 : bf16 to vector<1x32xbf16>
    %4 = tpu.concatenate %3, %2, %3 in 0 : vector<1x32xbf16>, vector<8x32xbf16>, vector<1x32xbf16> -> vector<10x32xbf16>
    %5 = vector.extract_strided_slice %4 {offsets = [0, 0], sizes = [8, 32], strides = [1, 1]} : vector<10x32xbf16> to vector<8x32xbf16>
    %c0_3 = arith.constant 0 : index
    %c0_4 = arith.constant 0 : index
    %c0_5 = arith.constant 0 : index
    %6 = vector.load %arg2[%c0_3, %c0_4, %c0_5] : memref<3x32x64xbf16, #tpu.memory_space<vmem>>, vector<1x32x64xbf16>
    %7 = vector.shape_cast %6 : vector<1x32x64xbf16> to vector<32x64xbf16>
    %cst_6 = arith.constant dense<0.000000e+00> : vector<8x64xf32>
    %8 = tpu.matmul %5, %7, %cst_6 {dimension_numbers = #tpu.dot_dimension_numbers<[1], [0], [0], [1], [0, 0, 1, 1], [], []>} : vector<8x32xbf16>, vector<32x64xbf16>, vector<8x64xf32> -> vector<8x64xf32>
    %9 = arith.addf %0, %8 : vector<8x64xf32>
    %10 = vector.extract_strided_slice %4 {offsets = [1, 0], sizes = [8, 32], strides = [1, 1]} : vector<10x32xbf16> to vector<8x32xbf16>
    %c1 = arith.constant 1 : index
    %c0_7 = arith.constant 0 : index
    %c0_8 = arith.constant 0 : index
    %11 = vector.load %arg2[%c1, %c0_7, %c0_8] : memref<3x32x64xbf16, #tpu.memory_space<vmem>>, vector<1x32x64xbf16>
    %12 = vector.shape_cast %11 : vector<1x32x64xbf16> to vector<32x64xbf16>
    %cst_9 = arith.constant dense<0.000000e+00> : vector<8x64xf32>
    %13 = tpu.matmul %10, %12, %cst_9 {dimension_numbers = #tpu.dot_dimension_numbers<[1], [0], [0], [1], [0, 0, 1, 1], [], []>} : vector<8x32xbf16>, vector<32x64xbf16>, vector<8x64xf32> -> vector<8x64xf32>
    %14 = arith.addf %9, %13 : vector<8x64xf32>
    %15 = vector.extract_strided_slice %4 {offsets = [2, 0], sizes = [8, 32], strides = [1, 1]} : vector<10x32xbf16> to vector<8x32xbf16>
    %c2 = arith.constant 2 : index
    %c0_10 = arith.constant 0 : index
    %c0_11 = arith.constant 0 : index
    %16 = vector.load %arg2[%c2, %c0_10, %c0_11] : memref<3x32x64xbf16, #tpu.memory_space<vmem>>, vector<1x32x64xbf16>
    %17 = vector.shape_cast %16 : vector<1x32x64xbf16> to vector<32x64xbf16>
    %cst_12 = arith.constant dense<0.000000e+00> : vector<8x64xf32>
    %18 = tpu.matmul %15, %17, %cst_12 {dimension_numbers = #tpu.dot_dimension_numbers<[1], [0], [0], [1], [0, 0, 1, 1], [], []>} : vector<8x32xbf16>, vector<32x64xbf16>, vector<8x64xf32> -> vector<8x64xf32>
    %19 = arith.addf %14, %18 : vector<8x64xf32>
    %c0_13 = arith.constant 0 : index
    %c0_14 = arith.constant 0 : index
    %20 = vector.load %arg3[%c0_13, %c0_14] : memref<1x64xf32, #tpu.memory_space<vmem>>, vector<1x64xf32>
    %21 = vector.broadcast %20 : vector<1x64xf32> to vector<8x64xf32>
    %22 = arith.addf %19, %21 : vector<8x64xf32>
    %cst_15 = arith.constant 0.000000e+00 : f32
    %23 = vector.broadcast %cst_15 : f32 to vector<8x64xf32>
    %24 = arith.maximumf %22, %23 : vector<8x64xf32>
    %c0_16 = arith.constant 0 : index
    %c0_17 = arith.constant 0 : index
    %c0_18 = arith.constant 0 : index
    %25 = vector.load %arg4[%c0_16, %c0_17, %c0_18] : memref<1x8x64xf32, #tpu.memory_space<vmem>>, vector<1x8x64xf32>
    %26 = vector.shape_cast %25 : vector<1x8x64xf32> to vector<8x64xf32>
    %27 = vector.shape_cast %24 : vector<8x64xf32> to vector<1x8x64xf32>
    tpu.vector_store %arg4[%c0_16, %c0_17, %c0_18], %27 {strides = array<i32>} : memref<1x8x64xf32, #tpu.memory_space<vmem>>, vector<1x8x64xf32>,
    return
  }
  func.func @transform_0(%arg0: i32) -> (i32, i32, i32) {
    %c0_i32 = arith.constant 0 : i32
    %c0_i32_0 = arith.constant 0 : i32
    %c0_i32_1 = arith.constant 0 : i32
    return %arg0, %c0_i32, %c0_i32_0 : i32, i32, i32
  }
  func.func @transform_1(%arg0: i32) -> (i32, i32, i32) {
    %c0_i32 = arith.constant 0 : i32
    %c0_i32_0 = arith.constant 0 : i32
    %c0_i32_1 = arith.constant 0 : i32
    %c0_i32_2 = arith.constant 0 : i32
    return %c0_i32, %c0_i32_0, %c0_i32_1 : i32, i32, i32
  }
  func.func @transform_2(%arg0: i32) -> (i32, i32) {
    %c0_i32 = arith.constant 0 : i32
    %c0_i32_0 = arith.constant 0 : i32
    %c0_i32_1 = arith.constant 0 : i32
    return %c0_i32, %c0_i32_0 : i32, i32
  }
  func.func @transform_3(%arg0: i32) -> (i32, i32, i32) {
    %c0_i32 = arith.constant 0 : i32
    %c0_i32_0 = arith.constant 0 : i32
    %c0_i32_1 = arith.constant 0 : i32
    return %arg0, %c0_i32, %c0_i32_0 : i32, i32, i32
  }
}

module attributes {stable_mosaic.version = 11 : i64} {
  func.func @_qkv_kernel(%arg0: i32, %arg1: memref<8x64xbf16, #tpu.memory_space<vmem>>, %arg2: memref<64x192xbf16, #tpu.memory_space<vmem>>, %arg3: memref<1x192xf32, #tpu.memory_space<vmem>>, %arg4: memref<8x64xbf16, #tpu.memory_space<vmem>>, %arg5: memref<8x64xbf16, #tpu.memory_space<vmem>>, %arg6: memref<8x64xbf16, #tpu.memory_space<vmem>>) attributes {dimension_semantics = [#tpu.dimension_semantics<parallel>], iteration_bounds = array<i64: 1>, scalar_prefetch = 0 : i64, scratch_operands = 0 : i64, tpu.core_type = #tpu.core_type<tc>, window_params = [{transform_indices = @transform_0, window_bounds = array<i64: 8, 64>}, {pipeline_mode = #tpu.pipeline_mode<synchronous>, transform_indices = @transform_1, window_bounds = array<i64: 64, 192>}, {pipeline_mode = #tpu.pipeline_mode<synchronous>, transform_indices = @transform_2, window_bounds = array<i64: 1, 192>}, {transform_indices = @transform_3, window_bounds = array<i64: 8, 64>}, {transform_indices = @transform_4, window_bounds = array<i64: 8, 64>}, {transform_indices = @transform_5, window_bounds = array<i64: 8, 64>}]} {
    %c0 = arith.constant 0 : index
    %c0_0 = arith.constant 0 : index
    %0 = vector.load %arg1[%c0, %c0_0] : memref<8x64xbf16, #tpu.memory_space<vmem>>, vector<8x64xbf16>
    %c0_1 = arith.constant 0 : index
    %c0_2 = arith.constant 0 : index
    %1 = vector.load %arg2[%c0_1, %c0_2] : memref<64x192xbf16, #tpu.memory_space<vmem>>, vector<64x192xbf16>
    %cst = arith.constant dense<0.000000e+00> : vector<8x192xf32>
    %2 = tpu.matmul %0, %1, %cst {dimension_numbers = #tpu.dot_dimension_numbers<[1], [0], [0], [1], [0, 0, 1, 1], [], []>} : vector<8x64xbf16>, vector<64x192xbf16>, vector<8x192xf32> -> vector<8x192xf32>
    %c0_3 = arith.constant 0 : index
    %c0_4 = arith.constant 0 : index
    %3 = vector.load %arg3[%c0_3, %c0_4] : memref<1x192xf32, #tpu.memory_space<vmem>>, vector<1x192xf32>
    %4 = vector.broadcast %3 : vector<1x192xf32> to vector<8x192xf32>
    %5 = arith.addf %2, %4 : vector<8x192xf32>
    %6 = vector.extract_strided_slice %5 {offsets = [0, 0], sizes = [8, 64], strides = [1, 1]} : vector<8x192xf32> to vector<8x64xf32>
    %7 = arith.truncf %6 : vector<8x64xf32> to vector<8x64xbf16>
    %c0_5 = arith.constant 0 : index
    %c0_6 = arith.constant 0 : index
    %8 = vector.load %arg4[%c0_5, %c0_6] : memref<8x64xbf16, #tpu.memory_space<vmem>>, vector<8x64xbf16>
    tpu.vector_store %arg4[%c0_5, %c0_6], %7 {strides = array<i32>} : memref<8x64xbf16, #tpu.memory_space<vmem>>, vector<8x64xbf16>,
    %9 = vector.extract_strided_slice %5 {offsets = [0, 64], sizes = [8, 64], strides = [1, 1]} : vector<8x192xf32> to vector<8x64xf32>
    %10 = arith.truncf %9 : vector<8x64xf32> to vector<8x64xbf16>
    %c0_7 = arith.constant 0 : index
    %c0_8 = arith.constant 0 : index
    %11 = vector.load %arg5[%c0_7, %c0_8] : memref<8x64xbf16, #tpu.memory_space<vmem>>, vector<8x64xbf16>
    tpu.vector_store %arg5[%c0_7, %c0_8], %10 {strides = array<i32>} : memref<8x64xbf16, #tpu.memory_space<vmem>>, vector<8x64xbf16>,
    %12 = vector.extract_strided_slice %5 {offsets = [0, 128], sizes = [8, 64], strides = [1, 1]} : vector<8x192xf32> to vector<8x64xf32>
    %13 = arith.truncf %12 : vector<8x64xf32> to vector<8x64xbf16>
    %c0_9 = arith.constant 0 : index
    %c0_10 = arith.constant 0 : index
    %14 = vector.load %arg6[%c0_9, %c0_10] : memref<8x64xbf16, #tpu.memory_space<vmem>>, vector<8x64xbf16>
    tpu.vector_store %arg6[%c0_9, %c0_10], %13 {strides = array<i32>} : memref<8x64xbf16, #tpu.memory_space<vmem>>, vector<8x64xbf16>,
    return
  }
  func.func @transform_0(%arg0: i32) -> (i32, i32) {
    %c0_i32 = arith.constant 0 : i32
    %c0_i32_0 = arith.constant 0 : i32
    return %arg0, %c0_i32 : i32, i32
  }
  func.func @transform_1(%arg0: i32) -> (i32, i32) {
    %c0_i32 = arith.constant 0 : i32
    %c0_i32_0 = arith.constant 0 : i32
    %c0_i32_1 = arith.constant 0 : i32
    return %c0_i32, %c0_i32_0 : i32, i32
  }
  func.func @transform_2(%arg0: i32) -> (i32, i32) {
    %c0_i32 = arith.constant 0 : i32
    %c0_i32_0 = arith.constant 0 : i32
    %c0_i32_1 = arith.constant 0 : i32
    return %c0_i32, %c0_i32_0 : i32, i32
  }
  func.func @transform_3(%arg0: i32) -> (i32, i32) {
    %c0_i32 = arith.constant 0 : i32
    %c0_i32_0 = arith.constant 0 : i32
    return %arg0, %c0_i32 : i32, i32
  }
  func.func @transform_4(%arg0: i32) -> (i32, i32) {
    %c0_i32 = arith.constant 0 : i32
    %c0_i32_0 = arith.constant 0 : i32
    return %arg0, %c0_i32 : i32, i32
  }
  func.func @transform_5(%arg0: i32) -> (i32, i32) {
    %c0_i32 = arith.constant 0 : i32
    %c0_i32_0 = arith.constant 0 : i32
    return %arg0, %c0_i32 : i32, i32
  }
}

module attributes {stable_mosaic.version = 11 : i64} {
  func.func @_attn_kernel(%arg0: i32, %arg1: i32, %arg2: memref<1x4x64xbf16, #tpu.memory_space<vmem>>, %arg3: memref<1x4x64xbf16, #tpu.memory_space<vmem>>, %arg4: memref<1x4x64xbf16, #tpu.memory_space<vmem>>, %arg5: memref<1x4x64xbf16, #tpu.memory_space<vmem>>) attributes {dimension_semantics = [#tpu.dimension_semantics<parallel>, #tpu.dimension_semantics<parallel>], iteration_bounds = array<i64: 2, 1>, scalar_prefetch = 0 : i64, scratch_operands = 0 : i64, tpu.core_type = #tpu.core_type<tc>, window_params = [{transform_indices = @transform_0, window_bounds = array<i64: 1, 4, 64>}, {transform_indices = @transform_1, window_bounds = array<i64: 1, 4, 64>}, {transform_indices = @transform_2, window_bounds = array<i64: 1, 4, 64>}, {transform_indices = @transform_3, window_bounds = array<i64: 1, 4, 64>}]} {
    %c0 = arith.constant 0 : index
    %c0_0 = arith.constant 0 : index
    %c0_1 = arith.constant 0 : index
    %0 = vector.load %arg2[%c0, %c0_0, %c0_1] : memref<1x4x64xbf16, #tpu.memory_space<vmem>>, vector<1x4x64xbf16>
    %1 = vector.shape_cast %0 : vector<1x4x64xbf16> to vector<4x64xbf16>
    %2 = arith.extf %1 : vector<4x64xbf16> to vector<4x64xf32>
    %cst = arith.constant 2.500000e-01 : f32
    %3 = vector.broadcast %cst : f32 to vector<4x64xf32>
    %4 = arith.mulf %2, %3 : vector<4x64xf32>
    %5 = arith.truncf %4 : vector<4x64xf32> to vector<4x64xbf16>
    %c0_2 = arith.constant 0 : index
    %c0_3 = arith.constant 0 : index
    %c0_4 = arith.constant 0 : index
    %6 = vector.load %arg3[%c0_2, %c0_3, %c0_4] : memref<1x4x64xbf16, #tpu.memory_space<vmem>>, vector<1x4x64xbf16>
    %7 = vector.shape_cast %6 : vector<1x4x64xbf16> to vector<4x64xbf16>
    %c0_5 = arith.constant 0 : index
    %c0_6 = arith.constant 0 : index
    %c0_7 = arith.constant 0 : index
    %8 = vector.load %arg4[%c0_5, %c0_6, %c0_7] : memref<1x4x64xbf16, #tpu.memory_space<vmem>>, vector<1x4x64xbf16>
    %9 = vector.shape_cast %8 : vector<1x4x64xbf16> to vector<4x64xbf16>
    %10 = vector.extract_strided_slice %5 {offsets = [0, 0], sizes = [4, 16], strides = [1, 1]} : vector<4x64xbf16> to vector<4x16xbf16>
    %11 = vector.extract_strided_slice %7 {offsets = [0, 0], sizes = [4, 16], strides = [1, 1]} : vector<4x64xbf16> to vector<4x16xbf16>
    %cst_8 = arith.constant dense<0.000000e+00> : vector<4x4xf32>
    %12 = tpu.matmul %10, %11, %cst_8 {dimension_numbers = #tpu.dot_dimension_numbers<[1], [1], [0], [0], [0, 0, 1, 0], [], []>} : vector<4x16xbf16>, vector<4x16xbf16>, vector<4x4xf32> -> vector<4x4xf32>
    %cst_9 = arith.constant dense<0xFF800000> : vector<4xf32>
    %13 = vector.multi_reduction <maximumf>, %12, %cst_9 [1] : vector<4x4xf32> to vector<4xf32>
    %14 = vector.shape_cast %13 : vector<4xf32> to vector<4x1xf32>
    %15 = vector.broadcast %14 : vector<4x1xf32> to vector<4x4xf32>
    %16 = arith.subf %12, %15 : vector<4x4xf32>
    %17 = math.exp %16 : vector<4x4xf32>
    %cst_10 = arith.constant dense<0.000000e+00> : vector<4xf32>
    %18 = vector.multi_reduction <add>, %17, %cst_10 [1] : vector<4x4xf32> to vector<4xf32>
    %19 = vector.shape_cast %18 : vector<4xf32> to vector<4x1xf32>
    %20 = arith.truncf %17 : vector<4x4xf32> to vector<4x4xbf16>
    %21 = vector.extract_strided_slice %9 {offsets = [0, 0], sizes = [4, 16], strides = [1, 1]} : vector<4x64xbf16> to vector<4x16xbf16>
    %cst_11 = arith.constant dense<0.000000e+00> : vector<4x16xf32>
    %22 = tpu.matmul %20, %21, %cst_11 {dimension_numbers = #tpu.dot_dimension_numbers<[1], [0], [0], [1], [0, 0, 1, 1], [], []>} : vector<4x4xbf16>, vector<4x16xbf16>, vector<4x16xf32> -> vector<4x16xf32>
    %23 = tpu.reciprocal %19 {approx = true} : vector<4x1xf32> -> vector<4x1xf32>
    %24 = vector.broadcast %23 : vector<4x1xf32> to vector<4x16xf32>
    %25 = arith.mulf %22, %24 : vector<4x16xf32>
    %26 = vector.extract_strided_slice %5 {offsets = [0, 16], sizes = [4, 16], strides = [1, 1]} : vector<4x64xbf16> to vector<4x16xbf16>
    %27 = vector.extract_strided_slice %7 {offsets = [0, 16], sizes = [4, 16], strides = [1, 1]} : vector<4x64xbf16> to vector<4x16xbf16>
    %cst_12 = arith.constant dense<0.000000e+00> : vector<4x4xf32>
    %28 = tpu.matmul %26, %27, %cst_12 {dimension_numbers = #tpu.dot_dimension_numbers<[1], [1], [0], [0], [0, 0, 1, 0], [], []>} : vector<4x16xbf16>, vector<4x16xbf16>, vector<4x4xf32> -> vector<4x4xf32>
    %cst_13 = arith.constant dense<0xFF800000> : vector<4xf32>
    %29 = vector.multi_reduction <maximumf>, %28, %cst_13 [1] : vector<4x4xf32> to vector<4xf32>
    %30 = vector.shape_cast %29 : vector<4xf32> to vector<4x1xf32>
    %31 = vector.broadcast %30 : vector<4x1xf32> to vector<4x4xf32>
    %32 = arith.subf %28, %31 : vector<4x4xf32>
    %33 = math.exp %32 : vector<4x4xf32>
    %cst_14 = arith.constant dense<0.000000e+00> : vector<4xf32>
    %34 = vector.multi_reduction <add>, %33, %cst_14 [1] : vector<4x4xf32> to vector<4xf32>
    %35 = vector.shape_cast %34 : vector<4xf32> to vector<4x1xf32>
    %36 = arith.truncf %33 : vector<4x4xf32> to vector<4x4xbf16>
    %37 = vector.extract_strided_slice %9 {offsets = [0, 16], sizes = [4, 16], strides = [1, 1]} : vector<4x64xbf16> to vector<4x16xbf16>
    %cst_15 = arith.constant dense<0.000000e+00> : vector<4x16xf32>
    %38 = tpu.matmul %36, %37, %cst_15 {dimension_numbers = #tpu.dot_dimension_numbers<[1], [0], [0], [1], [0, 0, 1, 1], [], []>} : vector<4x4xbf16>, vector<4x16xbf16>, vector<4x16xf32> -> vector<4x16xf32>
    %39 = tpu.reciprocal %35 {approx = true} : vector<4x1xf32> -> vector<4x1xf32>
    %40 = vector.broadcast %39 : vector<4x1xf32> to vector<4x16xf32>
    %41 = arith.mulf %38, %40 : vector<4x16xf32>
    %42 = vector.extract_strided_slice %5 {offsets = [0, 32], sizes = [4, 16], strides = [1, 1]} : vector<4x64xbf16> to vector<4x16xbf16>
    %43 = vector.extract_strided_slice %7 {offsets = [0, 32], sizes = [4, 16], strides = [1, 1]} : vector<4x64xbf16> to vector<4x16xbf16>
    %cst_16 = arith.constant dense<0.000000e+00> : vector<4x4xf32>
    %44 = tpu.matmul %42, %43, %cst_16 {dimension_numbers = #tpu.dot_dimension_numbers<[1], [1], [0], [0], [0, 0, 1, 0], [], []>} : vector<4x16xbf16>, vector<4x16xbf16>, vector<4x4xf32> -> vector<4x4xf32>
    %cst_17 = arith.constant dense<0xFF800000> : vector<4xf32>
    %45 = vector.multi_reduction <maximumf>, %44, %cst_17 [1] : vector<4x4xf32> to vector<4xf32>
    %46 = vector.shape_cast %45 : vector<4xf32> to vector<4x1xf32>
    %47 = vector.broadcast %46 : vector<4x1xf32> to vector<4x4xf32>
    %48 = arith.subf %44, %47 : vector<4x4xf32>
    %49 = math.exp %48 : vector<4x4xf32>
    %cst_18 = arith.constant dense<0.000000e+00> : vector<4xf32>
    %50 = vector.multi_reduction <add>, %49, %cst_18 [1] : vector<4x4xf32> to vector<4xf32>
    %51 = vector.shape_cast %50 : vector<4xf32> to vector<4x1xf32>
    %52 = arith.truncf %49 : vector<4x4xf32> to vector<4x4xbf16>
    %53 = vector.extract_strided_slice %9 {offsets = [0, 32], sizes = [4, 16], strides = [1, 1]} : vector<4x64xbf16> to vector<4x16xbf16>
    %cst_19 = arith.constant dense<0.000000e+00> : vector<4x16xf32>
    %54 = tpu.matmul %52, %53, %cst_19 {dimension_numbers = #tpu.dot_dimension_numbers<[1], [0], [0], [1], [0, 0, 1, 1], [], []>} : vector<4x4xbf16>, vector<4x16xbf16>, vector<4x16xf32> -> vector<4x16xf32>
    %55 = tpu.reciprocal %51 {approx = true} : vector<4x1xf32> -> vector<4x1xf32>
    %56 = vector.broadcast %55 : vector<4x1xf32> to vector<4x16xf32>
    %57 = arith.mulf %54, %56 : vector<4x16xf32>
    %58 = vector.extract_strided_slice %5 {offsets = [0, 48], sizes = [4, 16], strides = [1, 1]} : vector<4x64xbf16> to vector<4x16xbf16>
    %59 = vector.extract_strided_slice %7 {offsets = [0, 48], sizes = [4, 16], strides = [1, 1]} : vector<4x64xbf16> to vector<4x16xbf16>
    %cst_20 = arith.constant dense<0.000000e+00> : vector<4x4xf32>
    %60 = tpu.matmul %58, %59, %cst_20 {dimension_numbers = #tpu.dot_dimension_numbers<[1], [1], [0], [0], [0, 0, 1, 0], [], []>} : vector<4x16xbf16>, vector<4x16xbf16>, vector<4x4xf32> -> vector<4x4xf32>
    %cst_21 = arith.constant dense<0xFF800000> : vector<4xf32>
    %61 = vector.multi_reduction <maximumf>, %60, %cst_21 [1] : vector<4x4xf32> to vector<4xf32>
    %62 = vector.shape_cast %61 : vector<4xf32> to vector<4x1xf32>
    %63 = vector.broadcast %62 : vector<4x1xf32> to vector<4x4xf32>
    %64 = arith.subf %60, %63 : vector<4x4xf32>
    %65 = math.exp %64 : vector<4x4xf32>
    %cst_22 = arith.constant dense<0.000000e+00> : vector<4xf32>
    %66 = vector.multi_reduction <add>, %65, %cst_22 [1] : vector<4x4xf32> to vector<4xf32>
    %67 = vector.shape_cast %66 : vector<4xf32> to vector<4x1xf32>
    %68 = arith.truncf %65 : vector<4x4xf32> to vector<4x4xbf16>
    %69 = vector.extract_strided_slice %9 {offsets = [0, 48], sizes = [4, 16], strides = [1, 1]} : vector<4x64xbf16> to vector<4x16xbf16>
    %cst_23 = arith.constant dense<0.000000e+00> : vector<4x16xf32>
    %70 = tpu.matmul %68, %69, %cst_23 {dimension_numbers = #tpu.dot_dimension_numbers<[1], [0], [0], [1], [0, 0, 1, 1], [], []>} : vector<4x4xbf16>, vector<4x16xbf16>, vector<4x16xf32> -> vector<4x16xf32>
    %71 = tpu.reciprocal %67 {approx = true} : vector<4x1xf32> -> vector<4x1xf32>
    %72 = vector.broadcast %71 : vector<4x1xf32> to vector<4x16xf32>
    %73 = arith.mulf %70, %72 : vector<4x16xf32>
    %74 = tpu.concatenate %25, %41, %57, %73 in 1 : vector<4x16xf32>, vector<4x16xf32>, vector<4x16xf32>, vector<4x16xf32> -> vector<4x64xf32>
    %75 = arith.truncf %74 : vector<4x64xf32> to vector<4x64xbf16>
    %c0_24 = arith.constant 0 : index
    %c0_25 = arith.constant 0 : index
    %c0_26 = arith.constant 0 : index
    %76 = vector.load %arg5[%c0_24, %c0_25, %c0_26] : memref<1x4x64xbf16, #tpu.memory_space<vmem>>, vector<1x4x64xbf16>
    %77 = vector.shape_cast %76 : vector<1x4x64xbf16> to vector<4x64xbf16>
    %78 = vector.shape_cast %75 : vector<4x64xbf16> to vector<1x4x64xbf16>
    tpu.vector_store %arg5[%c0_24, %c0_25, %c0_26], %78 {strides = array<i32>} : memref<1x4x64xbf16, #tpu.memory_space<vmem>>, vector<1x4x64xbf16>,
    return
  }
  func.func @transform_0(%arg0: i32, %arg1: i32) -> (i32, i32, i32) {
    %c0_i32 = arith.constant 0 : i32
    %c0_i32_0 = arith.constant 0 : i32
    return %arg0, %arg1, %c0_i32 : i32, i32, i32
  }
  func.func @transform_1(%arg0: i32, %arg1: i32) -> (i32, i32, i32) {
    %c0_i32 = arith.constant 0 : i32
    %c0_i32_0 = arith.constant 0 : i32
    %c0_i32_1 = arith.constant 0 : i32
    return %arg0, %c0_i32, %c0_i32_0 : i32, i32, i32
  }
  func.func @transform_2(%arg0: i32, %arg1: i32) -> (i32, i32, i32) {
    %c0_i32 = arith.constant 0 : i32
    %c0_i32_0 = arith.constant 0 : i32
    %c0_i32_1 = arith.constant 0 : i32
    return %arg0, %c0_i32, %c0_i32_0 : i32, i32, i32
  }
  func.func @transform_3(%arg0: i32, %arg1: i32) -> (i32, i32, i32) {
    %c0_i32 = arith.constant 0 : i32
    %c0_i32_0 = arith.constant 0 : i32
    return %arg0, %arg1, %c0_i32 : i32, i32, i32
  }
}

module attributes {stable_mosaic.version = 11 : i64} {
  func.func @_proj_add_ln_kernel(%arg0: i32, %arg1: memref<8x64xbf16, #tpu.memory_space<vmem>>, %arg2: memref<8x64xf32, #tpu.memory_space<vmem>>, %arg3: memref<64x64xbf16, #tpu.memory_space<vmem>>, %arg4: memref<1x64xf32, #tpu.memory_space<vmem>>, %arg5: memref<1x64xf32, #tpu.memory_space<vmem>>, %arg6: memref<1x64xf32, #tpu.memory_space<vmem>>, %arg7: memref<8x64xf32, #tpu.memory_space<vmem>>) attributes {dimension_semantics = [#tpu.dimension_semantics<parallel>], iteration_bounds = array<i64: 1>, scalar_prefetch = 0 : i64, scratch_operands = 0 : i64, tpu.core_type = #tpu.core_type<tc>, window_params = [{transform_indices = @transform_0, window_bounds = array<i64: 8, 64>}, {transform_indices = @transform_1, window_bounds = array<i64: 8, 64>}, {pipeline_mode = #tpu.pipeline_mode<synchronous>, transform_indices = @transform_2, window_bounds = array<i64: 64, 64>}, {pipeline_mode = #tpu.pipeline_mode<synchronous>, transform_indices = @transform_3, window_bounds = array<i64: 1, 64>}, {pipeline_mode = #tpu.pipeline_mode<synchronous>, transform_indices = @transform_4, window_bounds = array<i64: 1, 64>}, {pipeline_mode = #tpu.pipeline_mode<synchronous>, transform_indices = @transform_5, window_bounds = array<i64: 1, 64>}, {transform_indices = @transform_6, window_bounds = array<i64: 8, 64>}]} {
    %c0 = arith.constant 0 : index
    %c0_0 = arith.constant 0 : index
    %0 = vector.load %arg1[%c0, %c0_0] : memref<8x64xbf16, #tpu.memory_space<vmem>>, vector<8x64xbf16>
    %c0_1 = arith.constant 0 : index
    %c0_2 = arith.constant 0 : index
    %1 = vector.load %arg3[%c0_1, %c0_2] : memref<64x64xbf16, #tpu.memory_space<vmem>>, vector<64x64xbf16>
    %cst = arith.constant dense<0.000000e+00> : vector<8x64xf32>
    %2 = tpu.matmul %0, %1, %cst {dimension_numbers = #tpu.dot_dimension_numbers<[1], [0], [0], [1], [0, 0, 1, 1], [], []>} : vector<8x64xbf16>, vector<64x64xbf16>, vector<8x64xf32> -> vector<8x64xf32>
    %c0_3 = arith.constant 0 : index
    %c0_4 = arith.constant 0 : index
    %3 = vector.load %arg4[%c0_3, %c0_4] : memref<1x64xf32, #tpu.memory_space<vmem>>, vector<1x64xf32>
    %4 = vector.broadcast %3 : vector<1x64xf32> to vector<8x64xf32>
    %5 = arith.addf %2, %4 : vector<8x64xf32>
    %c0_5 = arith.constant 0 : index
    %c0_6 = arith.constant 0 : index
    %6 = vector.load %arg2[%c0_5, %c0_6] : memref<8x64xf32, #tpu.memory_space<vmem>>, vector<8x64xf32>
    %7 = arith.addf %5, %6 : vector<8x64xf32>
    %cst_7 = arith.constant dense<0.000000e+00> : vector<8xf32>
    %8 = vector.multi_reduction <add>, %7, %cst_7 [1] : vector<8x64xf32> to vector<8xf32>
    %9 = vector.shape_cast %8 : vector<8xf32> to vector<8x1xf32>
    %cst_8 = arith.constant 6.400000e+01 : f32
    %10 = vector.broadcast %cst_8 : f32 to vector<8x1xf32>
    %11 = arith.divf %9, %10 : vector<8x1xf32>
    %12 = vector.broadcast %11 : vector<8x1xf32> to vector<8x64xf32>
    %13 = arith.subf %7, %12 : vector<8x64xf32>
    %14 = arith.mulf %13, %13 : vector<8x64xf32>
    %cst_9 = arith.constant dense<0.000000e+00> : vector<8xf32>
    %15 = vector.multi_reduction <add>, %14, %cst_9 [1] : vector<8x64xf32> to vector<8xf32>
    %16 = vector.shape_cast %15 : vector<8xf32> to vector<8x1xf32>
    %cst_10 = arith.constant 6.400000e+01 : f32
    %17 = vector.broadcast %cst_10 : f32 to vector<8x1xf32>
    %18 = arith.divf %16, %17 : vector<8x1xf32>
    %19 = vector.broadcast %11 : vector<8x1xf32> to vector<8x64xf32>
    %20 = arith.subf %7, %19 : vector<8x64xf32>
    %cst_11 = arith.constant 9.99999974E-6 : f32
    %21 = vector.broadcast %cst_11 : f32 to vector<8x1xf32>
    %22 = arith.addf %18, %21 : vector<8x1xf32>
    %23 = math.rsqrt %22 : vector<8x1xf32>
    %24 = vector.broadcast %23 : vector<8x1xf32> to vector<8x64xf32>
    %25 = arith.mulf %20, %24 : vector<8x64xf32>
    %c0_12 = arith.constant 0 : index
    %c0_13 = arith.constant 0 : index
    %26 = vector.load %arg5[%c0_12, %c0_13] : memref<1x64xf32, #tpu.memory_space<vmem>>, vector<1x64xf32>
    %27 = vector.broadcast %26 : vector<1x64xf32> to vector<8x64xf32>
    %28 = arith.mulf %25, %27 : vector<8x64xf32>
    %c0_14 = arith.constant 0 : index
    %c0_15 = arith.constant 0 : index
    %29 = vector.load %arg6[%c0_14, %c0_15] : memref<1x64xf32, #tpu.memory_space<vmem>>, vector<1x64xf32>
    %30 = vector.broadcast %29 : vector<1x64xf32> to vector<8x64xf32>
    %31 = arith.addf %28, %30 : vector<8x64xf32>
    %c0_16 = arith.constant 0 : index
    %c0_17 = arith.constant 0 : index
    %32 = vector.load %arg7[%c0_16, %c0_17] : memref<8x64xf32, #tpu.memory_space<vmem>>, vector<8x64xf32>
    tpu.vector_store %arg7[%c0_16, %c0_17], %31 {strides = array<i32>} : memref<8x64xf32, #tpu.memory_space<vmem>>, vector<8x64xf32>,
    return
  }
  func.func @transform_0(%arg0: i32) -> (i32, i32) {
    %c0_i32 = arith.constant 0 : i32
    %c0_i32_0 = arith.constant 0 : i32
    return %arg0, %c0_i32 : i32, i32
  }
  func.func @transform_1(%arg0: i32) -> (i32, i32) {
    %c0_i32 = arith.constant 0 : i32
    %c0_i32_0 = arith.constant 0 : i32
    return %arg0, %c0_i32 : i32, i32
  }
  func.func @transform_2(%arg0: i32) -> (i32, i32) {
    %c0_i32 = arith.constant 0 : i32
    %c0_i32_0 = arith.constant 0 : i32
    %c0_i32_1 = arith.constant 0 : i32
    return %c0_i32, %c0_i32_0 : i32, i32
  }
  func.func @transform_3(%arg0: i32) -> (i32, i32) {
    %c0_i32 = arith.constant 0 : i32
    %c0_i32_0 = arith.constant 0 : i32
    %c0_i32_1 = arith.constant 0 : i32
    return %c0_i32, %c0_i32_0 : i32, i32
  }
  func.func @transform_4(%arg0: i32) -> (i32, i32) {
    %c0_i32 = arith.constant 0 : i32
    %c0_i32_0 = arith.constant 0 : i32
    %c0_i32_1 = arith.constant 0 : i32
    return %c0_i32, %c0_i32_0 : i32, i32
  }
  func.func @transform_5(%arg0: i32) -> (i32, i32) {
    %c0_i32 = arith.constant 0 : i32
    %c0_i32_0 = arith.constant 0 : i32
    %c0_i32_1 = arith.constant 0 : i32
    return %c0_i32, %c0_i32_0 : i32, i32
  }
  func.func @transform_6(%arg0: i32) -> (i32, i32) {
    %c0_i32 = arith.constant 0 : i32
    %c0_i32_0 = arith.constant 0 : i32
    return %arg0, %c0_i32 : i32, i32
  }
}

module attributes {stable_mosaic.version = 11 : i64} {
  func.func @_ff_add_ln_kernel(%arg0: i32, %arg1: memref<8x64xf32, #tpu.memory_space<vmem>>, %arg2: memref<64x256xbf16, #tpu.memory_space<vmem>>, %arg3: memref<1x256xf32, #tpu.memory_space<vmem>>, %arg4: memref<256x64xbf16, #tpu.memory_space<vmem>>, %arg5: memref<1x64xf32, #tpu.memory_space<vmem>>, %arg6: memref<1x64xf32, #tpu.memory_space<vmem>>, %arg7: memref<1x64xf32, #tpu.memory_space<vmem>>, %arg8: memref<8x64xf32, #tpu.memory_space<vmem>>) attributes {dimension_semantics = [#tpu.dimension_semantics<parallel>], iteration_bounds = array<i64: 1>, scalar_prefetch = 0 : i64, scratch_operands = 0 : i64, tpu.core_type = #tpu.core_type<tc>, window_params = [{transform_indices = @transform_0, window_bounds = array<i64: 8, 64>}, {pipeline_mode = #tpu.pipeline_mode<synchronous>, transform_indices = @transform_1, window_bounds = array<i64: 64, 256>}, {pipeline_mode = #tpu.pipeline_mode<synchronous>, transform_indices = @transform_2, window_bounds = array<i64: 1, 256>}, {pipeline_mode = #tpu.pipeline_mode<synchronous>, transform_indices = @transform_3, window_bounds = array<i64: 256, 64>}, {pipeline_mode = #tpu.pipeline_mode<synchronous>, transform_indices = @transform_4, window_bounds = array<i64: 1, 64>}, {pipeline_mode = #tpu.pipeline_mode<synchronous>, transform_indices = @transform_5, window_bounds = array<i64: 1, 64>}, {pipeline_mode = #tpu.pipeline_mode<synchronous>, transform_indices = @transform_6, window_bounds = array<i64: 1, 64>}, {transform_indices = @transform_7, window_bounds = array<i64: 8, 64>}]} {
    %c0 = arith.constant 0 : index
    %c0_0 = arith.constant 0 : index
    %0 = vector.load %arg1[%c0, %c0_0] : memref<8x64xf32, #tpu.memory_space<vmem>>, vector<8x64xf32>
    %1 = arith.truncf %0 : vector<8x64xf32> to vector<8x64xbf16>
    %c0_1 = arith.constant 0 : index
    %c0_2 = arith.constant 0 : index
    %2 = vector.load %arg2[%c0_1, %c0_2] : memref<64x256xbf16, #tpu.memory_space<vmem>>, vector<64x256xbf16>
    %cst = arith.constant dense<0.000000e+00> : vector<8x256xf32>
    %3 = tpu.matmul %1, %2, %cst {dimension_numbers = #tpu.dot_dimension_numbers<[1], [0], [0], [1], [0, 0, 1, 1], [], []>} : vector<8x64xbf16>, vector<64x256xbf16>, vector<8x256xf32> -> vector<8x256xf32>
    %c0_3 = arith.constant 0 : index
    %c0_4 = arith.constant 0 : index
    %4 = vector.load %arg3[%c0_3, %c0_4] : memref<1x256xf32, #tpu.memory_space<vmem>>, vector<1x256xf32>
    %5 = vector.broadcast %4 : vector<1x256xf32> to vector<8x256xf32>
    %6 = arith.addf %3, %5 : vector<8x256xf32>
    %cst_5 = arith.constant 0.000000e+00 : f32
    %7 = vector.broadcast %cst_5 : f32 to vector<8x256xf32>
    %8 = arith.maximumf %6, %7 : vector<8x256xf32>
    %9 = arith.truncf %8 : vector<8x256xf32> to vector<8x256xbf16>
    %c0_6 = arith.constant 0 : index
    %c0_7 = arith.constant 0 : index
    %10 = vector.load %arg4[%c0_6, %c0_7] : memref<256x64xbf16, #tpu.memory_space<vmem>>, vector<256x64xbf16>
    %cst_8 = arith.constant dense<0.000000e+00> : vector<8x64xf32>
    %11 = tpu.matmul %9, %10, %cst_8 {dimension_numbers = #tpu.dot_dimension_numbers<[1], [0], [0], [1], [0, 0, 1, 1], [], []>} : vector<8x256xbf16>, vector<256x64xbf16>, vector<8x64xf32> -> vector<8x64xf32>
    %c0_9 = arith.constant 0 : index
    %c0_10 = arith.constant 0 : index
    %12 = vector.load %arg5[%c0_9, %c0_10] : memref<1x64xf32, #tpu.memory_space<vmem>>, vector<1x64xf32>
    %13 = vector.broadcast %12 : vector<1x64xf32> to vector<8x64xf32>
    %14 = arith.addf %11, %13 : vector<8x64xf32>
    %15 = arith.addf %14, %0 : vector<8x64xf32>
    %cst_11 = arith.constant dense<0.000000e+00> : vector<8xf32>
    %16 = vector.multi_reduction <add>, %15, %cst_11 [1] : vector<8x64xf32> to vector<8xf32>
    %17 = vector.shape_cast %16 : vector<8xf32> to vector<8x1xf32>
    %cst_12 = arith.constant 6.400000e+01 : f32
    %18 = vector.broadcast %cst_12 : f32 to vector<8x1xf32>
    %19 = arith.divf %17, %18 : vector<8x1xf32>
    %20 = vector.broadcast %19 : vector<8x1xf32> to vector<8x64xf32>
    %21 = arith.subf %15, %20 : vector<8x64xf32>
    %22 = arith.mulf %21, %21 : vector<8x64xf32>
    %cst_13 = arith.constant dense<0.000000e+00> : vector<8xf32>
    %23 = vector.multi_reduction <add>, %22, %cst_13 [1] : vector<8x64xf32> to vector<8xf32>
    %24 = vector.shape_cast %23 : vector<8xf32> to vector<8x1xf32>
    %cst_14 = arith.constant 6.400000e+01 : f32
    %25 = vector.broadcast %cst_14 : f32 to vector<8x1xf32>
    %26 = arith.divf %24, %25 : vector<8x1xf32>
    %27 = vector.broadcast %19 : vector<8x1xf32> to vector<8x64xf32>
    %28 = arith.subf %15, %27 : vector<8x64xf32>
    %cst_15 = arith.constant 9.99999974E-6 : f32
    %29 = vector.broadcast %cst_15 : f32 to vector<8x1xf32>
    %30 = arith.addf %26, %29 : vector<8x1xf32>
    %31 = math.rsqrt %30 : vector<8x1xf32>
    %32 = vector.broadcast %31 : vector<8x1xf32> to vector<8x64xf32>
    %33 = arith.mulf %28, %32 : vector<8x64xf32>
    %c0_16 = arith.constant 0 : index
    %c0_17 = arith.constant 0 : index
    %34 = vector.load %arg6[%c0_16, %c0_17] : memref<1x64xf32, #tpu.memory_space<vmem>>, vector<1x64xf32>
    %35 = vector.broadcast %34 : vector<1x64xf32> to vector<8x64xf32>
    %36 = arith.mulf %33, %35 : vector<8x64xf32>
    %c0_18 = arith.constant 0 : index
    %c0_19 = arith.constant 0 : index
    %37 = vector.load %arg7[%c0_18, %c0_19] : memref<1x64xf32, #tpu.memory_space<vmem>>, vector<1x64xf32>
    %38 = vector.broadcast %37 : vector<1x64xf32> to vector<8x64xf32>
    %39 = arith.addf %36, %38 : vector<8x64xf32>
    %c0_20 = arith.constant 0 : index
    %c0_21 = arith.constant 0 : index
    %40 = vector.load %arg8[%c0_20, %c0_21] : memref<8x64xf32, #tpu.memory_space<vmem>>, vector<8x64xf32>
    tpu.vector_store %arg8[%c0_20, %c0_21], %39 {strides = array<i32>} : memref<8x64xf32, #tpu.memory_space<vmem>>, vector<8x64xf32>,
    return
  }
  func.func @transform_0(%arg0: i32) -> (i32, i32) {
    %c0_i32 = arith.constant 0 : i32
    %c0_i32_0 = arith.constant 0 : i32
    return %arg0, %c0_i32 : i32, i32
  }
  func.func @transform_1(%arg0: i32) -> (i32, i32) {
    %c0_i32 = arith.constant 0 : i32
    %c0_i32_0 = arith.constant 0 : i32
    %c0_i32_1 = arith.constant 0 : i32
    return %c0_i32, %c0_i32_0 : i32, i32
  }
  func.func @transform_2(%arg0: i32) -> (i32, i32) {
    %c0_i32 = arith.constant 0 : i32
    %c0_i32_0 = arith.constant 0 : i32
    %c0_i32_1 = arith.constant 0 : i32
    return %c0_i32, %c0_i32_0 : i32, i32
  }
  func.func @transform_3(%arg0: i32) -> (i32, i32) {
    %c0_i32 = arith.constant 0 : i32
    %c0_i32_0 = arith.constant 0 : i32
    %c0_i32_1 = arith.constant 0 : i32
    return %c0_i32, %c0_i32_0 : i32, i32
  }
  func.func @transform_4(%arg0: i32) -> (i32, i32) {
    %c0_i32 = arith.constant 0 : i32
    %c0_i32_0 = arith.constant 0 : i32
    %c0_i32_1 = arith.constant 0 : i32
    return %c0_i32, %c0_i32_0 : i32, i32
  }
  func.func @transform_5(%arg0: i32) -> (i32, i32) {
    %c0_i32 = arith.constant 0 : i32
    %c0_i32_0 = arith.constant 0 : i32
    %c0_i32_1 = arith.constant 0 : i32
    return %c0_i32, %c0_i32_0 : i32, i32
  }
  func.func @transform_6(%arg0: i32) -> (i32, i32) {
    %c0_i32 = arith.constant 0 : i32
    %c0_i32_0 = arith.constant 0 : i32
    %c0_i32_1 = arith.constant 0 : i32
    return %c0_i32, %c0_i32_0 : i32, i32
  }
  func.func @transform_7(%arg0: i32) -> (i32, i32) {
    %c0_i32 = arith.constant 0 : i32
    %c0_i32_0 = arith.constant 0 : i32
    return %arg0, %c0_i32 : i32, i32
  }
}

module attributes {stable_mosaic.version = 11 : i64} {
  func.func @_dense_kernel(%arg0: i32, %arg1: memref<8x64xbf16, #tpu.memory_space<vmem>>, %arg2: memref<64x256xbf16, #tpu.memory_space<vmem>>, %arg3: memref<1x256xf32, #tpu.memory_space<vmem>>, %arg4: memref<8x256xf32, #tpu.memory_space<vmem>>) attributes {dimension_semantics = [#tpu.dimension_semantics<parallel>], iteration_bounds = array<i64: 1>, scalar_prefetch = 0 : i64, scratch_operands = 0 : i64, tpu.core_type = #tpu.core_type<tc>, window_params = [{transform_indices = @transform_0, window_bounds = array<i64: 8, 64>}, {pipeline_mode = #tpu.pipeline_mode<synchronous>, transform_indices = @transform_1, window_bounds = array<i64: 64, 256>}, {pipeline_mode = #tpu.pipeline_mode<synchronous>, transform_indices = @transform_2, window_bounds = array<i64: 1, 256>}, {transform_indices = @transform_3, window_bounds = array<i64: 8, 256>}]} {
    %c0 = arith.constant 0 : index
    %c0_0 = arith.constant 0 : index
    %0 = vector.load %arg1[%c0, %c0_0] : memref<8x64xbf16, #tpu.memory_space<vmem>>, vector<8x64xbf16>
    %c0_1 = arith.constant 0 : index
    %c0_2 = arith.constant 0 : index
    %1 = vector.load %arg2[%c0_1, %c0_2] : memref<64x256xbf16, #tpu.memory_space<vmem>>, vector<64x256xbf16>
    %cst = arith.constant dense<0.000000e+00> : vector<8x256xf32>
    %2 = tpu.matmul %0, %1, %cst {dimension_numbers = #tpu.dot_dimension_numbers<[1], [0], [0], [1], [0, 0, 1, 1], [], []>} : vector<8x64xbf16>, vector<64x256xbf16>, vector<8x256xf32> -> vector<8x256xf32>
    %c0_3 = arith.constant 0 : index
    %c0_4 = arith.constant 0 : index
    %3 = vector.load %arg3[%c0_3, %c0_4] : memref<1x256xf32, #tpu.memory_space<vmem>>, vector<1x256xf32>
    %4 = vector.broadcast %3 : vector<1x256xf32> to vector<8x256xf32>
    %5 = arith.addf %2, %4 : vector<8x256xf32>
    %c0_5 = arith.constant 0 : index
    %c0_6 = arith.constant 0 : index
    %6 = vector.load %arg4[%c0_5, %c0_6] : memref<8x256xf32, #tpu.memory_space<vmem>>, vector<8x256xf32>
    tpu.vector_store %arg4[%c0_5, %c0_6], %5 {strides = array<i32>} : memref<8x256xf32, #tpu.memory_space<vmem>>, vector<8x256xf32>,
    return
  }
  func.func @transform_0(%arg0: i32) -> (i32, i32) {
    %c0_i32 = arith.constant 0 : i32
    %c0_i32_0 = arith.constant 0 : i32
    return %arg0, %c0_i32 : i32, i32
  }
  func.func @transform_1(%arg0: i32) -> (i32, i32) {
    %c0_i32 = arith.constant 0 : i32
    %c0_i32_0 = arith.constant 0 : i32
    %c0_i32_1 = arith.constant 0 : i32
    return %c0_i32, %c0_i32_0 : i32, i32
  }
  func.func @transform_2(%arg0: i32) -> (i32, i32) {
    %c0_i32 = arith.constant 0 : i32
    %c0_i32_0 = arith.constant 0 : i32
    %c0_i32_1 = arith.constant 0 : i32
    return %c0_i32, %c0_i32_0 : i32, i32
  }
  func.func @transform_3(%arg0: i32) -> (i32, i32) {
    %c0_i32 = arith.constant 0 : i32
    %c0_i32_0 = arith.constant 0 : i32
    return %arg0, %c0_i32 : i32, i32
  }
}

module attributes {stable_mosaic.version = 11 : i64} {
  func.func @_conv_kernel(%arg0: i32, %arg1: memref<1x8x64xbf16, #tpu.memory_space<vmem>>, %arg2: memref<1x8x64xbf16, #tpu.memory_space<vmem>>, %arg3: memref<3x64x32xbf16, #tpu.memory_space<vmem>>, %arg4: memref<3x64x32xbf16, #tpu.memory_space<vmem>>, %arg5: memref<1x32xf32, #tpu.memory_space<vmem>>, %arg6: memref<1x8x32xf32, #tpu.memory_space<vmem>>) attributes {dimension_semantics = [#tpu.dimension_semantics<parallel>], iteration_bounds = array<i64: 2>, scalar_prefetch = 0 : i64, scratch_operands = 0 : i64, tpu.core_type = #tpu.core_type<tc>, window_params = [{transform_indices = @transform_0, window_bounds = array<i64: 1, 8, 64>}, {transform_indices = @transform_1, window_bounds = array<i64: 1, 8, 64>}, {pipeline_mode = #tpu.pipeline_mode<synchronous>, transform_indices = @transform_2, window_bounds = array<i64: 3, 64, 32>}, {pipeline_mode = #tpu.pipeline_mode<synchronous>, transform_indices = @transform_3, window_bounds = array<i64: 3, 64, 32>}, {pipeline_mode = #tpu.pipeline_mode<synchronous>, transform_indices = @transform_4, window_bounds = array<i64: 1, 32>}, {transform_indices = @transform_5, window_bounds = array<i64: 1, 8, 32>}]} {
    %cst = arith.constant 0.000000e+00 : f32
    %0 = vector.broadcast %cst : f32 to vector<8x32xf32>
    %c0 = arith.constant 0 : index
    %c0_0 = arith.constant 0 : index
    %c0_1 = arith.constant 0 : index
    %1 = vector.load %arg1[%c0, %c0_0, %c0_1] : memref<1x8x64xbf16, #tpu.memory_space<vmem>>, vector<1x8x64xbf16>
    %2 = vector.shape_cast %1 : vector<1x8x64xbf16> to vector<8x64xbf16>
    %cst_2 = arith.constant 0.000000e+00 : bf16
    %3 = vector.broadcast %cst_2 : bf16 to vector<1x64xbf16>
    %4 = tpu.concatenate %3, %2, %3 in 0 : vector<1x64xbf16>, vector<8x64xbf16>, vector<1x64xbf16> -> vector<10x64xbf16>
    %5 = vector.extract_strided_slice %4 {offsets = [0, 0], sizes = [8, 64], strides = [1, 1]} : vector<10x64xbf16> to vector<8x64xbf16>
    %c0_3 = arith.constant 0 : index
    %c0_4 = arith.constant 0 : index
    %c0_5 = arith.constant 0 : index
    %6 = vector.load %arg3[%c0_3, %c0_4, %c0_5] : memref<3x64x32xbf16, #tpu.memory_space<vmem>>, vector<1x64x32xbf16>
    %7 = vector.shape_cast %6 : vector<1x64x32xbf16> to vector<64x32xbf16>
    %cst_6 = arith.constant dense<0.000000e+00> : vector<8x32xf32>
    %8 = tpu.matmul %5, %7, %cst_6 {dimension_numbers = #tpu.dot_dimension_numbers<[1], [0], [0], [1], [0, 0, 1, 1], [], []>} : vector<8x64xbf16>, vector<64x32xbf16>, vector<8x32xf32> -> vector<8x32xf32>
    %9 = arith.addf %0, %8 : vector<8x32xf32>
    %10 = vector.extract_strided_slice %4 {offsets = [1, 0], sizes = [8, 64], strides = [1, 1]} : vector<10x64xbf16> to vector<8x64xbf16>
    %c1 = arith.constant 1 : index
    %c0_7 = arith.constant 0 : index
    %c0_8 = arith.constant 0 : index
    %11 = vector.load %arg3[%c1, %c0_7, %c0_8] : memref<3x64x32xbf16, #tpu.memory_space<vmem>>, vector<1x64x32xbf16>
    %12 = vector.shape_cast %11 : vector<1x64x32xbf16> to vector<64x32xbf16>
    %cst_9 = arith.constant dense<0.000000e+00> : vector<8x32xf32>
    %13 = tpu.matmul %10, %12, %cst_9 {dimension_numbers = #tpu.dot_dimension_numbers<[1], [0], [0], [1], [0, 0, 1, 1], [], []>} : vector<8x64xbf16>, vector<64x32xbf16>, vector<8x32xf32> -> vector<8x32xf32>
    %14 = arith.addf %9, %13 : vector<8x32xf32>
    %15 = vector.extract_strided_slice %4 {offsets = [2, 0], sizes = [8, 64], strides = [1, 1]} : vector<10x64xbf16> to vector<8x64xbf16>
    %c2 = arith.constant 2 : index
    %c0_10 = arith.constant 0 : index
    %c0_11 = arith.constant 0 : index
    %16 = vector.load %arg3[%c2, %c0_10, %c0_11] : memref<3x64x32xbf16, #tpu.memory_space<vmem>>, vector<1x64x32xbf16>
    %17 = vector.shape_cast %16 : vector<1x64x32xbf16> to vector<64x32xbf16>
    %cst_12 = arith.constant dense<0.000000e+00> : vector<8x32xf32>
    %18 = tpu.matmul %15, %17, %cst_12 {dimension_numbers = #tpu.dot_dimension_numbers<[1], [0], [0], [1], [0, 0, 1, 1], [], []>} : vector<8x64xbf16>, vector<64x32xbf16>, vector<8x32xf32> -> vector<8x32xf32>
    %19 = arith.addf %14, %18 : vector<8x32xf32>
    %c0_13 = arith.constant 0 : index
    %c0_14 = arith.constant 0 : index
    %c0_15 = arith.constant 0 : index
    %20 = vector.load %arg2[%c0_13, %c0_14, %c0_15] : memref<1x8x64xbf16, #tpu.memory_space<vmem>>, vector<1x8x64xbf16>
    %21 = vector.shape_cast %20 : vector<1x8x64xbf16> to vector<8x64xbf16>
    %cst_16 = arith.constant 0.000000e+00 : bf16
    %22 = vector.broadcast %cst_16 : bf16 to vector<1x64xbf16>
    %23 = tpu.concatenate %22, %21, %22 in 0 : vector<1x64xbf16>, vector<8x64xbf16>, vector<1x64xbf16> -> vector<10x64xbf16>
    %24 = vector.extract_strided_slice %23 {offsets = [0, 0], sizes = [8, 64], strides = [1, 1]} : vector<10x64xbf16> to vector<8x64xbf16>
    %c0_17 = arith.constant 0 : index
    %c0_18 = arith.constant 0 : index
    %c0_19 = arith.constant 0 : index
    %25 = vector.load %arg4[%c0_17, %c0_18, %c0_19] : memref<3x64x32xbf16, #tpu.memory_space<vmem>>, vector<1x64x32xbf16>
    %26 = vector.shape_cast %25 : vector<1x64x32xbf16> to vector<64x32xbf16>
    %cst_20 = arith.constant dense<0.000000e+00> : vector<8x32xf32>
    %27 = tpu.matmul %24, %26, %cst_20 {dimension_numbers = #tpu.dot_dimension_numbers<[1], [0], [0], [1], [0, 0, 1, 1], [], []>} : vector<8x64xbf16>, vector<64x32xbf16>, vector<8x32xf32> -> vector<8x32xf32>
    %28 = arith.addf %19, %27 : vector<8x32xf32>
    %29 = vector.extract_strided_slice %23 {offsets = [1, 0], sizes = [8, 64], strides = [1, 1]} : vector<10x64xbf16> to vector<8x64xbf16>
    %c1_21 = arith.constant 1 : index
    %c0_22 = arith.constant 0 : index
    %c0_23 = arith.constant 0 : index
    %30 = vector.load %arg4[%c1_21, %c0_22, %c0_23] : memref<3x64x32xbf16, #tpu.memory_space<vmem>>, vector<1x64x32xbf16>
    %31 = vector.shape_cast %30 : vector<1x64x32xbf16> to vector<64x32xbf16>
    %cst_24 = arith.constant dense<0.000000e+00> : vector<8x32xf32>
    %32 = tpu.matmul %29, %31, %cst_24 {dimension_numbers = #tpu.dot_dimension_numbers<[1], [0], [0], [1], [0, 0, 1, 1], [], []>} : vector<8x64xbf16>, vector<64x32xbf16>, vector<8x32xf32> -> vector<8x32xf32>
    %33 = arith.addf %28, %32 : vector<8x32xf32>
    %34 = vector.extract_strided_slice %23 {offsets = [2, 0], sizes = [8, 64], strides = [1, 1]} : vector<10x64xbf16> to vector<8x64xbf16>
    %c2_25 = arith.constant 2 : index
    %c0_26 = arith.constant 0 : index
    %c0_27 = arith.constant 0 : index
    %35 = vector.load %arg4[%c2_25, %c0_26, %c0_27] : memref<3x64x32xbf16, #tpu.memory_space<vmem>>, vector<1x64x32xbf16>
    %36 = vector.shape_cast %35 : vector<1x64x32xbf16> to vector<64x32xbf16>
    %cst_28 = arith.constant dense<0.000000e+00> : vector<8x32xf32>
    %37 = tpu.matmul %34, %36, %cst_28 {dimension_numbers = #tpu.dot_dimension_numbers<[1], [0], [0], [1], [0, 0, 1, 1], [], []>} : vector<8x64xbf16>, vector<64x32xbf16>, vector<8x32xf32> -> vector<8x32xf32>
    %38 = arith.addf %33, %37 : vector<8x32xf32>
    %c0_29 = arith.constant 0 : index
    %c0_30 = arith.constant 0 : index
    %39 = vector.load %arg5[%c0_29, %c0_30] : memref<1x32xf32, #tpu.memory_space<vmem>>, vector<1x32xf32>
    %40 = vector.broadcast %39 : vector<1x32xf32> to vector<8x32xf32>
    %41 = arith.addf %38, %40 : vector<8x32xf32>
    %cst_31 = arith.constant 0.000000e+00 : f32
    %42 = vector.broadcast %cst_31 : f32 to vector<8x32xf32>
    %43 = arith.maximumf %41, %42 : vector<8x32xf32>
    %c0_32 = arith.constant 0 : index
    %c0_33 = arith.constant 0 : index
    %c0_34 = arith.constant 0 : index
    %44 = vector.load %arg6[%c0_32, %c0_33, %c0_34] : memref<1x8x32xf32, #tpu.memory_space<vmem>>, vector<1x8x32xf32>
    %45 = vector.shape_cast %44 : vector<1x8x32xf32> to vector<8x32xf32>
    %46 = vector.shape_cast %43 : vector<8x32xf32> to vector<1x8x32xf32>
    tpu.vector_store %arg6[%c0_32, %c0_33, %c0_34], %46 {strides = array<i32>} : memref<1x8x32xf32, #tpu.memory_space<vmem>>, vector<1x8x32xf32>,
    return
  }
  func.func @transform_0(%arg0: i32) -> (i32, i32, i32) {
    %c0_i32 = arith.constant 0 : i32
    %c0_i32_0 = arith.constant 0 : i32
    %c0_i32_1 = arith.constant 0 : i32
    return %arg0, %c0_i32, %c0_i32_0 : i32, i32, i32
  }
  func.func @transform_1(%arg0: i32) -> (i32, i32, i32) {
    %c0_i32 = arith.constant 0 : i32
    %c0_i32_0 = arith.constant 0 : i32
    %c0_i32_1 = arith.constant 0 : i32
    return %arg0, %c0_i32, %c0_i32_0 : i32, i32, i32
  }
  func.func @transform_2(%arg0: i32) -> (i32, i32, i32) {
    %c0_i32 = arith.constant 0 : i32
    %c0_i32_0 = arith.constant 0 : i32
    %c0_i32_1 = arith.constant 0 : i32
    %c0_i32_2 = arith.constant 0 : i32
    return %c0_i32, %c0_i32_0, %c0_i32_1 : i32, i32, i32
  }
  func.func @transform_3(%arg0: i32) -> (i32, i32, i32) {
    %c0_i32 = arith.constant 0 : i32
    %c0_i32_0 = arith.constant 0 : i32
    %c0_i32_1 = arith.constant 0 : i32
    %c0_i32_2 = arith.constant 0 : i32
    return %c0_i32, %c0_i32_0, %c0_i32_1 : i32, i32, i32
  }
  func.func @transform_4(%arg0: i32) -> (i32, i32) {
    %c0_i32 = arith.constant 0 : i32
    %c0_i32_0 = arith.constant 0 : i32
    %c0_i32_1 = arith.constant 0 : i32
    return %c0_i32, %c0_i32_0 : i32, i32
  }
  func.func @transform_5(%arg0: i32) -> (i32, i32, i32) {
    %c0_i32 = arith.constant 0 : i32
    %c0_i32_0 = arith.constant 0 : i32
    %c0_i32_1 = arith.constant 0 : i32
    return %arg0, %c0_i32, %c0_i32_0 : i32, i32, i32
  }
}

module attributes {stable_mosaic.version = 11 : i64} {
  func.func @_conv_kernel(%arg0: i32, %arg1: memref<1x8x32xbf16, #tpu.memory_space<vmem>>, %arg2: memref<3x32x32xbf16, #tpu.memory_space<vmem>>, %arg3: memref<1x32xf32, #tpu.memory_space<vmem>>, %arg4: memref<1x8x32xf32, #tpu.memory_space<vmem>>) attributes {dimension_semantics = [#tpu.dimension_semantics<parallel>], iteration_bounds = array<i64: 2>, scalar_prefetch = 0 : i64, scratch_operands = 0 : i64, tpu.core_type = #tpu.core_type<tc>, window_params = [{transform_indices = @transform_0, window_bounds = array<i64: 1, 8, 32>}, {pipeline_mode = #tpu.pipeline_mode<synchronous>, transform_indices = @transform_1, window_bounds = array<i64: 3, 32, 32>}, {pipeline_mode = #tpu.pipeline_mode<synchronous>, transform_indices = @transform_2, window_bounds = array<i64: 1, 32>}, {transform_indices = @transform_3, window_bounds = array<i64: 1, 8, 32>}]} {
    %cst = arith.constant 0.000000e+00 : f32
    %0 = vector.broadcast %cst : f32 to vector<8x32xf32>
    %c0 = arith.constant 0 : index
    %c0_0 = arith.constant 0 : index
    %c0_1 = arith.constant 0 : index
    %1 = vector.load %arg1[%c0, %c0_0, %c0_1] : memref<1x8x32xbf16, #tpu.memory_space<vmem>>, vector<1x8x32xbf16>
    %2 = vector.shape_cast %1 : vector<1x8x32xbf16> to vector<8x32xbf16>
    %cst_2 = arith.constant 0.000000e+00 : bf16
    %3 = vector.broadcast %cst_2 : bf16 to vector<1x32xbf16>
    %4 = tpu.concatenate %3, %2, %3 in 0 : vector<1x32xbf16>, vector<8x32xbf16>, vector<1x32xbf16> -> vector<10x32xbf16>
    %5 = vector.extract_strided_slice %4 {offsets = [0, 0], sizes = [8, 32], strides = [1, 1]} : vector<10x32xbf16> to vector<8x32xbf16>
    %c0_3 = arith.constant 0 : index
    %c0_4 = arith.constant 0 : index
    %c0_5 = arith.constant 0 : index
    %6 = vector.load %arg2[%c0_3, %c0_4, %c0_5] : memref<3x32x32xbf16, #tpu.memory_space<vmem>>, vector<1x32x32xbf16>
    %7 = vector.shape_cast %6 : vector<1x32x32xbf16> to vector<32x32xbf16>
    %cst_6 = arith.constant dense<0.000000e+00> : vector<8x32xf32>
    %8 = tpu.matmul %5, %7, %cst_6 {dimension_numbers = #tpu.dot_dimension_numbers<[1], [0], [0], [1], [0, 0, 1, 1], [], []>} : vector<8x32xbf16>, vector<32x32xbf16>, vector<8x32xf32> -> vector<8x32xf32>
    %9 = arith.addf %0, %8 : vector<8x32xf32>
    %10 = vector.extract_strided_slice %4 {offsets = [1, 0], sizes = [8, 32], strides = [1, 1]} : vector<10x32xbf16> to vector<8x32xbf16>
    %c1 = arith.constant 1 : index
    %c0_7 = arith.constant 0 : index
    %c0_8 = arith.constant 0 : index
    %11 = vector.load %arg2[%c1, %c0_7, %c0_8] : memref<3x32x32xbf16, #tpu.memory_space<vmem>>, vector<1x32x32xbf16>
    %12 = vector.shape_cast %11 : vector<1x32x32xbf16> to vector<32x32xbf16>
    %cst_9 = arith.constant dense<0.000000e+00> : vector<8x32xf32>
    %13 = tpu.matmul %10, %12, %cst_9 {dimension_numbers = #tpu.dot_dimension_numbers<[1], [0], [0], [1], [0, 0, 1, 1], [], []>} : vector<8x32xbf16>, vector<32x32xbf16>, vector<8x32xf32> -> vector<8x32xf32>
    %14 = arith.addf %9, %13 : vector<8x32xf32>
    %15 = vector.extract_strided_slice %4 {offsets = [2, 0], sizes = [8, 32], strides = [1, 1]} : vector<10x32xbf16> to vector<8x32xbf16>
    %c2 = arith.constant 2 : index
    %c0_10 = arith.constant 0 : index
    %c0_11 = arith.constant 0 : index
    %16 = vector.load %arg2[%c2, %c0_10, %c0_11] : memref<3x32x32xbf16, #tpu.memory_space<vmem>>, vector<1x32x32xbf16>
    %17 = vector.shape_cast %16 : vector<1x32x32xbf16> to vector<32x32xbf16>
    %cst_12 = arith.constant dense<0.000000e+00> : vector<8x32xf32>
    %18 = tpu.matmul %15, %17, %cst_12 {dimension_numbers = #tpu.dot_dimension_numbers<[1], [0], [0], [1], [0, 0, 1, 1], [], []>} : vector<8x32xbf16>, vector<32x32xbf16>, vector<8x32xf32> -> vector<8x32xf32>
    %19 = arith.addf %14, %18 : vector<8x32xf32>
    %c0_13 = arith.constant 0 : index
    %c0_14 = arith.constant 0 : index
    %20 = vector.load %arg3[%c0_13, %c0_14] : memref<1x32xf32, #tpu.memory_space<vmem>>, vector<1x32xf32>
    %21 = vector.broadcast %20 : vector<1x32xf32> to vector<8x32xf32>
    %22 = arith.addf %19, %21 : vector<8x32xf32>
    %cst_15 = arith.constant 0.000000e+00 : f32
    %23 = vector.broadcast %cst_15 : f32 to vector<8x32xf32>
    %24 = arith.maximumf %22, %23 : vector<8x32xf32>
    %c0_16 = arith.constant 0 : index
    %c0_17 = arith.constant 0 : index
    %c0_18 = arith.constant 0 : index
    %25 = vector.load %arg4[%c0_16, %c0_17, %c0_18] : memref<1x8x32xf32, #tpu.memory_space<vmem>>, vector<1x8x32xf32>
    %26 = vector.shape_cast %25 : vector<1x8x32xf32> to vector<8x32xf32>
    %27 = vector.shape_cast %24 : vector<8x32xf32> to vector<1x8x32xf32>
    tpu.vector_store %arg4[%c0_16, %c0_17, %c0_18], %27 {strides = array<i32>} : memref<1x8x32xf32, #tpu.memory_space<vmem>>, vector<1x8x32xf32>,
    return
  }
  func.func @transform_0(%arg0: i32) -> (i32, i32, i32) {
    %c0_i32 = arith.constant 0 : i32
    %c0_i32_0 = arith.constant 0 : i32
    %c0_i32_1 = arith.constant 0 : i32
    return %arg0, %c0_i32, %c0_i32_0 : i32, i32, i32
  }
  func.func @transform_1(%arg0: i32) -> (i32, i32, i32) {
    %c0_i32 = arith.constant 0 : i32
    %c0_i32_0 = arith.constant 0 : i32
    %c0_i32_1 = arith.constant 0 : i32
    %c0_i32_2 = arith.constant 0 : i32
    return %c0_i32, %c0_i32_0, %c0_i32_1 : i32, i32, i32
  }
  func.func @transform_2(%arg0: i32) -> (i32, i32) {
    %c0_i32 = arith.constant 0 : i32
    %c0_i32_0 = arith.constant 0 : i32
    %c0_i32_1 = arith.constant 0 : i32
    return %c0_i32, %c0_i32_0 : i32, i32
  }
  func.func @transform_3(%arg0: i32) -> (i32, i32, i32) {
    %c0_i32 = arith.constant 0 : i32
    %c0_i32_0 = arith.constant 0 : i32
    %c0_i32_1 = arith.constant 0 : i32
    return %arg0, %c0_i32, %c0_i32_0 : i32, i32, i32
  }
}

module attributes {stable_mosaic.version = 11 : i64} {
  func.func @_dense_kernel(%arg0: i32, %arg1: memref<16x32xbf16, #tpu.memory_space<vmem>>, %arg2: memref<32x128xbf16, #tpu.memory_space<vmem>>, %arg3: memref<1x128xf32, #tpu.memory_space<vmem>>, %arg4: memref<16x128xf32, #tpu.memory_space<vmem>>) attributes {dimension_semantics = [#tpu.dimension_semantics<parallel>], iteration_bounds = array<i64: 1>, scalar_prefetch = 0 : i64, scratch_operands = 0 : i64, tpu.core_type = #tpu.core_type<tc>, window_params = [{transform_indices = @transform_0, window_bounds = array<i64: 16, 32>}, {pipeline_mode = #tpu.pipeline_mode<synchronous>, transform_indices = @transform_1, window_bounds = array<i64: 32, 128>}, {pipeline_mode = #tpu.pipeline_mode<synchronous>, transform_indices = @transform_2, window_bounds = array<i64: 1, 128>}, {transform_indices = @transform_3, window_bounds = array<i64: 16, 128>}]} {
    %c0 = arith.constant 0 : index
    %c0_0 = arith.constant 0 : index
    %0 = vector.load %arg1[%c0, %c0_0] : memref<16x32xbf16, #tpu.memory_space<vmem>>, vector<16x32xbf16>
    %c0_1 = arith.constant 0 : index
    %c0_2 = arith.constant 0 : index
    %1 = vector.load %arg2[%c0_1, %c0_2] : memref<32x128xbf16, #tpu.memory_space<vmem>>, vector<32x128xbf16>
    %cst = arith.constant dense<0.000000e+00> : vector<16x128xf32>
    %2 = tpu.matmul %0, %1, %cst {dimension_numbers = #tpu.dot_dimension_numbers<[1], [0], [0], [1], [0, 0, 1, 1], [], []>} : vector<16x32xbf16>, vector<32x128xbf16>, vector<16x128xf32> -> vector<16x128xf32>
    %c0_3 = arith.constant 0 : index
    %c0_4 = arith.constant 0 : index
    %3 = vector.load %arg3[%c0_3, %c0_4] : memref<1x128xf32, #tpu.memory_space<vmem>>, vector<1x128xf32>
    %4 = vector.broadcast %3 : vector<1x128xf32> to vector<16x128xf32>
    %5 = arith.addf %2, %4 : vector<16x128xf32>
    %c0_5 = arith.constant 0 : index
    %c0_6 = arith.constant 0 : index
    %6 = vector.load %arg4[%c0_5, %c0_6] : memref<16x128xf32, #tpu.memory_space<vmem>>, vector<16x128xf32>
    tpu.vector_store %arg4[%c0_5, %c0_6], %5 {strides = array<i32>} : memref<16x128xf32, #tpu.memory_space<vmem>>, vector<16x128xf32>,
    return
  }
  func.func @transform_0(%arg0: i32) -> (i32, i32) {
    %c0_i32 = arith.constant 0 : i32
    %c0_i32_0 = arith.constant 0 : i32
    return %arg0, %c0_i32 : i32, i32
  }
  func.func @transform_1(%arg0: i32) -> (i32, i32) {
    %c0_i32 = arith.constant 0 : i32
    %c0_i32_0 = arith.constant 0 : i32
    %c0_i32_1 = arith.constant 0 : i32
    return %c0_i32, %c0_i32_0 : i32, i32
  }
  func.func @transform_2(%arg0: i32) -> (i32, i32) {
    %c0_i32 = arith.constant 0 : i32
    %c0_i32_0 = arith.constant 0 : i32
    %c0_i32_1 = arith.constant 0 : i32
    return %c0_i32, %c0_i32_0 : i32, i32
  }
  func.func @transform_3(%arg0: i32) -> (i32, i32) {
    %c0_i32 = arith.constant 0 : i32
    %c0_i32_0 = arith.constant 0 : i32
    return %arg0, %c0_i32 : i32, i32
  }
}

module attributes {stable_mosaic.version = 11 : i64} {
  func.func @_conv_kernel(%arg0: i32, %arg1: memref<1x16x16xbf16, #tpu.memory_space<vmem>>, %arg2: memref<3x16x16xbf16, #tpu.memory_space<vmem>>, %arg3: memref<1x16xf32, #tpu.memory_space<vmem>>, %arg4: memref<1x16x16xf32, #tpu.memory_space<vmem>>) attributes {dimension_semantics = [#tpu.dimension_semantics<parallel>], iteration_bounds = array<i64: 2>, scalar_prefetch = 0 : i64, scratch_operands = 0 : i64, tpu.core_type = #tpu.core_type<tc>, window_params = [{transform_indices = @transform_0, window_bounds = array<i64: 1, 16, 16>}, {pipeline_mode = #tpu.pipeline_mode<synchronous>, transform_indices = @transform_1, window_bounds = array<i64: 3, 16, 16>}, {pipeline_mode = #tpu.pipeline_mode<synchronous>, transform_indices = @transform_2, window_bounds = array<i64: 1, 16>}, {transform_indices = @transform_3, window_bounds = array<i64: 1, 16, 16>}]} {
    %cst = arith.constant 0.000000e+00 : f32
    %0 = vector.broadcast %cst : f32 to vector<16x16xf32>
    %c0 = arith.constant 0 : index
    %c0_0 = arith.constant 0 : index
    %c0_1 = arith.constant 0 : index
    %1 = vector.load %arg1[%c0, %c0_0, %c0_1] : memref<1x16x16xbf16, #tpu.memory_space<vmem>>, vector<1x16x16xbf16>
    %2 = vector.shape_cast %1 : vector<1x16x16xbf16> to vector<16x16xbf16>
    %cst_2 = arith.constant 0.000000e+00 : bf16
    %3 = vector.broadcast %cst_2 : bf16 to vector<1x16xbf16>
    %4 = tpu.concatenate %3, %2, %3 in 0 : vector<1x16xbf16>, vector<16x16xbf16>, vector<1x16xbf16> -> vector<18x16xbf16>
    %5 = vector.extract_strided_slice %4 {offsets = [0, 0], sizes = [16, 16], strides = [1, 1]} : vector<18x16xbf16> to vector<16x16xbf16>
    %c0_3 = arith.constant 0 : index
    %c0_4 = arith.constant 0 : index
    %c0_5 = arith.constant 0 : index
    %6 = vector.load %arg2[%c0_3, %c0_4, %c0_5] : memref<3x16x16xbf16, #tpu.memory_space<vmem>>, vector<1x16x16xbf16>
    %7 = vector.shape_cast %6 : vector<1x16x16xbf16> to vector<16x16xbf16>
    %cst_6 = arith.constant dense<0.000000e+00> : vector<16x16xf32>
    %8 = tpu.matmul %5, %7, %cst_6 {dimension_numbers = #tpu.dot_dimension_numbers<[1], [0], [0], [1], [0, 0, 1, 1], [], []>} : vector<16x16xbf16>, vector<16x16xbf16>, vector<16x16xf32> -> vector<16x16xf32>
    %9 = arith.addf %0, %8 : vector<16x16xf32>
    %10 = vector.extract_strided_slice %4 {offsets = [1, 0], sizes = [16, 16], strides = [1, 1]} : vector<18x16xbf16> to vector<16x16xbf16>
    %c1 = arith.constant 1 : index
    %c0_7 = arith.constant 0 : index
    %c0_8 = arith.constant 0 : index
    %11 = vector.load %arg2[%c1, %c0_7, %c0_8] : memref<3x16x16xbf16, #tpu.memory_space<vmem>>, vector<1x16x16xbf16>
    %12 = vector.shape_cast %11 : vector<1x16x16xbf16> to vector<16x16xbf16>
    %cst_9 = arith.constant dense<0.000000e+00> : vector<16x16xf32>
    %13 = tpu.matmul %10, %12, %cst_9 {dimension_numbers = #tpu.dot_dimension_numbers<[1], [0], [0], [1], [0, 0, 1, 1], [], []>} : vector<16x16xbf16>, vector<16x16xbf16>, vector<16x16xf32> -> vector<16x16xf32>
    %14 = arith.addf %9, %13 : vector<16x16xf32>
    %15 = vector.extract_strided_slice %4 {offsets = [2, 0], sizes = [16, 16], strides = [1, 1]} : vector<18x16xbf16> to vector<16x16xbf16>
    %c2 = arith.constant 2 : index
    %c0_10 = arith.constant 0 : index
    %c0_11 = arith.constant 0 : index
    %16 = vector.load %arg2[%c2, %c0_10, %c0_11] : memref<3x16x16xbf16, #tpu.memory_space<vmem>>, vector<1x16x16xbf16>
    %17 = vector.shape_cast %16 : vector<1x16x16xbf16> to vector<16x16xbf16>
    %cst_12 = arith.constant dense<0.000000e+00> : vector<16x16xf32>
    %18 = tpu.matmul %15, %17, %cst_12 {dimension_numbers = #tpu.dot_dimension_numbers<[1], [0], [0], [1], [0, 0, 1, 1], [], []>} : vector<16x16xbf16>, vector<16x16xbf16>, vector<16x16xf32> -> vector<16x16xf32>
    %19 = arith.addf %14, %18 : vector<16x16xf32>
    %c0_13 = arith.constant 0 : index
    %c0_14 = arith.constant 0 : index
    %20 = vector.load %arg3[%c0_13, %c0_14] : memref<1x16xf32, #tpu.memory_space<vmem>>, vector<1x16xf32>
    %21 = vector.broadcast %20 : vector<1x16xf32> to vector<16x16xf32>
    %22 = arith.addf %19, %21 : vector<16x16xf32>
    %cst_15 = arith.constant 0.000000e+00 : f32
    %23 = vector.broadcast %cst_15 : f32 to vector<16x16xf32>
    %24 = arith.maximumf %22, %23 : vector<16x16xf32>
    %c0_16 = arith.constant 0 : index
    %c0_17 = arith.constant 0 : index
    %c0_18 = arith.constant 0 : index
    %25 = vector.load %arg4[%c0_16, %c0_17, %c0_18] : memref<1x16x16xf32, #tpu.memory_space<vmem>>, vector<1x16x16xf32>
    %26 = vector.shape_cast %25 : vector<1x16x16xf32> to vector<16x16xf32>
    %27 = vector.shape_cast %24 : vector<16x16xf32> to vector<1x16x16xf32>
    tpu.vector_store %arg4[%c0_16, %c0_17, %c0_18], %27 {strides = array<i32>} : memref<1x16x16xf32, #tpu.memory_space<vmem>>, vector<1x16x16xf32>,
    return
  }
  func.func @transform_0(%arg0: i32) -> (i32, i32, i32) {
    %c0_i32 = arith.constant 0 : i32
    %c0_i32_0 = arith.constant 0 : i32
    %c0_i32_1 = arith.constant 0 : i32
    return %arg0, %c0_i32, %c0_i32_0 : i32, i32, i32
  }
  func.func @transform_1(%arg0: i32) -> (i32, i32, i32) {
    %c0_i32 = arith.constant 0 : i32
    %c0_i32_0 = arith.constant 0 : i32
    %c0_i32_1 = arith.constant 0 : i32
    %c0_i32_2 = arith.constant 0 : i32
    return %c0_i32, %c0_i32_0, %c0_i32_1 : i32, i32, i32
  }
  func.func @transform_2(%arg0: i32) -> (i32, i32) {
    %c0_i32 = arith.constant 0 : i32
    %c0_i32_0 = arith.constant 0 : i32
    %c0_i32_1 = arith.constant 0 : i32
    return %c0_i32, %c0_i32_0 : i32, i32
  }
  func.func @transform_3(%arg0: i32) -> (i32, i32, i32) {
    %c0_i32 = arith.constant 0 : i32
    %c0_i32_0 = arith.constant 0 : i32
    %c0_i32_1 = arith.constant 0 : i32
    return %arg0, %c0_i32, %c0_i32_0 : i32, i32, i32
  }
}

module attributes {stable_mosaic.version = 11 : i64} {
  func.func @_conv_kernel(%arg0: i32, %arg1: memref<1x16x32xbf16, #tpu.memory_space<vmem>>, %arg2: memref<1x16x32xbf16, #tpu.memory_space<vmem>>, %arg3: memref<3x32x16xbf16, #tpu.memory_space<vmem>>, %arg4: memref<3x32x16xbf16, #tpu.memory_space<vmem>>, %arg5: memref<1x16xf32, #tpu.memory_space<vmem>>, %arg6: memref<1x16x16xf32, #tpu.memory_space<vmem>>) attributes {dimension_semantics = [#tpu.dimension_semantics<parallel>], iteration_bounds = array<i64: 2>, scalar_prefetch = 0 : i64, scratch_operands = 0 : i64, tpu.core_type = #tpu.core_type<tc>, window_params = [{transform_indices = @transform_0, window_bounds = array<i64: 1, 16, 32>}, {transform_indices = @transform_1, window_bounds = array<i64: 1, 16, 32>}, {pipeline_mode = #tpu.pipeline_mode<synchronous>, transform_indices = @transform_2, window_bounds = array<i64: 3, 32, 16>}, {pipeline_mode = #tpu.pipeline_mode<synchronous>, transform_indices = @transform_3, window_bounds = array<i64: 3, 32, 16>}, {pipeline_mode = #tpu.pipeline_mode<synchronous>, transform_indices = @transform_4, window_bounds = array<i64: 1, 16>}, {transform_indices = @transform_5, window_bounds = array<i64: 1, 16, 16>}]} {
    %cst = arith.constant 0.000000e+00 : f32
    %0 = vector.broadcast %cst : f32 to vector<16x16xf32>
    %c0 = arith.constant 0 : index
    %c0_0 = arith.constant 0 : index
    %c0_1 = arith.constant 0 : index
    %1 = vector.load %arg1[%c0, %c0_0, %c0_1] : memref<1x16x32xbf16, #tpu.memory_space<vmem>>, vector<1x16x32xbf16>
    %2 = vector.shape_cast %1 : vector<1x16x32xbf16> to vector<16x32xbf16>
    %cst_2 = arith.constant 0.000000e+00 : bf16
    %3 = vector.broadcast %cst_2 : bf16 to vector<1x32xbf16>
    %4 = tpu.concatenate %3, %2, %3 in 0 : vector<1x32xbf16>, vector<16x32xbf16>, vector<1x32xbf16> -> vector<18x32xbf16>
    %5 = vector.extract_strided_slice %4 {offsets = [0, 0], sizes = [16, 32], strides = [1, 1]} : vector<18x32xbf16> to vector<16x32xbf16>
    %c0_3 = arith.constant 0 : index
    %c0_4 = arith.constant 0 : index
    %c0_5 = arith.constant 0 : index
    %6 = vector.load %arg3[%c0_3, %c0_4, %c0_5] : memref<3x32x16xbf16, #tpu.memory_space<vmem>>, vector<1x32x16xbf16>
    %7 = vector.shape_cast %6 : vector<1x32x16xbf16> to vector<32x16xbf16>
    %cst_6 = arith.constant dense<0.000000e+00> : vector<16x16xf32>
    %8 = tpu.matmul %5, %7, %cst_6 {dimension_numbers = #tpu.dot_dimension_numbers<[1], [0], [0], [1], [0, 0, 1, 1], [], []>} : vector<16x32xbf16>, vector<32x16xbf16>, vector<16x16xf32> -> vector<16x16xf32>
    %9 = arith.addf %0, %8 : vector<16x16xf32>
    %10 = vector.extract_strided_slice %4 {offsets = [1, 0], sizes = [16, 32], strides = [1, 1]} : vector<18x32xbf16> to vector<16x32xbf16>
    %c1 = arith.constant 1 : index
    %c0_7 = arith.constant 0 : index
    %c0_8 = arith.constant 0 : index
    %11 = vector.load %arg3[%c1, %c0_7, %c0_8] : memref<3x32x16xbf16, #tpu.memory_space<vmem>>, vector<1x32x16xbf16>
    %12 = vector.shape_cast %11 : vector<1x32x16xbf16> to vector<32x16xbf16>
    %cst_9 = arith.constant dense<0.000000e+00> : vector<16x16xf32>
    %13 = tpu.matmul %10, %12, %cst_9 {dimension_numbers = #tpu.dot_dimension_numbers<[1], [0], [0], [1], [0, 0, 1, 1], [], []>} : vector<16x32xbf16>, vector<32x16xbf16>, vector<16x16xf32> -> vector<16x16xf32>
    %14 = arith.addf %9, %13 : vector<16x16xf32>
    %15 = vector.extract_strided_slice %4 {offsets = [2, 0], sizes = [16, 32], strides = [1, 1]} : vector<18x32xbf16> to vector<16x32xbf16>
    %c2 = arith.constant 2 : index
    %c0_10 = arith.constant 0 : index
    %c0_11 = arith.constant 0 : index
    %16 = vector.load %arg3[%c2, %c0_10, %c0_11] : memref<3x32x16xbf16, #tpu.memory_space<vmem>>, vector<1x32x16xbf16>
    %17 = vector.shape_cast %16 : vector<1x32x16xbf16> to vector<32x16xbf16>
    %cst_12 = arith.constant dense<0.000000e+00> : vector<16x16xf32>
    %18 = tpu.matmul %15, %17, %cst_12 {dimension_numbers = #tpu.dot_dimension_numbers<[1], [0], [0], [1], [0, 0, 1, 1], [], []>} : vector<16x32xbf16>, vector<32x16xbf16>, vector<16x16xf32> -> vector<16x16xf32>
    %19 = arith.addf %14, %18 : vector<16x16xf32>
    %c0_13 = arith.constant 0 : index
    %c0_14 = arith.constant 0 : index
    %c0_15 = arith.constant 0 : index
    %20 = vector.load %arg2[%c0_13, %c0_14, %c0_15] : memref<1x16x32xbf16, #tpu.memory_space<vmem>>, vector<1x16x32xbf16>
    %21 = vector.shape_cast %20 : vector<1x16x32xbf16> to vector<16x32xbf16>
    %cst_16 = arith.constant 0.000000e+00 : bf16
    %22 = vector.broadcast %cst_16 : bf16 to vector<1x32xbf16>
    %23 = tpu.concatenate %22, %21, %22 in 0 : vector<1x32xbf16>, vector<16x32xbf16>, vector<1x32xbf16> -> vector<18x32xbf16>
    %24 = vector.extract_strided_slice %23 {offsets = [0, 0], sizes = [16, 32], strides = [1, 1]} : vector<18x32xbf16> to vector<16x32xbf16>
    %c0_17 = arith.constant 0 : index
    %c0_18 = arith.constant 0 : index
    %c0_19 = arith.constant 0 : index
    %25 = vector.load %arg4[%c0_17, %c0_18, %c0_19] : memref<3x32x16xbf16, #tpu.memory_space<vmem>>, vector<1x32x16xbf16>
    %26 = vector.shape_cast %25 : vector<1x32x16xbf16> to vector<32x16xbf16>
    %cst_20 = arith.constant dense<0.000000e+00> : vector<16x16xf32>
    %27 = tpu.matmul %24, %26, %cst_20 {dimension_numbers = #tpu.dot_dimension_numbers<[1], [0], [0], [1], [0, 0, 1, 1], [], []>} : vector<16x32xbf16>, vector<32x16xbf16>, vector<16x16xf32> -> vector<16x16xf32>
    %28 = arith.addf %19, %27 : vector<16x16xf32>
    %29 = vector.extract_strided_slice %23 {offsets = [1, 0], sizes = [16, 32], strides = [1, 1]} : vector<18x32xbf16> to vector<16x32xbf16>
    %c1_21 = arith.constant 1 : index
    %c0_22 = arith.constant 0 : index
    %c0_23 = arith.constant 0 : index
    %30 = vector.load %arg4[%c1_21, %c0_22, %c0_23] : memref<3x32x16xbf16, #tpu.memory_space<vmem>>, vector<1x32x16xbf16>
    %31 = vector.shape_cast %30 : vector<1x32x16xbf16> to vector<32x16xbf16>
    %cst_24 = arith.constant dense<0.000000e+00> : vector<16x16xf32>
    %32 = tpu.matmul %29, %31, %cst_24 {dimension_numbers = #tpu.dot_dimension_numbers<[1], [0], [0], [1], [0, 0, 1, 1], [], []>} : vector<16x32xbf16>, vector<32x16xbf16>, vector<16x16xf32> -> vector<16x16xf32>
    %33 = arith.addf %28, %32 : vector<16x16xf32>
    %34 = vector.extract_strided_slice %23 {offsets = [2, 0], sizes = [16, 32], strides = [1, 1]} : vector<18x32xbf16> to vector<16x32xbf16>
    %c2_25 = arith.constant 2 : index
    %c0_26 = arith.constant 0 : index
    %c0_27 = arith.constant 0 : index
    %35 = vector.load %arg4[%c2_25, %c0_26, %c0_27] : memref<3x32x16xbf16, #tpu.memory_space<vmem>>, vector<1x32x16xbf16>
    %36 = vector.shape_cast %35 : vector<1x32x16xbf16> to vector<32x16xbf16>
    %cst_28 = arith.constant dense<0.000000e+00> : vector<16x16xf32>
    %37 = tpu.matmul %34, %36, %cst_28 {dimension_numbers = #tpu.dot_dimension_numbers<[1], [0], [0], [1], [0, 0, 1, 1], [], []>} : vector<16x32xbf16>, vector<32x16xbf16>, vector<16x16xf32> -> vector<16x16xf32>
    %38 = arith.addf %33, %37 : vector<16x16xf32>
    %c0_29 = arith.constant 0 : index
    %c0_30 = arith.constant 0 : index
    %39 = vector.load %arg5[%c0_29, %c0_30] : memref<1x16xf32, #tpu.memory_space<vmem>>, vector<1x16xf32>
    %40 = vector.broadcast %39 : vector<1x16xf32> to vector<16x16xf32>
    %41 = arith.addf %38, %40 : vector<16x16xf32>
    %cst_31 = arith.constant 0.000000e+00 : f32
    %42 = vector.broadcast %cst_31 : f32 to vector<16x16xf32>
    %43 = arith.maximumf %41, %42 : vector<16x16xf32>
    %c0_32 = arith.constant 0 : index
    %c0_33 = arith.constant 0 : index
    %c0_34 = arith.constant 0 : index
    %44 = vector.load %arg6[%c0_32, %c0_33, %c0_34] : memref<1x16x16xf32, #tpu.memory_space<vmem>>, vector<1x16x16xf32>
    %45 = vector.shape_cast %44 : vector<1x16x16xf32> to vector<16x16xf32>
    %46 = vector.shape_cast %43 : vector<16x16xf32> to vector<1x16x16xf32>
    tpu.vector_store %arg6[%c0_32, %c0_33, %c0_34], %46 {strides = array<i32>} : memref<1x16x16xf32, #tpu.memory_space<vmem>>, vector<1x16x16xf32>,
    return
  }
  func.func @transform_0(%arg0: i32) -> (i32, i32, i32) {
    %c0_i32 = arith.constant 0 : i32
    %c0_i32_0 = arith.constant 0 : i32
    %c0_i32_1 = arith.constant 0 : i32
    return %arg0, %c0_i32, %c0_i32_0 : i32, i32, i32
  }
  func.func @transform_1(%arg0: i32) -> (i32, i32, i32) {
    %c0_i32 = arith.constant 0 : i32
    %c0_i32_0 = arith.constant 0 : i32
    %c0_i32_1 = arith.constant 0 : i32
    return %arg0, %c0_i32, %c0_i32_0 : i32, i32, i32
  }
  func.func @transform_2(%arg0: i32) -> (i32, i32, i32) {
    %c0_i32 = arith.constant 0 : i32
    %c0_i32_0 = arith.constant 0 : i32
    %c0_i32_1 = arith.constant 0 : i32
    %c0_i32_2 = arith.constant 0 : i32
    return %c0_i32, %c0_i32_0, %c0_i32_1 : i32, i32, i32
  }
  func.func @transform_3(%arg0: i32) -> (i32, i32, i32) {
    %c0_i32 = arith.constant 0 : i32
    %c0_i32_0 = arith.constant 0 : i32
    %c0_i32_1 = arith.constant 0 : i32
    %c0_i32_2 = arith.constant 0 : i32
    return %c0_i32, %c0_i32_0, %c0_i32_1 : i32, i32, i32
  }
  func.func @transform_4(%arg0: i32) -> (i32, i32) {
    %c0_i32 = arith.constant 0 : i32
    %c0_i32_0 = arith.constant 0 : i32
    %c0_i32_1 = arith.constant 0 : i32
    return %c0_i32, %c0_i32_0 : i32, i32
  }
  func.func @transform_5(%arg0: i32) -> (i32, i32, i32) {
    %c0_i32 = arith.constant 0 : i32
    %c0_i32_0 = arith.constant 0 : i32
    %c0_i32_1 = arith.constant 0 : i32
    return %arg0, %c0_i32, %c0_i32_0 : i32, i32, i32
  }
}

module attributes {stable_mosaic.version = 11 : i64} {
  func.func @_dense_kernel(%arg0: i32, %arg1: memref<32x16xbf16, #tpu.memory_space<vmem>>, %arg2: memref<16x32xbf16, #tpu.memory_space<vmem>>, %arg3: memref<1x32xf32, #tpu.memory_space<vmem>>, %arg4: memref<32x32xf32, #tpu.memory_space<vmem>>) attributes {dimension_semantics = [#tpu.dimension_semantics<parallel>], iteration_bounds = array<i64: 1>, scalar_prefetch = 0 : i64, scratch_operands = 0 : i64, tpu.core_type = #tpu.core_type<tc>, window_params = [{transform_indices = @transform_0, window_bounds = array<i64: 32, 16>}, {pipeline_mode = #tpu.pipeline_mode<synchronous>, transform_indices = @transform_1, window_bounds = array<i64: 16, 32>}, {pipeline_mode = #tpu.pipeline_mode<synchronous>, transform_indices = @transform_2, window_bounds = array<i64: 1, 32>}, {transform_indices = @transform_3, window_bounds = array<i64: 32, 32>}]} {
    %c0 = arith.constant 0 : index
    %c0_0 = arith.constant 0 : index
    %0 = vector.load %arg1[%c0, %c0_0] : memref<32x16xbf16, #tpu.memory_space<vmem>>, vector<32x16xbf16>
    %c0_1 = arith.constant 0 : index
    %c0_2 = arith.constant 0 : index
    %1 = vector.load %arg2[%c0_1, %c0_2] : memref<16x32xbf16, #tpu.memory_space<vmem>>, vector<16x32xbf16>
    %cst = arith.constant dense<0.000000e+00> : vector<32x32xf32>
    %2 = tpu.matmul %0, %1, %cst {dimension_numbers = #tpu.dot_dimension_numbers<[1], [0], [0], [1], [0, 0, 1, 1], [], []>} : vector<32x16xbf16>, vector<16x32xbf16>, vector<32x32xf32> -> vector<32x32xf32>
    %c0_3 = arith.constant 0 : index
    %c0_4 = arith.constant 0 : index
    %3 = vector.load %arg3[%c0_3, %c0_4] : memref<1x32xf32, #tpu.memory_space<vmem>>, vector<1x32xf32>
    %4 = vector.broadcast %3 : vector<1x32xf32> to vector<32x32xf32>
    %5 = arith.addf %2, %4 : vector<32x32xf32>
    %cst_5 = arith.constant 0.000000e+00 : f32
    %6 = vector.broadcast %cst_5 : f32 to vector<32x32xf32>
    %7 = arith.maximumf %5, %6 : vector<32x32xf32>
    %c0_6 = arith.constant 0 : index
    %c0_7 = arith.constant 0 : index
    %8 = vector.load %arg4[%c0_6, %c0_7] : memref<32x32xf32, #tpu.memory_space<vmem>>, vector<32x32xf32>
    tpu.vector_store %arg4[%c0_6, %c0_7], %7 {strides = array<i32>} : memref<32x32xf32, #tpu.memory_space<vmem>>, vector<32x32xf32>,
    return
  }
  func.func @transform_0(%arg0: i32) -> (i32, i32) {
    %c0_i32 = arith.constant 0 : i32
    %c0_i32_0 = arith.constant 0 : i32
    return %arg0, %c0_i32 : i32, i32
  }
  func.func @transform_1(%arg0: i32) -> (i32, i32) {
    %c0_i32 = arith.constant 0 : i32
    %c0_i32_0 = arith.constant 0 : i32
    %c0_i32_1 = arith.constant 0 : i32
    return %c0_i32, %c0_i32_0 : i32, i32
  }
  func.func @transform_2(%arg0: i32) -> (i32, i32) {
    %c0_i32 = arith.constant 0 : i32
    %c0_i32_0 = arith.constant 0 : i32
    %c0_i32_1 = arith.constant 0 : i32
    return %c0_i32, %c0_i32_0 : i32, i32
  }
  func.func @transform_3(%arg0: i32) -> (i32, i32) {
    %c0_i32 = arith.constant 0 : i32
    %c0_i32_0 = arith.constant 0 : i32
    return %arg0, %c0_i32 : i32, i32
  }
}

</mosaic_0001>

<bundles_post_ra>
// kernel: _lambda_.18
= control target key start
LH: loop header
LB: loop body
LE: loop exit
PB: predicated region body
PF: predicated region fallthrough
CT: control target
= control target key end

     0   :  { %vm47_vm0 = vcmask 1041408   ;;  %vm40_vm1 = vcmask 31744   ;;  %vm96_vm2 = vcmask 261120   ;;  %vm122_vm3 = vcmask 64512   ;;  %s223_s1 = inlined_call_operand.vmem [shape: bf16[4,32], index: 1, kind: input, shape index: {}]   ;;  %s224_s0 = inlined_call_operand.vmem [shape: bf16[32,4], index: 0, kind: input, shape index: {}]   ;;  %s225_s2 = inlined_call_operand.vmem [shape: f32[1,32], index: 2, kind: input, shape index: {}]   ;;  %s226_s4 = inlined_call_operand.vmem [shape: f32[1,8], index: 4, kind: input, shape index: {}]   ;;  %s227_s3 = inlined_call_operand.vmem [shape: bf16[32,8], index: 3, kind: input, shape index: {}]   ;;  %s228_s5 = inlined_call_operand.vmem [shape: f32[32,8], index: 5, kind: output, shape index: {}]  }
   0x1   :  { %v25_v0 = vld [vmem:[%s223_s1] sm:$0x3]  ;;  %v152_v3 = vld [vmem:[%s224_s0 + $0x8] sm:$0xff] }
   0x2   :  { %v49_v1 = vsel %vm47_vm0, %v25_v0, 0  ;;  %v151_v2 = vld [vmem:[%s224_s0] sm:$0xff]  ;;  %v154_v4 = vld [vmem:[%s227_s3 + $0x8] sm:$0xff] }
   0x3   :  { %58 = vmatpush.bf16.msra.mxu0 %v49_v1  ;;  %155 = vmatpush.bf16.msra.mxu3 %v49_v1  ;;  %v153_v5 = vld [vmem:[%s227_s3] sm:$0xff] }
   0x4   :  { %109 = vmatpush.bf16.msra.mxu1 %v154_v4  ;;  %156 = vmatpush.bf16.msra.mxu2 %v154_v4  ;;  %v158_v7 = vld [vmem:[%s225_s2] ss:$0 sm:$0xff] }
   0x5   :  { %v159_v21 = vld [vmem:[%s226_s4] ss:$0 sm:$0xff] }
   0x6   :  { %139 = vmatmul.msk.bf16.vlgmr.msra.gmra.mxu0 %vm40_vm1, %v151_v2  ;;  %140 = vmatmul.msk.bf16.vlgmr.msra.gmra.mxu3 %vm40_vm1, %v152_v3 }
   0x8   :  { %110 = vmatpush.bf16.msra.mxu1 %v153_v5  ;;  %157 = vmatpush.bf16.msra.mxu2 %v153_v5 }
  0x83   :  { %v60_v6 = vpop.f32.mrf.mxu0 }
  0x84   :  { %v61_v8 = vadd.f32 %v158_v7, %v60_v6 }
  0x86   :  { %v70_v11 = vmax.f32 %v61_v8, 0.0 }
  0x89   :  { %v65_v9 = vpop.f32.mrf.mxu3 }
  0x8a   :  { %v66_v14 = vadd.f32 %v158_v7, %v65_v9 }
  0x8b   :  { %v62_v10 = vpop.f32.mrf.mxu0 }
  0x8c   :  { %v63_v12 = vadd.f32 %v158_v7, %v62_v10  ;;  %v72_v18 = vmax.f32 %v66_v14, 0.0 }
  0x8e   :  { %v71_v13 = vmax.f32 %v63_v12, 0.0 }
  0x90   :  { %v74_v15 = vpack.c.bf16 %v71_v13, %v70_v11 }
  0x91   :  { %v67_v16 = vpop.f32.mrf.mxu3 }
  0x92   :  { %v68_v17 = vadd.f32 %v158_v7, %v67_v16  ;;  %149 = vmatmul.msk.bf16.vlgmr.msra.gmra.mxu1 %vm96_vm2, %v74_v15 }
  0x94   :  { %v73_v19 = vmax.f32 %v68_v17, 0.0 }
  0x96   :  { %v75_v20 = vpack.c.bf16 %v73_v19, %v72_v18 }
  0x98   :  { %150 = vmatmul.msk.bf16.vlgmr.msra.gmra.mxu2 %vm96_vm2, %v75_v20 }
 0x10f   :  { %v112_v22 = vpop.f32.mrf.mxu1 }
 0x110   :  { %v113_v23 = vadd.f32 %v159_v21, %v112_v22 }
 0x112   :  { %123 = vst.msk [vmem:[%s228_s5] sm:$0xff] %vm122_vm3, %v113_v23 }
 0x117   :  { %v114_v24 = vpop.f32.mrf.mxu1 }
 0x118   :  { %v115_v25 = vadd.f32 %v159_v21, %v114_v24 }
 0x11a   :  { %124 = vst.msk [vmem:[%s228_s5 + $0x8] sm:$0xff] %vm122_vm3, %v115_v25 }
 0x11b   :  { %v117_v26 = vpop.f32.mrf.mxu2 }
 0x11c   :  { %v118_v27 = vadd.f32 %v159_v21, %v117_v26 }
 0x11e   :  { %125 = vst.msk [vmem:[%s228_s5 + $0x10] sm:$0xff] %vm122_vm3, %v118_v27 }
 0x123   :  { %v119_v28 = vpop.f32.mrf.mxu2 }
 0x124   :  { %v120_v29 = vadd.f32 %v159_v21, %v119_v28 }
 0x126   :  { %126 = vst.msk [vmem:[%s228_s5 + $0x18] sm:$0xff] %vm122_vm3, %v120_v29 }

// kernel: _lambda_.19
= control target key start
LH: loop header
LB: loop body
LE: loop exit
PB: predicated region body
PF: predicated region fallthrough
CT: control target
= control target key end

     0   :  { %vm41_vm0 = vcmask 1043456   ;;  %vm34_vm1 = vcmask 64512   ;;  %vm64_vm2 = vcmask 392192   ;;  %s131_s1 = inlined_call_operand.vmem [shape: bf16[8,48], index: 1, kind: input, shape index: {}]   ;;  %s132_s0 = inlined_call_operand.vmem [shape: bf16[32,8], index: 0, kind: input, shape index: {}]   ;;  %s133_s2 = inlined_call_operand.vmem [shape: f32[1,48], index: 2, kind: input, shape index: {}]   ;;  %s134_s3 = inlined_call_operand.vmem [shape: f32[32,48], index: 3, kind: output, shape index: {}]  }
   0x1   :  { %v19_v0 = vld [vmem:[%s131_s1] sm:$0xf]  ;;  %v84_v3 = vld [vmem:[%s132_s0 + $0x8] sm:$0xff] }
   0x2   :  { %v43_v1 = vsel %vm41_vm0, %v19_v0, 0  ;;  %v83_v2 = vld [vmem:[%s132_s0] sm:$0xff] }
   0x3   :  { %52 = vmatpush.bf16.msra.mxu0 %v43_v1  ;;  %85 = vmatpush.bf16.msra.mxu1 %v43_v1  ;;  %v86_v4 = vld [vmem:[%s133_s2] ss:$0 sm:$0xff] }
   0x6   :  { %81 = vmatmul.msk.bf16.vlgmr.msra.gmra.mxu0 %vm34_vm1, %v83_v2  ;;  %82 = vmatmul.msk.bf16.vlgmr.msra.gmra.mxu1 %vm34_vm1, %v84_v3 }
  0x83   :  { %v54_v5 = vpop.f32.mrf.mxu0  ;;  %v59_v6 = vpop.f32.mrf.mxu1 }
  0x84   :  { %v55_v7 = vadd.f32 %v86_v4, %v54_v5  ;;  %v60_v8 = vadd.f32 %v86_v4, %v59_v6 }
  0x86   :  { %65 = vst.msk [vmem:[%s134_s3] sm:$0xff] %vm64_vm2, %v55_v7 }
  0x87   :  { %67 = vst.msk [vmem:[%s134_s3 + $0x10] sm:$0xff] %vm64_vm2, %v60_v8 }
  0x8b   :  { %v56_v9 = vpop.f32.mrf.mxu0  ;;  %v61_v10 = vpop.f32.mrf.mxu1 }
  0x8c   :  { %v57_v11 = vadd.f32 %v86_v4, %v56_v9  ;;  %v62_v12 = vadd.f32 %v86_v4, %v61_v10 }
  0x8e   :  { %66 = vst.msk [vmem:[%s134_s3 + $0x8] sm:$0xff] %vm64_vm2, %v57_v11 }
  0x8f   :  { %68 = vst.msk [vmem:[%s134_s3 + $0x18] sm:$0xff] %vm64_vm2, %v62_v12 }

// kernel: _lambda_.20
= control target key start
LH: loop header
LB: loop body
LE: loop exit
PB: predicated region body
PF: predicated region fallthrough
CT: control target
= control target key end

     0   :  { %v192_v0 = vmov 0.0   ;;  %s194_s12 = smov 0   ;;  %s225_s0 = inlined_call_operand.vmem [shape: f32[16,2,48], index: 0, kind: input, shape index: {}]   ;;  %s226_s1 = inlined_call_operand.vmem [shape: bf16[16,48], index: 1, kind: input, shape index: {}]   ;;  %s227_s2 = inlined_call_operand.vmem [shape: f32[1,48], index: 2, kind: input, shape index: {}]   ;;  %s228_s3 = inlined_call_operand.vmem [shape: f32[16,2,16], index: 3, kind: output, shape index: {}]  }
   0x1 LB: > { %v126_v1 = vld [vmem:[%s226_s1] sm:$0xff]  ;;  %v22_v2 = vpack.c.bf16 %v163_v0, %v163_v0  ;;  %s169_s15 = smov 112   ;;  %vm38_vm0 = vcmask 130048   ;;  %s170_s18 = smov 96   ;;  %vm102_vm5 = vcmask 123904   ;;  %s167_s12 = sphi %s194_s12, %s20_s12   ;;  %v163_v0 = vphi %v192_v0, %v96_v0  }
   0x2   : > { %49 = vmatpush.bf16.msra.mxu0 %v126_v1  ;;  %v146_v4 = vld [vmem:[%s227_s2] ss:$0 sm:$0xff]  ;;  %s125_s19 = sshll.u32 %s167_s12, 1  ;;  %s171_s23 = smov 32  }
   0x3   : > { %30 = vrot.lane.b32.xlu0 %v22_v2, %s169_s15  ;;  %s56_s22 = scalar_lea.vmem %s225_s0, %s125_s19  ;;  %s101_s26 = scalar_lea.vmem %s228_s3, %s125_s19 }
   0x4   : > { %v57_v8 = vld [vmem:[%s56_s22] sm:$0x3]  ;;  %s20_s12 = sadd.s32 1, %s167_s12  }
   0x5   : > { %p17_p0 = scmp.ge.s32.totalorder %s20_s12, 16  }
  0x75   : > { %v31_v3 = vpop.permute.xlu0 %30 }
  0x76   : > { %124 = vmatmul.msk.bf16.vlgmr.msra.gmra.mxu0 %vm38_vm0, %v31_v3 }
  0xf3   : > { %v51_v5 = vpop.f32.mrf.mxu0 }
  0xf4   : > { %v52_v6 = vadd.f32 %v146_v4, %v51_v5 }
  0xf6   : > { %79 = vrot.lane.b32.xlu0 %v52_v6, %s170_s18  ;;  %v58_v9 = vadd.f32 %v57_v8, %v52_v6 }
  0xf8   : > { %v59_v10 = vsub.f32 0.0, %v58_v9 }
  0xfa   : > { %v60_v11 = vmul.f32 1.442695, %v59_v10 }
  0xfb   : > { %v53_v7 = vpop.f32.mrf.mxu0 }
  0xfc   : > { %147 = vpow2.f32 %v60_v11 }
 0x102   : > { %v148_v12 = vpop.eup %147 }
 0x103   : > { %v62_v13 = vadd.f32 1.0, %v148_v12 }
 0x105   : > { %149 = vrcp.f32 %v62_v13  ;;  %v74_v19 = vand.u32 2147483648, %v62_v13  ;;  %vm68_vm2 = vweird.f32 %v62_v13  ;;  %v72_v20 = vand.u32 2147483647, %v62_v13 }
 0x107   : > { %v75_v22 = vor.u32 1.1754944e-38, %v74_v19  ;;  %vm73_vm4 = vcmp.eq.f32.partialorder %v72_v20, 8.507059e+37 }
 0x10b   : > { %v150_v14 = vpop.eup %149 }
 0x10c   : > { %v64_v15 = vmul.f32 %v150_v14, %v62_v13  ;;  %vm69_vm1 = vweird.f32 %v150_v14 }
 0x10d   : > { %vm70_vm3 = vmor %vm68_vm2, %vm69_vm1 }
 0x10e   : > { %v65_v16 = vsub.f32 1.0, %v64_v15 }
 0x110   : > { %v66_v17 = vmul.f32 %v150_v14, %v65_v16 }
 0x112   : > { %v67_v18 = vadd.f32 %v150_v14, %v66_v17 }
 0x114   : > { %v71_v21 = vsel %vm70_vm3, %v150_v14, %v67_v18 }
 0x115   : > { %v76_v24 = vsel %vm73_vm4, %v75_v22, %v71_v21 }
 0x116   : > { %v89_v29 = vsub.f32 1.0, %v76_v24  ;;  %v95_v32 = vmul.f32 %v163_v0, %v76_v24 }
 0x168   : > { %v80_v23 = vpop.permute.xlu0 %79 }
 0x169   : > { %v82_v25 = vmul.f32 %v80_v23, %v76_v24 }
 0x16b   : > { %84 = vrot.lane.b32.xlu1 %v82_v25, %s171_s23 }
 0x1dd   : > { %v85_v26 = vpop.permute.xlu1 %84 }
 0x1de   : > { %v87_v27 = vadd.f32 %v85_v26, %v57_v8 }
 0x1e0   : > { %151 = vtanh.f32 %v87_v27 }
 0x1e6   : > { %v152_v28 = vpop.eup %151 }
 0x1e7   : > { %91 = vrot.lane.b32.xlu1 %v152_v28, %s169_s15 }
 0x259   : > { %v92_v30 = vpop.permute.xlu1 %91 }
 0x25a   : > { %v94_v31 = vmul.f32 %v92_v30, %v89_v29 }
 0x25c   : > { %v96_v0 = vadd.f32 %v95_v32, %v94_v31  }
 0x25e   : > { %98 = vrot.lane.b32.xlu2 %v96_v0, %s169_s15 }
 0x2b5   :  { %19 = sbr.rel (!%p17_p0) target bundleno = 1 (0x1), region = 41 }
 0x2b8   : > { %v99_v33 = vpop.permute.xlu2 %98 }
 0x2b9   : > { %103 = vst.msk [vmem:[%s101_s26] sm:$0x3] %vm102_vm5, %v99_v33 }

// kernel: _lambda_.21
= control target key start
LH: loop header
LB: loop body
LE: loop exit
PB: predicated region body
PF: predicated region fallthrough
CT: control target
= control target key end

     0   :  { %s434_s12 = smov 0   ;;  %s470_s0 = inlined_call_operand.vmem [shape: bf16[2,16,16], index: 0, kind: input, shape index: {}]   ;;  %s471_s1 = inlined_call_operand.vmem [shape: bf16[3,16,32], index: 1, kind: input, shape index: {}]   ;;  %s472_s2 = inlined_call_operand.vmem [shape: f32[1,32], index: 2, kind: input, shape index: {}]   ;;  %s473_s3 = inlined_call_operand.vmem [shape: f32[2,16,32], index: 3, kind: output, shape index: {}]  }
   0x1 LB: > { %s357_s13 = sadd.s32 4294967295, %s412_s12   ;;  %p361_p0 = scmp.ge.s32.totalorder %s412_s12, 1  ;;  %s412_s12 = sphi %s434_s12, %s13_s12  }
   0x2   : > { %p137_p1 = scmp.lt.s32.totalorder %s412_s12, 3 }
   0x4   : > { %p138_p2 = pnand %p361_p0, %p137_p1 }
   0x5   : > { %p161_p3 = scmp.lt.s32.totalorder (!%p138_p2), %s357_s13, 1 }
   0x6   : > { %141 = sbr.rel (%p138_p2) target bundleno = 172 (0xac), region = 32 }
   0xb   : > { %v394_v0 = vld [vmem:[%s471_s1] sm:$0xff]  ;;  %v396_v1 = vld [vmem:[%s471_s1 + $0x10] sm:$0xff]  ;;  %v395_v2 = vld [vmem:[%s471_s1 + $0x8] sm:$0xff]  ;;  %s475_s13 = smov (!%p161_p3, %s357_s13), 1  ;;  %vm188_vm0 = vcmask 1040384   ;;  %vm217_vm3 = vcmask 130048  }
   0xc   : > { %250 = vmatpush.bf16.msra.mxu1 %v394_v0  ;;  %282 = vmatpush.bf16.msra.mxu2 %v396_v1  ;;  %s391_s20 = sshll.u32 %s475_s13, 3  ;;  %vm189_vm1 = vsmask.f32 256  ;;  %vm262_vm4 = vcmask 1046528   ;;  %vm198_vm5 = vsmask.f32 7424 }
   0xd   : > { %228 = vmatpush.bf16.msra.mxu0 %v395_v2  ;;  %s165_s23 = scalar_lea.vmem %s470_s0, %s391_s20  ;;  %vm190_vm2 = vmand %vm188_vm0, %vm189_vm1  ;;  %v405_v23 = vld [vmem:[%s472_s2] ss:$0 sm:$0xff]  ;;  %s392_s26 = sshll.u32 %s475_s13, 4  ;;  %vm299_vm6 = vcmask 261120  }
   0xe   : > { %v393_v3 = vld [vmem:[%s165_s23] sm:$0xff]  ;;  %s170_s29 = scalar_lea.vmem %s473_s3, %s392_s26 }
   0xf   : > { %v180_v4 = vshrl.u32 %v393_v3, 16  ;;  %v183_v5 = vshll.u32 %v393_v3, 16 }
  0x11   : > { %v182_v6 = vrot.slane %v180_v4, 7 }
  0x13   : > { %v185_v7 = vor.u32 %v183_v5, %v182_v6  ;;  %v192_v8 = vsel %vm190_vm2, %v182_v6, 0 }
  0x14   : > { %v207_v9 = vshll.u32 %v192_v8, 16  ;;  %v264_v10 = vrot.slane %v192_v8, 1 }
  0x15   : > { %v191_v11 = vsel %vm190_vm2, 0, %v185_v7 }
  0x16   : > { %v200_v12 = vshrl.u32 %v191_v11, 16  ;;  %v202_v13 = vshll.u32 %v191_v11, 16  ;;  %381 = vmatmul.msk.bf16.vlgmr.msra.gmra.mxu1 %vm217_vm3, %v191_v11  ;;  %v263_v14 = vrot.slane %v191_v11, 1  ;;  %v209_v17 = vrot.slane %v207_v9, 1 }
  0x18   : > { %v204_v15 = vrot.slane %v202_v13, 1  ;;  %v265_v16 = vsel %vm262_vm4, %v263_v14, %v264_v10 }
  0x19   : > { %388 = vmatmul.msk.bf16.vlgmr.msra.gmra.mxu2 %vm217_vm3, %v265_v16 }
  0x1a   : > { %v205_v18 = vor.u32 %v204_v15, %v200_v12 }
  0x1c   : > { %v210_v19 = vsel %vm198_vm5, %v205_v18, %v209_v17 }
  0x1d   : > { %376 = vmatmul.msk.bf16.vlgmr.msra.gmra.mxu0 %vm217_vm3, %v210_v19 }
  0x93   : > { %v252_v20 = vpop.f32.mrf.mxu1 }
  0x9a   : > { %v230_v21 = vpop.f32.mrf.mxu0 }
  0x9b   : > { %v253_v22 = vadd.f32 %v252_v20, %v230_v21  ;;  %v254_v28 = vpop.f32.mrf.mxu1 }
  0x9c   : > { %v284_v24 = vpop.f32.mrf.mxu2 }
  0x9d   : > { %v289_v25 = vadd.f32 %v284_v24, %v253_v22 }
  0x9f   : > { %v295_v26 = vadd.f32 %v405_v23, %v289_v25 }
  0xa1   : > { %v297_v27 = vmax.f32 %v295_v26, 0.0 }
  0xa2   : > { %v232_v29 = vpop.f32.mrf.mxu0 }
  0xa3   : > { %300 = vst.msk [vmem:[%s170_s29] sm:$0xff] %vm299_vm6, %v297_v27  ;;  %v255_v30 = vadd.f32 %v254_v28, %v232_v29 }
  0xa4   : > { %v286_v31 = vpop.f32.mrf.mxu2 }
  0xa5   : > { %v290_v32 = vadd.f32 %v286_v31, %v255_v30 }
  0xa7   : > { %v296_v33 = vadd.f32 %v405_v23, %v290_v32 }
  0xa9   : > { %v298_v34 = vmax.f32 %v296_v33, 0.0 }
  0xab   : > { %301 = vst.msk [vmem:[%s170_s29 + $0x8] sm:$0xff] %vm299_vm6, %v298_v34 }
  0xac PF: > { %s13_s12 = sadd.s32 1, %s412_s12  }
  0xad   : > { %p10_p4 = scmp.ge.s32.totalorder %s13_s12, 4  }
  0xaf   :  { %12 = sbr.rel (!%p10_p4) target bundleno = 1 (0x1), region = 64 }

// kernel: _lambda_.22
= control target key start
LH: loop header
LB: loop body
LE: loop exit
PB: predicated region body
PF: predicated region fallthrough
CT: control target
= control target key end

     0   :  { %s646_s15 = smov 0   ;;  %s713_s0 = inlined_call_operand.vmem [shape: bf16[2,16,32], index: 0, kind: input, shape index: {}]   ;;  %s714_s1 = inlined_call_operand.vmem [shape: bf16[3,32,32], index: 1, kind: input, shape index: {}]   ;;  %s715_s2 = inlined_call_operand.vmem [shape: f32[1,32], index: 2, kind: input, shape index: {}]   ;;  %s716_s3 = inlined_call_operand.vmem [shape: f32[2,16,32], index: 3, kind: output, shape index: {0}]   ;;  %s717_s4 = inlined_call_operand.vmem [shape: f32[2,8,32], index: 4, kind: output, shape index: {1}]  }
   0x1 LB: > { %s544_s16 = sadd.s32 4294967295, %s619_s15   ;;  %p548_p0 = scmp.ge.s32.totalorder %s619_s15, 1  ;;  %s619_s15 = sphi %s646_s15, %s15_s15  }
   0x2   : > { %p165_p1 = scmp.lt.s32.totalorder %s619_s15, 3 }
   0x4   : > { %p166_p2 = pnand %p548_p0, %p165_p1 }
   0x5   : > { %p195_p3 = scmp.lt.s32.totalorder (!%p166_p2), %s544_s16, 1 }
   0x6   : > { %169 = sbr.rel (%p166_p2) target bundleno = 192 (0xc0), region = 32 }
   0xb   : > { %v599_v0 = vld [vmem:[%s714_s1 + $0x8] sm:$0xff]  ;;  %v601_v2 = vld [vmem:[%s714_s1 + $0x18] sm:$0xff]  ;;  %v598_v3 = vld [vmem:[%s714_s1] sm:$0xff]  ;;  %s719_s16 = smov (!%p195_p3, %s544_s16), 1  ;;  %vm226_vm0 = vcmask 1040384   ;;  %vm265_vm3 = vcmask 261120  }
   0xc   : > { %v603_v1 = vld [vmem:[%s714_s1 + $0x28] sm:$0xff]  ;;  %303 = vmatpush.bf16.msra.mxu1 %v599_v0  ;;  %v602_v4 = vld [vmem:[%s714_s1 + $0x20] sm:$0xff]  ;;  %275 = vmatpush.bf16.msra.mxu0 %v601_v2  ;;  %v600_v5 = vld [vmem:[%s714_s1 + $0x10] sm:$0xff]  ;;  %s595_s29 = sshll.u32 %s719_s16, 3  ;;  %vm227_vm1 = vsmask.f32 256 }
   0xd   : > { %343 = vmatpush.bf16.msra.mxu2 %v603_v1  ;;  %s199_s6 = scalar_lea.vmem %s713_s0, %s595_s29  ;;  %vm228_vm2 = vmand %vm226_vm0, %vm227_vm1  ;;  %vm318_vm4 = vcmask 1046528   ;;  %vm240_vm5 = vsmask.f32 7424  ;;  %v612_v26 = vld [vmem:[%s715_s2] ss:$0 sm:$0xff]  ;;  %s596_s9 = sshll.u32 %s719_s16, 4 }
   0xe   : > { %v597_v6 = vld [vmem:[%s199_s6] sm:$0xff]  ;;  %s690_s12 = scalar_lea.vmem %s716_s3, %s596_s9  ;;  %vm377_vm6 = vcmask 254976   ;;  %vm442_vm7 = vcmask 1041409   ;;  %vm444_vm8 = vcmask 1042434   ;;  %vm446_vm9 = vcmask 1043459   ;;  %s208_s17 = scalar_lea.vmem %s717_s4, %s595_s29 }
   0xf   : > { %v218_v7 = vshrl.u32 %v597_v6, 16  ;;  %v221_v8 = vshll.u32 %v597_v6, 16  ;;  %vm448_vm10 = vcmask 1044484   ;;  %vm450_vm11 = vcmask 1045509  }
  0x10   : > { %304 = vmatpush.bf16.msra.mxu1 %v598_v3  ;;  %276 = vmatpush.bf16.msra.mxu0 %v600_v5  ;;  %vm452_vm12 = vcmask 1046534   ;;  %vm454_vm13 = vcmask 1047559  }
  0x11   : > { %344 = vmatpush.bf16.msra.mxu2 %v602_v4  ;;  %v220_v9 = vrot.slane %v218_v7, 7 }
  0x13   : > { %v223_v10 = vor.u32 %v221_v8, %v220_v9  ;;  %v230_v11 = vsel %vm228_vm2, %v220_v9, 0 }
  0x14   : > { %v249_v12 = vshll.u32 %v230_v11, 16  ;;  %v320_v13 = vrot.slane %v230_v11, 1 }
  0x15   : > { %v229_v14 = vsel %vm228_vm2, 0, %v223_v10 }
  0x16   : > { %v242_v15 = vshrl.u32 %v229_v14, 16  ;;  %v244_v16 = vshll.u32 %v229_v14, 16  ;;  %579 = vmatmul.msk.bf16.vlgmr.msra.gmra.mxu1 %vm265_vm3, %v229_v14  ;;  %v319_v17 = vrot.slane %v229_v14, 1  ;;  %v251_v20 = vrot.slane %v249_v12, 1 }
  0x18   : > { %v246_v18 = vrot.slane %v244_v16, 1  ;;  %v321_v19 = vsel %vm318_vm4, %v319_v17, %v320_v13 }
  0x19   : > { %592 = vmatmul.msk.bf16.vlgmr.msra.gmra.mxu2 %vm265_vm3, %v321_v19 }
  0x1a   : > { %v247_v21 = vor.u32 %v246_v18, %v242_v15 }
  0x1c   : > { %v252_v22 = vsel %vm240_vm5, %v247_v21, %v251_v20 }
  0x1d   : > { %570 = vmatmul.msk.bf16.vlgmr.msra.gmra.mxu0 %vm265_vm3, %v252_v22 }
  0x93   : > { %v306_v23 = vpop.f32.mrf.mxu1 }
  0x9a   : > { %v278_v24 = vpop.f32.mrf.mxu0 }
  0x9b   : > { %v307_v25 = vadd.f32 %v306_v23, %v278_v24  ;;  %v308_v32 = vpop.f32.mrf.mxu1 }
  0x9c   : > { %v346_v27 = vpop.f32.mrf.mxu2 }
  0x9d   : > { %v351_v28 = vadd.f32 %v346_v27, %v307_v25 }
  0x9f   : > { %v357_v29 = vadd.f32 %v612_v26, %v351_v28 }
  0xa1   : > { %v359_v30 = vmax.f32 %v357_v29, 0.0 }
  0xa2   : > { %v280_v31 = vpop.f32.mrf.mxu0 }
  0xa3   : > { %361 = vst.msk [vmem:[%s690_s12] sm:$0xff] %vm265_vm3, %v359_v30  ;;  %v365_v33 = vrot.slane %v359_v30, 2  ;;  %v366_v34 = vrot.slane %v359_v30, 4  ;;  %v367_v35 = vrot.slane %v359_v30, 6  ;;  %v378_v36 = vsel %vm377_vm6, %v359_v30, -inf }
  0xa4   : > { %v379_v37 = vrot.slane %v378_v36, 4  ;;  %v309_v38 = vadd.f32 %v308_v32, %v280_v31  ;;  %v348_v39 = vpop.f32.mrf.mxu2 }
  0xa5   : > { %v385_v40 = vsel %vm377_vm6, %v365_v33, -inf  ;;  %v392_v41 = vsel %vm377_vm6, %v366_v34, -inf  ;;  %v399_v42 = vsel %vm377_vm6, %v367_v35, -inf }
  0xa6   : > { %v380_v43 = vmax.f32 %v378_v36, %v379_v37  ;;  %v386_v44 = vrot.slane %v385_v40, 4  ;;  %v393_v45 = vrot.slane %v392_v41, 4  ;;  %v400_v46 = vrot.slane %v399_v42, 4 }
  0xa7   : > { %v352_v47 = vadd.f32 %v348_v39, %v309_v38 }
  0xa8   : > { %v381_v48 = vrot.slane %v380_v43, 2  ;;  %v387_v49 = vmax.f32 %v385_v40, %v386_v44  ;;  %v394_v50 = vmax.f32 %v392_v41, %v393_v45  ;;  %v401_v51 = vmax.f32 %v399_v42, %v400_v46 }
  0xa9   : > { %v358_v52 = vadd.f32 %v612_v26, %v352_v47 }
  0xaa   : > { %v382_v53 = vmax.f32 %v380_v43, %v381_v48  ;;  %v388_v54 = vrot.slane %v387_v49, 2  ;;  %v395_v55 = vrot.slane %v394_v50, 2  ;;  %v402_v59 = vrot.slane %v401_v51, 2 }
  0xab   : > { %v360_v56 = vmax.f32 %v358_v52, 0.0 }
  0xac   : > { %v389_v57 = vmax.f32 %v387_v49, %v388_v54  ;;  %v396_v58 = vmax.f32 %v394_v50, %v395_v55  ;;  %v383_v0 = vrot.slane %v382_v53, 1  ;;  %v403_v8 = vmax.f32 %v401_v51, %v402_v59 }
  0xad   : > { %362 = vst.msk [vmem:[%s690_s12 + $0x8] sm:$0xff] %vm265_vm3, %v360_v56  ;;  %v368_v60 = vrot.slane %v360_v56, 2  ;;  %v369_v61 = vrot.slane %v360_v56, 4  ;;  %v370_v62 = vrot.slane %v360_v56, 6  ;;  %v406_v63 = vsel %vm377_vm6, %v360_v56, -inf }
  0xae   : > { %v390_v1 = vrot.slane %v389_v57, 1  ;;  %v397_v2 = vrot.slane %v396_v58, 1  ;;  %v407_v3 = vrot.slane %v406_v63, 4  ;;  %v384_v13 = vmax.f32 %v382_v53, %v383_v0 }
  0xaf   : > { %v413_v4 = vsel %vm377_vm6, %v368_v60, -inf  ;;  %v420_v5 = vsel %vm377_vm6, %v369_v61, -inf  ;;  %v427_v6 = vsel %vm377_vm6, %v370_v62, -inf  ;;  %v404_v19 = vrot.slane %v403_v8, 1 }
  0xb0   : > { %v391_v7 = vmax.f32 %v389_v57, %v390_v1  ;;  %v414_v9 = vrot.slane %v413_v4, 4  ;;  %v408_v10 = vmax.f32 %v406_v63, %v407_v3  ;;  %v421_v11 = vrot.slane %v420_v5, 4 }
  0xb1   : > { %v428_v12 = vrot.slane %v427_v6, 4  ;;  %v398_v15 = vmax.f32 %v396_v58, %v397_v2  ;;  %v405_v30 = vmax.f32 %v403_v8, %v404_v19 }
  0xb2   : > { %v415_v14 = vmax.f32 %v413_v4, %v414_v9  ;;  %v409_v16 = vrot.slane %v408_v10, 2  ;;  %v422_v17 = vmax.f32 %v420_v5, %v421_v11  ;;  %v443_v20 = vsel %vm442_vm7, %v391_v7, %v384_v13 }
  0xb3   : > { %v429_v18 = vmax.f32 %v427_v6, %v428_v12  ;;  %v445_v26 = vsel %vm444_vm8, %v398_v15, %v443_v20 }
  0xb4   : > { %v416_v21 = vrot.slane %v415_v14, 2  ;;  %v410_v22 = vmax.f32 %v408_v10, %v409_v16  ;;  %v423_v23 = vrot.slane %v422_v17, 2  ;;  %v447_v35 = vsel %vm446_vm9, %v405_v30, %v445_v26 }
  0xb5   : > { %v430_v24 = vrot.slane %v429_v18, 2 }
  0xb6   : > { %v417_v25 = vmax.f32 %v415_v14, %v416_v21  ;;  %v411_v27 = vrot.slane %v410_v22, 1  ;;  %v424_v28 = vmax.f32 %v422_v17, %v423_v23 }
  0xb7   : > { %v431_v29 = vmax.f32 %v429_v18, %v430_v24 }
  0xb8   : > { %v418_v31 = vrot.slane %v417_v25, 1  ;;  %v412_v32 = vmax.f32 %v410_v22, %v411_v27  ;;  %v425_v33 = vrot.slane %v424_v28, 1 }
  0xb9   : > { %v432_v34 = vrot.slane %v431_v29, 1 }
  0xba   : > { %v419_v36 = vmax.f32 %v417_v25, %v418_v31  ;;  %v426_v37 = vmax.f32 %v424_v28, %v425_v33  ;;  %v449_v38 = vsel %vm448_vm10, %v412_v32, %v447_v35 }
  0xbb   : > { %v433_v39 = vmax.f32 %v431_v29, %v432_v34 }
  0xbc   : > { %v451_v40 = vsel %vm450_vm11, %v419_v36, %v449_v38 }
  0xbd   : > { %v453_v41 = vsel %vm452_vm12, %v426_v37, %v451_v40 }
  0xbe   : > { %v455_v42 = vsel %vm454_vm13, %v433_v39, %v453_v41 }
  0xbf   : > { %457 = vst.msk [vmem:[%s208_s17] sm:$0xff] %vm265_vm3, %v455_v42 }
  0xc0 PF: > { %s15_s15 = sadd.s32 1, %s619_s15  }
  0xc1   : > { %p12_p4 = scmp.ge.s32.totalorder %s15_s15, 4  }
  0xc3   :  { %14 = sbr.rel (!%p12_p4) target bundleno = 1 (0x1), region = 76 }

// kernel: _lambda_.23
= control target key start
LH: loop header
LB: loop body
LE: loop exit
PB: predicated region body
PF: predicated region fallthrough
CT: control target
= control target key end

     0   :  { %s443_s12 = smov 0   ;;  %s485_s0 = inlined_call_operand.vmem [shape: bf16[2,8,32], index: 0, kind: input, shape index: {}]   ;;  %s486_s1 = inlined_call_operand.vmem [shape: bf16[3,32,64], index: 1, kind: input, shape index: {}]   ;;  %s487_s2 = inlined_call_operand.vmem [shape: f32[1,64], index: 2, kind: input, shape index: {}]   ;;  %s488_s3 = inlined_call_operand.vmem [shape: f32[2,8,64], index: 3, kind: output, shape index: {}]  }
   0x1 LB: > { %s356_s13 = sadd.s32 4294967295, %s421_s12   ;;  %p360_p0 = scmp.ge.s32.totalorder %s421_s12, 1  ;;  %s421_s12 = sphi %s443_s12, %s13_s12  }
   0x2   : > { %p136_p1 = scmp.lt.s32.totalorder %s421_s12, 3 }
   0x4   : > { %p137_p2 = pnand %p360_p0, %p136_p1 }
   0x5   : > { %p158_p3 = scmp.lt.s32.totalorder (!%p137_p2), %s356_s13, 1 }
   0x6   : > { %140 = sbr.rel (%p137_p2) target bundleno = 169 (0xa9), region = 32 }
   0xb   : > { %v401_v0 = vld [vmem:[%s486_s1 + $0x8] sm:$0xff]  ;;  %v403_v2 = vld [vmem:[%s486_s1 + $0x18] sm:$0xff]  ;;  %v400_v3 = vld [vmem:[%s486_s1] sm:$0xff]  ;;  %s490_s13 = smov (!%p158_p3, %s356_s13), 1  ;;  %vm179_vm0 = vcmask 1040384   ;;  %vm183_vm2 = vcmask 1044480  }
   0xc   : > { %v405_v1 = vld [vmem:[%s486_s1 + $0x28] sm:$0xff]  ;;  %252 = vmatpush.bf16.msra.mxu1 %v401_v0  ;;  %v404_v4 = vld [vmem:[%s486_s1 + $0x20] sm:$0xff]  ;;  %225 = vmatpush.bf16.msra.mxu0 %v403_v2  ;;  %v402_v5 = vld [vmem:[%s486_s1 + $0x10] sm:$0xff]  ;;  %s361_s26 = sshll.u32 %s490_s13, 2  ;;  %vm180_vm1 = vsmask.f32 256 }
   0xd   : > { %287 = vmatpush.bf16.msra.mxu2 %v405_v1  ;;  %s161_s29 = scalar_lea.vmem %s485_s0, %s361_s26  ;;  %vm184_vm3 = vsmask.f32 4352  ;;  %vm181_vm4 = vmand %vm179_vm0, %vm180_vm1  ;;  %vm215_vm6 = vcmask 261120   ;;  %v414_v23 = vld [vmem:[%s487_s2] ss:$0 sm:$0xff]  ;;  %s362_s5 = sshll.u32 %s490_s13, 3 }
   0xe   : > { %v167_v6 = vld [vmem:[%s161_s29] sm:$0xf]  ;;  %vm185_vm5 = vmand %vm183_vm2, %vm184_vm3  ;;  %s165_s8 = scalar_lea.vmem %s488_s3, %s362_s5  ;;  %vm301_vm7 = vcmask 523264  }
   0xf   : > { %v169_v7 = vunpack.c.l.b16 %v167_v6 }
  0x10   : > { %253 = vmatpush.bf16.msra.mxu1 %v400_v3  ;;  %226 = vmatpush.bf16.msra.mxu0 %v402_v5 }
  0x11   : > { %288 = vmatpush.bf16.msra.mxu2 %v404_v4  ;;  %v170_v8 = vpack.c.b16 %v169_v7, %v169_v7 }
  0x13   : > { %v172_v9 = vshrl.u32 %v170_v8, 16  ;;  %v175_v10 = vshll.u32 %v170_v8, 16 }
  0x15   : > { %v174_v11 = vrot.slane %v172_v9, 7 }
  0x17   : > { %v177_v12 = vor.u32 %v175_v10, %v174_v11 }
  0x19   : > { %v182_v13 = vsel %vm181_vm4, 0, %v177_v12 }
  0x1a   : > { %v186_v14 = vsel %vm185_vm5, %v182_v13, 0 }
  0x1b   : > { %384 = vmatmul.msk.bf16.vlgmr.msra.gmra.mxu1 %vm215_vm6, %v186_v14  ;;  %v265_v15 = vrot.slane %v186_v14, 1  ;;  %v197_v16 = vshrl.u32 %v186_v14, 16  ;;  %v199_v17 = vshll.u32 %v186_v14, 16 }
  0x1d   : > { %397 = vmatmul.msk.bf16.vlgmr.msra.gmra.mxu2 %vm215_vm6, %v265_v15  ;;  %v201_v18 = vrot.slane %v199_v17, 1 }
  0x1f   : > { %v202_v19 = vor.u32 %v201_v18, %v197_v16 }
  0x21   : > { %375 = vmatmul.msk.bf16.vlgmr.msra.gmra.mxu0 %vm215_vm6, %v202_v19 }
  0x98   : > { %v255_v20 = vpop.f32.mrf.mxu1 }
  0x9e   : > { %v228_v21 = vpop.f32.mrf.mxu0 }
  0x9f   : > { %v256_v22 = vadd.f32 %v255_v20, %v228_v21 }
  0xa0   : > { %v257_v24 = vpop.f32.mrf.mxu1  ;;  %v290_v25 = vpop.f32.mrf.mxu2 }
  0xa1   : > { %v294_v26 = vadd.f32 %v290_v25, %v256_v22 }
  0xa3   : > { %v299_v27 = vadd.f32 %v414_v23, %v294_v26 }
  0xa5   : > { %v300_v28 = vmax.f32 %v299_v27, 0.0 }
  0xa6   : > { %v230_v29 = vpop.f32.mrf.mxu0 }
  0xa7   : > { %302 = vst.msk [vmem:[%s165_s8] sm:$0xff] %vm301_vm7, %v300_v28 }
  0xa8   : > { %v292_v30 = vpop.f32.mrf.mxu2 }
  0xa9 PF: > { %s13_s12 = sadd.s32 1, %s421_s12  }
  0xaa   : > { %p10_p4 = scmp.ge.s32.totalorder %s13_s12, 4  }
  0xac   :  { %12 = sbr.rel (!%p10_p4) target bundleno = 1 (0x1), region = 64 }

// kernel: _lambda_.24
= control target key start
LH: loop header
LB: loop body
LE: loop exit
PB: predicated region body
PF: predicated region fallthrough
CT: control target
= control target key end

     0   :  { %s652_s15 = smov 0   ;;  %s723_s0 = inlined_call_operand.vmem [shape: bf16[2,8,64], index: 0, kind: input, shape index: {}]   ;;  %s724_s1 = inlined_call_operand.vmem [shape: bf16[3,64,64], index: 1, kind: input, shape index: {}]   ;;  %s725_s2 = inlined_call_operand.vmem [shape: f32[1,64], index: 2, kind: input, shape index: {}]   ;;  %s726_s3 = inlined_call_operand.vmem [shape: f32[2,8,64], index: 3, kind: output, shape index: {0}]   ;;  %s727_s4 = inlined_call_operand.vmem [shape: f32[2,4,64], index: 4, kind: output, shape index: {1}]  }
   0x1 LB: > { %s521_s16 = sadd.s32 4294967295, %s625_s15   ;;  %p525_p0 = scmp.ge.s32.totalorder %s625_s15, 1  ;;  %s625_s15 = sphi %s652_s15, %s15_s15  }
   0x2   : > { %p164_p1 = scmp.lt.s32.totalorder %s625_s15, 3 }
   0x4   : > { %p165_p2 = pnand %p525_p0, %p164_p1 }
   0x5   : > { %p192_p3 = scmp.lt.s32.totalorder (!%p165_p2), %s521_s16, 1 }
   0x6   : > { %168 = sbr.rel (%p165_p2) target bundleno = 186 (0xba), region = 32 }
   0xb   : > { %v601_v0 = vld [vmem:[%s724_s1 + $0x18] sm:$0xff]  ;;  %v600_v3 = vld [vmem:[%s724_s1 + $0x10] sm:$0xff]  ;;  %s729_s16 = smov (!%p192_p3, %s521_s16), 1  ;;  %v599_v6 = vld [vmem:[%s724_s1 + $0x8] sm:$0xff]  ;;  %vm217_vm0 = vcmask 1040384   ;;  %vm221_vm2 = vcmask 1044480  }
   0xc   : > { %v609_v1 = vld [vmem:[%s724_s1 + $0x58] sm:$0xff]  ;;  %320 = vmatpush.bf16.msra.mxu1 %v601_v0  ;;  %v608_v4 = vld [vmem:[%s724_s1 + $0x50] sm:$0xff]  ;;  %s526_s29 = sshll.u32 %s729_s16, 2  ;;  %v607_v7 = vld [vmem:[%s724_s1 + $0x48] sm:$0xff]  ;;  %vm218_vm1 = vsmask.f32 256 }
   0xd   : > { %v605_v2 = vld [vmem:[%s724_s1 + $0x38] sm:$0xff]  ;;  %371 = vmatpush.bf16.msra.mxu2 %v609_v1  ;;  %v604_v5 = vld [vmem:[%s724_s1 + $0x30] sm:$0xff]  ;;  %s195_s6 = scalar_lea.vmem %s723_s0, %s526_s29  ;;  %v603_v9 = vld [vmem:[%s724_s1 + $0x28] sm:$0xff]  ;;  %vm222_vm3 = vsmask.f32 4352  ;;  %vm273_vm6 = vcmask 523264   ;;  %s203_s30 = scalar_lea.vmem %s727_s4, %s526_s29 }
   0xe   : > { %281 = vmatpush.bf16.msra.mxu0 %v605_v2  ;;  %v205_v8 = vld [vmem:[%s195_s6] sm:$0xf]  ;;  %vm219_vm4 = vmand %vm217_vm0, %vm218_vm1  ;;  %s527_s23 = sshll.u32 %s729_s16, 3  ;;  %vm395_vm7 = vcmask 517120   ;;  %vm428_vm8 = vcmask 1041409   ;;  %vm430_vm9 = vcmask 1042434  }
   0xf   : > { %v207_v10 = vunpack.c.l.b16 %v205_v8  ;;  %v598_v12 = vld [vmem:[%s724_s1] sm:$0xff]  ;;  %vm223_vm5 = vmand %vm221_vm2, %vm222_vm3  ;;  %s199_s26 = scalar_lea.vmem %s726_s3, %s527_s23  ;;  %vm432_vm10 = vcmask 1043459   ;;  %vm435_vm11 = vcmask 519168  }
  0x10   : > { %321 = vmatpush.bf16.msra.mxu1 %v600_v3  ;;  %v606_v13 = vld [vmem:[%s724_s1 + $0x40] sm:$0xff] }
  0x11   : > { %372 = vmatpush.bf16.msra.mxu2 %v608_v4  ;;  %v208_v11 = vpack.c.b16 %v207_v10, %v207_v10  ;;  %v602_v16 = vld [vmem:[%s724_s1 + $0x20] sm:$0xff] }
  0x12   : > { %282 = vmatpush.bf16.msra.mxu0 %v604_v5  ;;  %v618_v29 = vld [vmem:[%s725_s2] ss:$0 sm:$0xff] }
  0x13   : > { %v210_v14 = vshrl.u32 %v208_v11, 16  ;;  %v213_v15 = vshll.u32 %v208_v11, 16 }
  0x14   : > { %322 = vmatpush.bf16.msra.mxu1 %v599_v6 }
  0x15   : > { %373 = vmatpush.bf16.msra.mxu2 %v607_v7  ;;  %v212_v17 = vrot.slane %v210_v14, 7 }
  0x16   : > { %283 = vmatpush.bf16.msra.mxu0 %v603_v9 }
  0x17   : > { %v215_v18 = vor.u32 %v213_v15, %v212_v17 }
  0x18   : > { %323 = vmatpush.bf16.msra.mxu1 %v598_v12 }
  0x19   : > { %374 = vmatpush.bf16.msra.mxu2 %v606_v13  ;;  %v220_v19 = vsel %vm219_vm4, 0, %v215_v18 }
  0x1a   : > { %284 = vmatpush.bf16.msra.mxu0 %v602_v16  ;;  %v224_v20 = vsel %vm223_vm5, %v220_v19, 0 }
  0x1b   : > { %570 = vmatmul.msk.bf16.vlgmr.msra.gmra.mxu1 %vm273_vm6, %v224_v20  ;;  %v339_v21 = vrot.slane %v224_v20, 1  ;;  %v243_v22 = vshrl.u32 %v224_v20, 16  ;;  %v245_v23 = vshll.u32 %v224_v20, 16 }
  0x1d   : > { %595 = vmatmul.msk.bf16.vlgmr.msra.gmra.mxu2 %vm273_vm6, %v339_v21  ;;  %v247_v24 = vrot.slane %v245_v23, 1 }
  0x1f   : > { %v248_v25 = vor.u32 %v247_v24, %v243_v22 }
  0x21   : > { %553 = vmatmul.msk.bf16.vlgmr.msra.gmra.mxu0 %vm273_vm6, %v248_v25 }
  0x98   : > { %v325_v26 = vpop.f32.mrf.mxu1 }
  0x9e   : > { %v286_v27 = vpop.f32.mrf.mxu0 }
  0x9f   : > { %v326_v28 = vadd.f32 %v325_v26, %v286_v27 }
  0xa0   : > { %v327_v30 = vpop.f32.mrf.mxu1  ;;  %v376_v31 = vpop.f32.mrf.mxu2 }
  0xa1   : > { %v380_v32 = vadd.f32 %v376_v31, %v326_v28 }
  0xa3   : > { %v385_v33 = vadd.f32 %v618_v29, %v380_v32 }
  0xa5   : > { %v386_v34 = vmax.f32 %v385_v33, 0.0 }
  0xa6   : > { %v288_v35 = vpop.f32.mrf.mxu0 }
  0xa7   : > { %387 = vst.msk [vmem:[%s199_s26] sm:$0xff] %vm273_vm6, %v386_v34  ;;  %v389_v36 = vrot.slane %v386_v34, 2  ;;  %v390_v37 = vrot.slane %v386_v34, 4  ;;  %v391_v38 = vrot.slane %v386_v34, 6  ;;  %v396_v39 = vsel %vm395_vm7, %v386_v34, -inf }
  0xa8   : > { %v397_v40 = vrot.slane %v396_v39, 4  ;;  %v378_v41 = vpop.f32.mrf.mxu2 }
  0xa9   : > { %v403_v42 = vsel %vm395_vm7, %v389_v36, -inf  ;;  %v410_v43 = vsel %vm395_vm7, %v390_v37, -inf  ;;  %v417_v44 = vsel %vm395_vm7, %v391_v38, -inf }
  0xaa   : > { %v398_v45 = vmax.f32 %v396_v39, %v397_v40  ;;  %v404_v46 = vrot.slane %v403_v42, 4  ;;  %v411_v47 = vrot.slane %v410_v43, 4  ;;  %v418_v48 = vrot.slane %v417_v44, 4 }
  0xac   : > { %v399_v49 = vrot.slane %v398_v45, 2  ;;  %v405_v50 = vmax.f32 %v403_v42, %v404_v46  ;;  %v412_v51 = vmax.f32 %v410_v43, %v411_v47  ;;  %v419_v52 = vmax.f32 %v417_v44, %v418_v48 }
  0xae   : > { %v400_v53 = vmax.f32 %v398_v45, %v399_v49  ;;  %v406_v54 = vrot.slane %v405_v50, 2  ;;  %v413_v55 = vrot.slane %v412_v51, 2  ;;  %v420_v56 = vrot.slane %v419_v52, 2 }
  0xb0   : > { %v401_v57 = vrot.slane %v400_v53, 1  ;;  %v407_v58 = vmax.f32 %v405_v50, %v406_v54  ;;  %v414_v59 = vmax.f32 %v412_v51, %v413_v55  ;;  %v421_v60 = vmax.f32 %v419_v52, %v420_v56 }
  0xb2   : > { %v408_v61 = vrot.slane %v407_v58, 1  ;;  %v415_v62 = vrot.slane %v414_v59, 1  ;;  %v422_v63 = vrot.slane %v421_v60, 1  ;;  %v402_v0 = vmax.f32 %v400_v53, %v401_v57 }
  0xb4   : > { %v409_v1 = vmax.f32 %v407_v58, %v408_v61  ;;  %v416_v2 = vmax.f32 %v414_v59, %v415_v62  ;;  %v423_v3 = vmax.f32 %v421_v60, %v422_v63 }
  0xb6   : > { %v429_v4 = vsel %vm428_vm8, %v409_v1, %v402_v0 }
  0xb7   : > { %v431_v5 = vsel %vm430_vm9, %v416_v2, %v429_v4 }
  0xb8   : > { %v433_v6 = vsel %vm432_vm10, %v423_v3, %v431_v5 }
  0xb9   : > { %436 = vst.msk [vmem:[%s203_s30] sm:$0xf] %vm435_vm11, %v433_v6 }
  0xba PF: > { %s15_s15 = sadd.s32 1, %s625_s15  }
  0xbb   : > { %p12_p4 = scmp.ge.s32.totalorder %s15_s15, 4  }
  0xbd   :  { %14 = sbr.rel (!%p12_p4) target bundleno = 1 (0x1), region = 76 }

// kernel: _lambda_.25
= control target key start
LH: loop header
LB: loop body
LE: loop exit
PB: predicated region body
PF: predicated region fallthrough
CT: control target
= control target key end

     0   :  { %vm73_vm0 = vcmask 523264   ;;  %vm104_vm1 = vcmask 519168   ;;  %s262_s1 = inlined_call_operand.vmem [shape: bf16[64,192], index: 1, kind: input, shape index: {}]   ;;  %s263_s0 = inlined_call_operand.vmem [shape: bf16[8,64], index: 0, kind: input, shape index: {}]   ;;  %s264_s2 = inlined_call_operand.vmem [shape: f32[1,192], index: 2, kind: input, shape index: {}]   ;;  %s265_s3 = inlined_call_operand.vmem [shape: bf16[8,64], index: 3, kind: output, shape index: {0}]   ;;  %s266_s5 = inlined_call_operand.vmem [shape: bf16[8,64], index: 5, kind: output, shape index: {2}]   ;;  %s267_s4 = inlined_call_operand.vmem [shape: bf16[8,64], index: 4, kind: output, shape index: {1}]  }
   0x1   :  { %v151_v0 = vld [vmem:[%s262_s1 + $0x30] sm:$0xf]  ;;  %v166_v1 = vld [vmem:[%s262_s1 + $0x34] sm:$0xf0]  ;;  %v143_v2 = vld [vmem:[%s262_s1 + $0x20] sm:$0xf] }
   0x2   :  { %v152_v3 = vor.u32 %v166_v1, %v151_v0  ;;  %v164_v4 = vld [vmem:[%s262_s1 + $0x24] sm:$0xf0]  ;;  %v165_v6 = vld [vmem:[%s262_s1 + $0x34] sm:$0xf]  ;;  %v153_v7 = vld [vmem:[%s262_s1 + $0x38] sm:$0xf0] }
   0x3   :  { %v144_v5 = vor.u32 %v164_v4, %v143_v2  ;;  %v163_v8 = vld [vmem:[%s262_s1 + $0x24] sm:$0xf]  ;;  %v135_v9 = vld [vmem:[%s262_s1 + $0x10] sm:$0xf]  ;;  %v162_v10 = vld [vmem:[%s262_s1 + $0x14] sm:$0xf0]  ;;  %v156_v11 = vor.u32 %v165_v6, %v153_v7 }
   0x4   :  { %81 = vmatpush.bf16.msra.mxu0 %v152_v3  ;;  %v145_v12 = vld [vmem:[%s262_s1 + $0x28] sm:$0xf0]  ;;  %v136_v14 = vor.u32 %v162_v10, %v135_v9  ;;  %v161_v15 = vld [vmem:[%s262_s1 + $0x14] sm:$0xf]  ;;  %v137_v16 = vld [vmem:[%s262_s1 + $0x18] sm:$0xf0] }
   0x5   :  { %94 = vmatpush.bf16.msra.mxu1 %v156_v11  ;;  %v148_v13 = vor.u32 %v163_v8, %v145_v12  ;;  %v127_v17 = vld [vmem:[%s262_s1] sm:$0xf]  ;;  %v160_v18 = vld [vmem:[%s262_s1 + $0x4] sm:$0xf0]  ;;  %v140_v19 = vor.u32 %v161_v15, %v137_v16  ;;  %v159_v21 = vld [vmem:[%s262_s1 + $0x4] sm:$0xf] }
   0x6   :  { %v128_v20 = vor.u32 %v160_v18, %v127_v17  ;;  %v129_v22 = vld [vmem:[%s262_s1 + $0x8] sm:$0xf0]  ;;  %v18_v24 = vld [vmem:[%s263_s0] sm:$0xf]  ;;  %s168_s1 = smov 64  }
   0x7   :  { %v132_v23 = vor.u32 %v159_v21, %v129_v22  ;;  %v27_v25 = vld [vmem:[%s264_s2] sm:$0x3] }
   0x8   :  { %82 = vmatpush.bf16.msra.mxu0 %v144_v5  ;;  %v29_v26 = vperm.slane %v27_v25, 0  ;;  %v30_v28 = vperm.slane %v27_v25, 1 }
   0x9   :  { %95 = vmatpush.bf16.msra.mxu1 %v148_v13 }
   0xc   :  { %83 = vmatpush.bf16.msra.mxu0 %v136_v14 }
   0xd   :  { %96 = vmatpush.bf16.msra.mxu1 %v140_v19 }
  0x10   :  { %84 = vmatpush.bf16.msra.mxu0 %v128_v20 }
  0x11   :  { %97 = vmatpush.bf16.msra.mxu1 %v132_v23 }
  0x13   :  { %157 = vmatmul.msk.bf16.vlgmr.msra.gmra.mxu0 %vm73_vm0, %v18_v24 }
  0x14   :  { %158 = vmatmul.msk.bf16.vlgmr.msra.gmra.mxu1 %vm73_vm0, %v18_v24 }
  0x90   :  { %v86_v27 = vpop.f32.mrf.mxu0 }
  0x91   :  { %v87_v29 = vadd.f32 %v86_v27, %v29_v26  ;;  %v99_v31 = vpop.f32.mrf.mxu1 }
  0x92   :  { %v100_v32 = vadd.f32 %v99_v31, %v30_v28 }
  0x93   :  { %v103_v30 = vpack.c.bf16 %v87_v29, %v87_v29 }
  0x94   :  { %v111_v33 = vpack.c.bf16 %v100_v32, %v100_v32 }
  0x95   :  { %107 = vrot.lane.b32.xlu0 %v103_v30, %s168_s1  ;;  %105 = vst.msk [vmem:[%s265_s3] sm:$0xf] %vm104_vm1, %v103_v30 }
  0x96   :  { %112 = vst.msk [vmem:[%s266_s5] sm:$0xf] %vm104_vm1, %v111_v33 }
  0x98   :  { %v88_v34 = vpop.f32.mrf.mxu0 }
  0x99   :  { %v101_v35 = vpop.f32.mrf.mxu1 }
 0x107   :  { %v108_v36 = vpop.permute.xlu0 %107 }
 0x108   :  { %110 = vst.msk [vmem:[%s267_s4] sm:$0xf] %vm104_vm1, %v108_v36 }

// kernel: _lambda_.27
= control target key start
LH: loop header
LB: loop body
LE: loop exit
PB: predicated region body
PF: predicated region fallthrough
CT: control target
= control target key end

     0   :  { %vm61_vm0 = vcmask 523264   ;;  %v153_v12 = vmov 64.0   ;;  %s223_s2 = inlined_call_operand.vmem [shape: bf16[64,64], index: 2, kind: input, shape index: {}]   ;;  %s224_s3 = inlined_call_operand.vmem [shape: f32[1,64], index: 3, kind: input, shape index: {}]   ;;  %s225_s0 = inlined_call_operand.vmem [shape: bf16[8,64], index: 0, kind: input, shape index: {}]   ;;  %s226_s1 = inlined_call_operand.vmem [shape: f32[8,64], index: 1, kind: input, shape index: {}]   ;;  %s227_s4 = inlined_call_operand.vmem [shape: f32[1,64], index: 4, kind: input, shape index: {}]   ;;  %s228_s5 = inlined_call_operand.vmem [shape: f32[1,64], index: 5, kind: input, shape index: {}]   ;;  %s229_s6 = inlined_call_operand.vmem [shape: f32[8,64], index: 6, kind: output, shape index: {}]  }
   0x1   :  { %v144_v0 = vld [vmem:[%s223_s2 + $0x18] sm:$0xff]  ;;  %v143_v1 = vld [vmem:[%s223_s2 + $0x10] sm:$0xff]  ;;  %v142_v2 = vld [vmem:[%s223_s2 + $0x8] sm:$0xff]  ;;  %149 = vrcp.f32 %v153_v12 }
   0x2   :  { %69 = vmatpush.bf16.msra.mxu0 %v144_v0  ;;  %v141_v3 = vld [vmem:[%s223_s2] sm:$0xff] }
   0x3   :  { %v24_v4 = vld [vmem:[%s225_s0] sm:$0xf] }
   0x4   :  { %v146_v5 = vld [vmem:[%s224_s3] ss:$0 sm:$0xff] }
   0x5   :  { %v78_v7 = vld [vmem:[%s226_s1] sm:$0xff] }
   0x6   :  { %70 = vmatpush.bf16.msra.mxu0 %v143_v1  ;;  %v147_v33 = vld [vmem:[%s227_s4] ss:$0 sm:$0xff] }
   0x7   :  { %v150_v13 = vpop.eup %149  ;;  %v148_v35 = vld [vmem:[%s228_s5] ss:$0 sm:$0xff] }
   0x8   :  { %v84_v14 = vmul.f32 64.0, %v150_v13  ;;  %vm88_vm1 = vweird.f32 %v150_v13 }
   0xa   :  { %71 = vmatpush.bf16.msra.mxu0 %v142_v2  ;;  %v85_v15 = vsub.f32 1.0, %v84_v14 }
   0xc   :  { %v86_v16 = vmul.f32 %v150_v13, %v85_v15 }
   0xe   :  { %72 = vmatpush.bf16.msra.mxu0 %v141_v3  ;;  %v87_v17 = vadd.f32 %v150_v13, %v86_v16 }
  0x10   :  { %v89_v18 = vsel %vm88_vm1, %v150_v13, %v87_v17 }
  0x11   :  { %140 = vmatmul.msk.bf16.vlgmr.msra.gmra.mxu0 %vm61_vm0, %v24_v4 }
  0x8e   :  { %v74_v6 = vpop.f32.mrf.mxu0 }
  0x8f   :  { %v75_v8 = vadd.f32 %v146_v5, %v74_v6 }
  0x91   :  { %v79_v9 = vadd.f32 %v78_v7, %v75_v8 }
  0x93   :  { %v80_v10 = vsel %vm61_vm0, %v79_v9, 0.0 }
  0x94   :  { %81 = vadd.xlane.f32.xlu0 %v80_v10 }
  0x96   :  { %v76_v11 = vpop.f32.mrf.mxu0 }
 0x107   :  { %v82_v19 = vpop.xlane.xlu0 %81 }
 0x108   :  { %v90_v20 = vmul.f32 %v89_v18, %v82_v19 }
 0x10a   :  { %v91_v21 = vsub.f32 %v79_v9, %v90_v20 }
 0x10c   :  { %v92_v22 = vmul.f32 %v91_v21, %v91_v21 }
 0x10e   :  { %v93_v23 = vsel %vm61_vm0, %v92_v22, 0.0 }
 0x10f   :  { %94 = vadd.xlane.f32.xlu0 %v93_v23 }
 0x182   :  { %v95_v24 = vpop.xlane.xlu0 %94 }
 0x183   :  { %v96_v25 = vmul.f32 %v95_v24, %v89_v18 }
 0x185   :  { %v97_v26 = vadd.f32 1e-05, %v96_v25 }
 0x187   :  { %151 = vrsqrt.f32 %v97_v26  ;;  %vm104_vm3 = vweird.f32 %v97_v26 }
 0x18d   :  { %v152_v27 = vpop.eup %151 }
 0x18e   :  { %v99_v28 = vmul.f32 %v152_v27, %v97_v26  ;;  %vm105_vm2 = vweird.f32 %v152_v27 }
 0x18f   :  { %vm106_vm4 = vmor %vm104_vm3, %vm105_vm2 }
 0x190   :  { %v100_v29 = vmul.f32 %v152_v27, %v99_v28 }
 0x192   :  { %v101_v30 = vmul.f32 0.5, %v100_v29 }
 0x194   :  { %v102_v31 = vsub.f32 1.5, %v101_v30 }
 0x196   :  { %v103_v32 = vmul.f32 %v152_v27, %v102_v31 }
 0x198   :  { %v107_v34 = vsel %vm106_vm4, %v152_v27, %v103_v32 }
 0x199   :  { %v108_v36 = vmul.f32 %v107_v34, %v91_v21 }
 0x19b   :  { %v113_v37 = vmul.f32 %v147_v33, %v108_v36 }
 0x19d   :  { %v118_v38 = vadd.f32 %v148_v35, %v113_v37 }
 0x19f   :  { %119 = vst.msk [vmem:[%s229_s6] sm:$0xff] %vm61_vm0, %v118_v38 }

// kernel: _lambda_.26
= control target key start
LH: loop header
LB: loop body
LE: loop exit
PB: predicated region body
PF: predicated region fallthrough
CT: control target
= control target key end

     0   :  { %s714_s12 = smov 0   ;;  %s716_s13 = smov 0   ;;  %s793_s0 = inlined_call_operand.vmem [shape: bf16[2,4,64], index: 0, kind: input, shape index: {}]   ;;  %s794_s1 = inlined_call_operand.vmem [shape: bf16[2,4,64], index: 1, kind: input, shape index: {}]   ;;  %s795_s2 = inlined_call_operand.vmem [shape: bf16[2,4,64], index: 2, kind: input, shape index: {}]   ;;  %s796_s3 = inlined_call_operand.vmem [shape: bf16[2,4,64], index: 3, kind: output, shape index: {}]  }
   0x1   :  { %s718_s14 = smov 0  }
   0x2 LB: > { %s25_s15 = sadd.s32 1, %s682_s13  ;;  %p603_p0 = scmp.ge.s32.totalorder %s686_s14, 1  ;;  %s686_s14 = sphi %s718_s14, %s13_s14   ;;  %s682_s13 = sphi %s716_s13, %s798_s13   ;;  %s678_s12 = sphi %s714_s12, %s797_s12  }
   0x3   : > { %p27_p1 = scmp.ge.s32.totalorder %s25_s15, 2  ;;  %p173_p2 = scmp.lt.s32.totalorder %s686_s14, 3 }
   0x5   : > { %s800_s15 = smov (%p27_p1, %s25_s15), 0  ;;  %p174_p3 = pnand %p603_p0, %p173_p2 }
   0x6   : > { %p209_p4 = scmp.lt.s32.totalorder (!%p174_p3), %s678_s12, 1  ;;  %s688_s26 = smov (!%p174_p3), 112  }
   0x7   : > { %177 = sbr.rel (%p174_p3) target bundleno = 826 (0x33a), region = 32  ;;  %s689_s27 = smov (!%p174_p3), 96  }
   0x8   : > { %s690_s28 = smov (!%p174_p3), 80   ;;  %s691_s29 = smov (!%p174_p3), 16  }
   0x9   : > { %s692_s30 = smov (!%p174_p3), 48   ;;  %s693_s4 = smov (!%p174_p3), 32  }
   0xc   : > { %s802_s12 = smov (!%p209_p4, %s678_s12), 1  ;;  %vm238_vm0 = vcmask 130048   ;;  %vm258_vm1 = vcmask 27648   ;;  %vm273_vm2 = vcmask 1041408   ;;  %vm269_vm3 = vcmask 31744  }
   0xd   : > { %s732_s16 = sshll.u32 %s802_s12, 1  ;;  %vm494_vm4 = vcmask 261120   ;;  %vm496_vm5 = vcmask 392192   ;;  %vm499_vm6 = vcmask 517120  }
   0xe   : > { %s219_s19 = scalar_lea.vmem %s794_s1, %s732_s16  ;;  %s215_s22 = scalar_lea.vmem %s793_s0, %s732_s16 }
   0xf   : > { %v236_v0 = vld [vmem:[%s219_s19] sm:$0x3]  ;;  %s223_s25 = scalar_lea.vmem %s795_s2, %s732_s16  ;;  %s230_s7 = scalar_lea.vmem %s796_s3, %s732_s16 }
  0x10   : > { %v243_v1 = vsel %vm238_vm0, %v236_v0, 0  ;;  %297 = vst [vmem:[#allocation1] ss:$4 sm:$0xff] %v236_v0  ;;  %v232_v2 = vld [vmem:[%s215_s22] sm:$0x3] }
  0x11   : > { %252 = vmatpush.bf16.xpose.msra.mxu0 %v243_v1  ;;  %v233_v3 = vunpack.c.l.bf16 %v232_v2  ;;  %v237_v5 = vld [vmem:[%s223_s25] sm:$0x3] }
  0x12   : > { %v275_v22 = vsel %vm273_vm2, %v237_v5, 0 }
  0x13   : > { %v234_v4 = vmul.f32 0.25, %v233_v3  ;;  %284 = vmatpush.bf16.msra.mxu1 %v275_v22 }
  0x15   : > { %v235_v6 = vpack.c.bf16 %v234_v4, %v234_v4 }
  0x17   : > { %v298_v7 = vld.sshfl [vmem:[#allocation1] sm:$0xff pattern:$0x73625140]  ;;  %v293_v8 = vunpack.c.l.b16 %v235_v6 }
  0x18   : > { %331 = vst [vmem:[#allocation1] ss:$4 sm:$0xff] %v237_v5  ;;  %608 = vmatmul.msk.bf16.vlgmr.msra.gmra.mxu0 %vm238_vm0, %v235_v6 }
  0x19   : > { %v294_v9 = vpack.c.b16 %v293_v8, %v293_v8 }
  0x1b   : > { %295 = vrot.lane.b32.xlu1 %v294_v9, %s688_s26 }
  0x1f   : > { %v332_v10 = vld.sshfl [vmem:[#allocation1] sm:$0xff pattern:$0x73625140] }
  0x20   : > { %359 = vst [vmem:[#allocation1] ss:$4 sm:$0xff] %v236_v0 }
  0x27   : > { %v360_v11 = vld.sshfl [vmem:[#allocation1] sm:$0xff pattern:$0x73625140] }
  0x28   : > { %393 = vst [vmem:[#allocation1] ss:$4 sm:$0xff] %v237_v5  ;;  %362 = vrot.lane.b32.xlu1 %v360_v11, %s689_s27 }
  0x2f   : > { %v394_v12 = vld.sshfl [vmem:[#allocation1] sm:$0xff pattern:$0x73625140] }
  0x30   : > { %421 = vst [vmem:[#allocation1] ss:$4 sm:$0xff] %v236_v0  ;;  %419 = vrot.lane.b32.xlu1 %v294_v9, %s690_s28 }
  0x37   : > { %v422_v13 = vld.sshfl [vmem:[#allocation1] sm:$0xff pattern:$0x73625140] }
  0x38   : > { %424 = vrot.lane.b32.xlu2 %v422_v13, %s690_s28  ;;  %455 = vst [vmem:[#allocation1] ss:$4 sm:$0xff] %v237_v5  ;;  %334 = vrot.lane.b32.xlu1 %v332_v10, %s688_s26 }
  0x3f   : > { %v456_v43 = vld.sshfl [vmem:[#allocation1] sm:$0xff pattern:$0x73625140] }
  0x40   : > { %357 = vrot.lane.b32.xlu2 %v294_v9, %s689_s27 }
  0x8d   : > { %v296_v14 = vpop.permute.xlu1 %295 }
  0x92   : > { %v425_v15 = vpop.permute.xlu2 %424 }
  0x93   : > { %v430_v16 = vsel %vm238_vm0, %v425_v15, 0 }
  0x94   : > { %439 = vmatpush.bf16.xpose.msrb.mxu0 %v430_v16 }
  0x95   : > { %v254_v17 = vpop.f32.mrf.mxu0 }
  0x96   : > { %v259_v18 = vsel %vm258_vm1, %v254_v17, -inf }
  0x97   : > { %260 = vmax.xlane.f32.xlu0 %v259_v18 }
  0x9a   : > { %v363_v19 = vpop.permute.xlu1 %362  ;;  %v358_v33 = vpop.permute.xlu2 %357 }
  0x9b   : > { %v368_v23 = vsel %vm238_vm0, %v363_v19, 0 }
  0x9c   : > { %377 = vmatpush.bf16.xpose.msrb.mxu1 %v368_v23 }
  0x9d   : > { %v256_v20 = vpop.f32.mrf.mxu0 }
  0xa2   : > { %v420_v21 = vpop.permute.xlu1 %419 }
  0xa3   : > { %614 = vmatmul.msk.bf16.vlgmr.msrb.gmra.mxu0 %vm238_vm0, %v420_v21 }
  0xaa   : > { %v335_v45 = vpop.permute.xlu1 %334 }
  0xab   : > { %300 = vrot.lane.b32.xlu0 %v298_v7, %s688_s26  ;;  %v340_v46 = vsel %vm273_vm2, %v335_v45, 0 }
  0xac   : > { %349 = vmatpush.bf16.msra.mxu3 %v340_v46 }
 0x10a   : > { %v261_v24 = vpop.xlane.xlu0 %260 }
 0x10b   : > { %v262_v25 = vsub.f32 %v254_v17, %v261_v24 }
 0x10d   : > { %v263_v26 = vmul.f32 1.442695, %v262_v25 }
 0x10f   : > { %648 = vpow2.f32 %v263_v26 }
 0x115   : > { %v649_v27 = vpop.eup %648 }
 0x116   : > { %v268_v28 = vpack.c.bf16 %v649_v27, %v649_v27  ;;  %v265_v44 = vsel %vm258_vm1, %v649_v27, 0.0 }
 0x118   : > { %609 = vmatmul.msk.bf16.vlgmr.msra.gmra.mxu1 %vm269_vm3, %v268_v28 }
 0x11d   : > { %v301_v29 = vpop.permute.xlu0 %300 }
 0x11e   : > { %v306_v30 = vsel %vm238_vm0, %v301_v29, 0 }
 0x11f   : > { %315 = vmatpush.bf16.xpose.msra.mxu2 %v306_v30 }
 0x120   : > { %v441_v31 = vpop.f32.mrf.mxu0 }
 0x121   : > { %v445_v32 = vsel %vm258_vm1, %v441_v31, -inf }
 0x122   : > { %446 = vmax.xlane.f32.xlu1 %v445_v32 }
 0x126   : > { %610 = vmatmul.msk.bf16.vlgmr.msra.gmra.mxu2 %vm238_vm0, %v296_v14 }
 0x128   : > { %612 = vmatmul.msk.bf16.vlgmr.msrb.gmra.mxu1 %vm238_vm0, %v358_v33  ;;  %v443_v34 = vpop.f32.mrf.mxu0 }
 0x195   : > { %v762_v35 = vpop.f32.mrf.mxu1  ;;  %v447_v49 = vpop.xlane.xlu1 %446 }
 0x196   : > { %v448_v52 = vsub.f32 %v441_v31, %v447_v49 }
 0x198   : > { %v449_v55 = vmul.f32 1.442695, %v448_v52 }
 0x19d   : > { %v288_v36 = vpop.f32.mrf.mxu1 }
 0x1a5   : > { %v379_v37 = vpop.f32.mrf.mxu1 }
 0x1a6   : > { %v383_v38 = vsel %vm258_vm1, %v379_v37, -inf }
 0x1a7   : > { %384 = vmax.xlane.f32.xlu0 %v383_v38 }
 0x1a9   : > { %v317_v39 = vpop.f32.mrf.mxu2 }
 0x1aa   : > { %v321_v40 = vsel %vm258_vm1, %v317_v39, -inf }
 0x1ab   : > { %322 = vmax.xlane.f32.xlu2 %v321_v40 }
 0x1ad   : > { %v381_v41 = vpop.f32.mrf.mxu1 }
 0x1b1   : > { %v319_v42 = vpop.f32.mrf.mxu2 }
 0x1bb   : > { %458 = vrot.lane.b32.xlu0 %v456_v43, %s690_s28 }
 0x1c3   : > { %396 = vrot.lane.b32.xlu2 %v394_v12, %s689_s27 }
 0x1e5   : > { %266 = vadd.xlane.f32.xlu0 %v265_v44 }
 0x21a   : > { %v385_v47 = vpop.xlane.xlu0 %384 }
 0x21b   : > { %v386_v48 = vsub.f32 %v379_v37, %v385_v47 }
 0x21d   : > { %v387_v50 = vmul.f32 1.442695, %v386_v48 }
 0x21e   : > { %v323_v51 = vpop.xlane.xlu2 %322 }
 0x21f   : > { %650 = vpow2.f32 %v387_v50  ;;  %v324_v53 = vsub.f32 %v317_v39, %v323_v51 }
 0x221   : > { %v325_v54 = vmul.f32 1.442695, %v324_v53 }
 0x223   : > { %652 = vpow2.f32 %v325_v54 }
 0x224   : > { %654 = vpow2.f32 %v449_v55 }
 0x225   : > { %v651_v56 = vpop.eup %650 }
 0x226   : > { %v389_v57 = vsel %vm258_vm1, %v651_v56, 0.0  ;;  %v397_v58 = vpop.permute.xlu2 %396  ;;  %v392_v4 = vpack.c.bf16 %v651_v56, %v651_v56 }
 0x227   : > { %390 = vadd.xlane.f32.xlu2 %v389_v57  ;;  %v402_v59 = vsel %vm273_vm2, %v397_v58, 0 }
 0x228   : > { %411 = vmatpush.bf16.msrb.mxu3 %v402_v59 }
 0x229   : > { %v653_v60 = vpop.eup %652 }
 0x22a   : > { %v327_v61 = vsel %vm258_vm1, %v653_v60, 0.0  ;;  %v330_v62 = vpack.c.bf16 %v653_v60, %v653_v60  ;;  %v655_v63 = vpop.eup %654 }
 0x22b   : > { %328 = vadd.xlane.f32.xlu1 %v327_v61  ;;  %v454_v2 = vpack.c.bf16 %v655_v63, %v655_v63  ;;  %v451_v3 = vsel %vm258_vm1, %v655_v63, 0.0 }
 0x22c   : > { %611 = vmatmul.msk.bf16.vlgmr.msra.gmra.mxu3 %vm269_vm3, %v330_v62 }
 0x22d   : > { %v459_v0 = vpop.permute.xlu0 %458 }
 0x22e   : > { %v464_v1 = vsel %vm273_vm2, %v459_v0, 0 }
 0x22f   : > { %473 = vmatpush.bf16.msrb.mxu2 %v464_v1 }
 0x232   : > { %615 = vmatmul.msk.bf16.vlgmr.msrb.gmra.mxu2 %vm269_vm3, %v454_v2 }
 0x233   : > { %452 = vadd.xlane.f32.xlu1 %v451_v3 }
 0x23c   : > { %613 = vmatmul.msk.bf16.vlgmr.msrb.gmra.mxu3 %vm269_vm3, %v392_v4 }
 0x258   : > { %v267_v20 = vpop.xlane.xlu0 %266 }
 0x29a   : > { %v391_v12 = vpop.xlane.xlu2 %390 }
 0x29e   : > { %v329_v5 = vpop.xlane.xlu1 %328 }
 0x29f   : > { %656 = vrcp.f32 %v329_v5 }
 0x2a5   : > { %v657_v7 = vpop.eup %656 }
 0x2a6   : > { %v453_v6 = vpop.xlane.xlu1 %452 }
 0x2a7   : > { %658 = vrcp.f32 %v453_v6 }
 0x2a8   : > { %660 = vrcp.f32 %v391_v12 }
 0x2a9   : > { %662 = vrcp.f32 %v267_v20 }
 0x2ad   : > { %v659_v10 = vpop.eup %658 }
 0x2ae   : > { %v661_v16 = vpop.eup %660 }
 0x2af   : > { %v351_v8 = vpop.f32.mrf.mxu3  ;;  %v663_v22 = vpop.eup %662 }
 0x2b0   : > { %v356_v9 = vmul.f32 %v657_v7, %v351_v8  ;;  %v291_v23 = vmul.f32 %v663_v22, %v762_v35 }
 0x2b2   : > { %482 = vrot.lane.b32.xlu1 %v356_v9, %s691_s29 }
 0x2b5   : > { %v475_v11 = vpop.f32.mrf.mxu2 }
 0x2b6   : > { %v480_v13 = vmul.f32 %v659_v10, %v475_v11 }
 0x2b7   : > { %v353_v14 = vpop.f32.mrf.mxu3 }
 0x2b8   : > { %490 = vrot.lane.b32.xlu2 %v480_v13, %s692_s30 }
 0x2bd   : > { %v477_v15 = vpop.f32.mrf.mxu2 }
 0x2bf   : > { %v413_v17 = vpop.f32.mrf.mxu3 }
 0x2c0   : > { %v418_v18 = vmul.f32 %v661_v16, %v413_v17 }
 0x2c2   : > { %486 = vrot.lane.b32.xlu1 %v418_v18, %s693_s4 }
 0x2c7   : > { %v415_v19 = vpop.f32.mrf.mxu3 }
 0x312   : > { %v491_v26 = vpop.permute.xlu2 %490 }
 0x324   : > { %v483_v21 = vpop.permute.xlu1 %482 }
 0x325   : > { %v493_v24 = vsel %vm238_vm0, %v291_v23, %v483_v21 }
 0x334   : > { %v487_v25 = vpop.permute.xlu1 %486 }
 0x335   : > { %v495_v27 = vsel %vm494_vm4, %v493_v24, %v487_v25 }
 0x336   : > { %v497_v28 = vsel %vm496_vm5, %v495_v27, %v491_v26 }
 0x337   : > { %v498_v29 = vpack.c.bf16 %v497_v28, %v497_v28 }
 0x339   : > { %500 = vst.msk [vmem:[%s230_s7] sm:$0x3] %vm499_vm6, %v498_v29 }
 0x33a PF: > { %s13_s14 = sadd.s32 1, %s686_s14   ;;  %s797_s12 = smov %s682_s13 }
 0x33b   : > { %p10_p5 = scmp.ge.s32.totalorder %s13_s14, 4   ;;  %s798_s13 = smov %s800_s15 }
 0x33d   :  { %12 = sbr.rel (!%p10_p5) target bundleno = 2 (0x2), region = 68 }

// kernel: _lambda_.28
= control target key start
LH: loop header
LB: loop body
LE: loop exit
PB: predicated region body
PF: predicated region fallthrough
CT: control target
= control target key end

     0   :  { %vm83_vm0 = vcmask 523264   ;;  %s610_s1 = inlined_call_operand.vmem [shape: bf16[64,256], index: 1, kind: input, shape index: {}]   ;;  %s611_s3 = inlined_call_operand.vmem [shape: bf16[256,64], index: 3, kind: input, shape index: {}]   ;;  %s612_s0 = inlined_call_operand.vmem [shape: f32[8,64], index: 0, kind: input, shape index: {}]   ;;  %s613_s4 = inlined_call_operand.vmem [shape: f32[1,64], index: 4, kind: input, shape index: {}]   ;;  %s614_s2 = inlined_call_operand.vmem [shape: f32[1,256], index: 2, kind: input, shape index: {}]   ;;  %s615_s5 = inlined_call_operand.vmem [shape: f32[1,64], index: 5, kind: input, shape index: {}]   ;;  %s616_s6 = inlined_call_operand.vmem [shape: f32[1,64], index: 6, kind: input, shape index: {}]   ;;  %s617_s7 = inlined_call_operand.vmem [shape: f32[8,64], index: 7, kind: output, shape index: {}]  }
   0x1   :  { %v346_v0 = vld [vmem:[%s610_s1 + $0x30] sm:$0xf]  ;;  %v425_v1 = vld [vmem:[%s610_s1 + $0x34] sm:$0xf0]  ;;  %v424_v2 = vld [vmem:[%s610_s1 + $0x34] sm:$0xf] }
   0x2   :  { %v347_v3 = vor.u32 %v425_v1, %v346_v0  ;;  %v348_v4 = vld [vmem:[%s610_s1 + $0x38] sm:$0xf0]  ;;  %v338_v5 = vld [vmem:[%s610_s1 + $0x20] sm:$0xf]  ;;  %v423_v6 = vld [vmem:[%s610_s1 + $0x24] sm:$0xf0] }
   0x3   :  { %v351_v7 = vor.u32 %v424_v2, %v348_v4  ;;  %v422_v8 = vld [vmem:[%s610_s1 + $0x24] sm:$0xf]  ;;  %v340_v9 = vld [vmem:[%s610_s1 + $0x28] sm:$0xf0]  ;;  %v339_v10 = vor.u32 %v423_v6, %v338_v5  ;;  %v330_v12 = vld [vmem:[%s610_s1 + $0x10] sm:$0xf] }
   0x4   :  { %91 = vmatpush.bf16.msra.mxu0 %v347_v3  ;;  %v343_v11 = vor.u32 %v422_v8, %v340_v9  ;;  %v421_v13 = vld [vmem:[%s610_s1 + $0x14] sm:$0xf0]  ;;  %v420_v14 = vld [vmem:[%s610_s1 + $0x14] sm:$0xf]  ;;  %v332_v15 = vld [vmem:[%s610_s1 + $0x18] sm:$0xf0] }
   0x5   :  { %104 = vmatpush.bf16.msra.mxu1 %v351_v7  ;;  %v433_v16 = vld [vmem:[%s611_s3 + $0x38] sm:$0xff]  ;;  %v331_v18 = vor.u32 %v421_v13, %v330_v12  ;;  %v432_v19 = vld [vmem:[%s611_s3 + $0x30] sm:$0xff]  ;;  %v335_v20 = vor.u32 %v420_v14, %v332_v15  ;;  %v322_v21 = vld [vmem:[%s610_s1] sm:$0xf]  ;;  %v450_v0 = vmov 64.0  }
   0x6   :  { %v441_v17 = vld [vmem:[%s611_s3 + $0x78] sm:$0xff]  ;;  %249 = vmatpush.bf16.msra.mxu2 %v433_v16  ;;  %v419_v22 = vld [vmem:[%s610_s1 + $0x4] sm:$0xf0]  ;;  %v440_v23 = vld [vmem:[%s611_s3 + $0x70] sm:$0xff]  ;;  %446 = vrcp.f32 %v450_v0 }
   0x7   :  { %262 = vmatpush.bf16.msra.mxu3 %v441_v17  ;;  %v418_v24 = vld [vmem:[%s610_s1 + $0x4] sm:$0xf]  ;;  %v324_v25 = vld [vmem:[%s610_s1 + $0x8] sm:$0xf0]  ;;  %v323_v26 = vor.u32 %v419_v22, %v322_v21  ;;  %v429_v34 = vld [vmem:[%s611_s3 + $0x18] sm:$0xff] }
   0x8   :  { %92 = vmatpush.bf16.msra.mxu0 %v339_v10  ;;  %v27_v27 = vld [vmem:[%s612_s0] sm:$0xff]  ;;  %v431_v28 = vld [vmem:[%s611_s3 + $0x28] sm:$0xff]  ;;  %v327_v29 = vor.u32 %v418_v24, %v324_v25  ;;  %v437_v35 = vld [vmem:[%s611_s3 + $0x58] sm:$0xff] }
   0x9   :  { %105 = vmatpush.bf16.msra.mxu1 %v343_v11  ;;  %v439_v30 = vld [vmem:[%s611_s3 + $0x68] sm:$0xff]  ;;  %v28_v31 = vpack.c.bf16 %v27_v27, %v27_v27  ;;  %v430_v32 = vld [vmem:[%s611_s3 + $0x20] sm:$0xff]  ;;  %v428_v36 = vld [vmem:[%s611_s3 + $0x10] sm:$0xff] }
   0xa   :  { %250 = vmatpush.bf16.msra.mxu2 %v432_v19  ;;  %v438_v33 = vld [vmem:[%s611_s3 + $0x60] sm:$0xff]  ;;  %v436_v37 = vld [vmem:[%s611_s3 + $0x50] sm:$0xff]  ;;  %v427_v38 = vld [vmem:[%s611_s3 + $0x8] sm:$0xff] }
   0xb   :  { %263 = vmatpush.bf16.msra.mxu3 %v440_v23  ;;  %v435_v39 = vld [vmem:[%s611_s3 + $0x48] sm:$0xff]  ;;  %v426_v40 = vld [vmem:[%s611_s3] sm:$0xff] }
   0xc   :  { %93 = vmatpush.bf16.msra.mxu0 %v331_v18  ;;  %v434_v41 = vld [vmem:[%s611_s3 + $0x40] sm:$0xff]  ;;  %v447_v1 = vpop.eup %446 }
   0xd   :  { %106 = vmatpush.bf16.msra.mxu1 %v335_v20  ;;  %v37_v42 = vld [vmem:[%s614_s2] sm:$0x3]  ;;  %v280_v2 = vmul.f32 64.0, %v447_v1  ;;  %vm284_vm1 = vweird.f32 %v447_v1 }
   0xe   :  { %251 = vmatpush.bf16.msra.mxu2 %v431_v28  ;;  %v39_v43 = vperm.slane %v37_v42, 0  ;;  %v40_v44 = vperm.slane %v37_v42, 1  ;;  %v443_v55 = vld [vmem:[%s613_s4] ss:$0 sm:$0xff] }
   0xf   :  { %264 = vmatpush.bf16.msra.mxu3 %v439_v30  ;;  %v281_v3 = vsub.f32 1.0, %v280_v2  ;;  %v444_v21 = vld [vmem:[%s615_s5] ss:$0 sm:$0xff] }
  0x10   :  { %94 = vmatpush.bf16.msra.mxu0 %v323_v26  ;;  %v445_v23 = vld [vmem:[%s616_s6] ss:$0 sm:$0xff] }
  0x11   :  { %107 = vmatpush.bf16.msra.mxu1 %v327_v29  ;;  %v282_v4 = vmul.f32 %v447_v1, %v281_v3 }
  0x12   :  { %252 = vmatpush.bf16.msra.mxu2 %v430_v32 }
  0x13   :  { %352 = vmatmul.msk.bf16.vlgmr.msra.gmra.mxu0 %vm83_vm0, %v28_v31  ;;  %265 = vmatpush.bf16.msra.mxu3 %v438_v33  ;;  %v283_v5 = vadd.f32 %v447_v1, %v282_v4 }
  0x14   :  { %353 = vmatmul.msk.bf16.vlgmr.msra.gmra.mxu1 %vm83_vm0, %v28_v31 }
  0x15   :  { %v285_v6 = vsel %vm284_vm1, %v447_v1, %v283_v5 }
  0x16   :  { %253 = vmatpush.bf16.msra.mxu2 %v429_v34 }
  0x17   :  { %266 = vmatpush.bf16.msra.mxu3 %v437_v35 }
  0x1a   :  { %254 = vmatpush.bf16.msra.mxu2 %v428_v36 }
  0x1b   :  { %267 = vmatpush.bf16.msra.mxu3 %v436_v37 }
  0x1e   :  { %255 = vmatpush.bf16.msra.mxu2 %v427_v38 }
  0x1f   :  { %268 = vmatpush.bf16.msra.mxu3 %v435_v39 }
  0x22   :  { %256 = vmatpush.bf16.msra.mxu2 %v426_v40 }
  0x23   :  { %269 = vmatpush.bf16.msra.mxu3 %v434_v41 }
  0x90   :  { %v96_v45 = vpop.f32.mrf.mxu0 }
  0x91   :  { %v97_v46 = vadd.f32 %v96_v45, %v39_v43  ;;  %v109_v47 = vpop.f32.mrf.mxu1 }
  0x92   :  { %v110_v48 = vadd.f32 %v109_v47, %v40_v44 }
  0x93   :  { %v113_v49 = vmax.f32 %v97_v46, 0.0 }
  0x94   :  { %v114_v50 = vmax.f32 %v110_v48, 0.0 }
  0x95   :  { %v115_v51 = vpack.c.bf16 %v113_v49, %v113_v49 }
  0x96   :  { %v116_v52 = vpack.c.bf16 %v114_v50, %v114_v50 }
  0x97   :  { %257 = vmatmul.bf16.vlgmr.msra.gmra.mxu2 %v115_v51 }
  0x98   :  { %270 = vmatmul.bf16.vlgmr.msra.gmra.mxu3 %v116_v52  ;;  %v98_v53 = vpop.f32.mrf.mxu0 }
  0x99   :  { %v111_v54 = vpop.f32.mrf.mxu1 }
 0x11a   :  { %v258_v56 = vpop.f32.mrf.mxu2 }
 0x11b   :  { %v259_v57 = vadd.f32 %v443_v55, %v258_v56  ;;  %v271_v58 = vpop.f32.mrf.mxu3 }
 0x11d   :  { %v272_v59 = vadd.f32 %v271_v58, %v259_v57 }
 0x11f   :  { %v275_v60 = vadd.f32 %v272_v59, %v27_v27 }
 0x121   :  { %v276_v61 = vsel %vm83_vm0, %v275_v60, 0.0 }
 0x122   :  { %v260_v62 = vpop.f32.mrf.mxu2  ;;  %277 = vadd.xlane.f32.xlu0 %v276_v61 }
 0x123   :  { %v273_v63 = vpop.f32.mrf.mxu3 }
 0x195   :  { %v278_v7 = vpop.xlane.xlu0 %277 }
 0x196   :  { %v286_v8 = vmul.f32 %v285_v6, %v278_v7 }
 0x198   :  { %v287_v9 = vsub.f32 %v275_v60, %v286_v8 }
 0x19a   :  { %v288_v10 = vmul.f32 %v287_v9, %v287_v9 }
 0x19c   :  { %v289_v11 = vsel %vm83_vm0, %v288_v10, 0.0 }
 0x19d   :  { %290 = vadd.xlane.f32.xlu0 %v289_v11 }
 0x210   :  { %v291_v12 = vpop.xlane.xlu0 %290 }
 0x211   :  { %v292_v13 = vmul.f32 %v291_v12, %v285_v6 }
 0x213   :  { %v293_v14 = vadd.f32 1e-05, %v292_v13 }
 0x215   :  { %448 = vrsqrt.f32 %v293_v14  ;;  %vm300_vm3 = vweird.f32 %v293_v14 }
 0x21b   :  { %v449_v15 = vpop.eup %448 }
 0x21c   :  { %v295_v16 = vmul.f32 %v449_v15, %v293_v14  ;;  %vm301_vm2 = vweird.f32 %v449_v15 }
 0x21d   :  { %vm302_vm4 = vmor %vm300_vm3, %vm301_vm2 }
 0x21e   :  { %v296_v17 = vmul.f32 %v449_v15, %v295_v16 }
 0x220   :  { %v297_v18 = vmul.f32 0.5, %v296_v17 }
 0x222   :  { %v298_v19 = vsub.f32 1.5, %v297_v18 }
 0x224   :  { %v299_v20 = vmul.f32 %v449_v15, %v298_v19 }
 0x226   :  { %v303_v22 = vsel %vm302_vm4, %v449_v15, %v299_v20 }
 0x227   :  { %v304_v24 = vmul.f32 %v303_v22, %v287_v9 }
 0x229   :  { %v309_v25 = vmul.f32 %v444_v21, %v304_v24 }
 0x22b   :  { %v314_v26 = vadd.f32 %v445_v23, %v309_v25 }
 0x22d   :  { %315 = vst.msk [vmem:[%s617_s7] sm:$0xff] %vm83_vm0, %v314_v26 }

// kernel: _lambda_.29
= control target key start
LH: loop header
LB: loop body
LE: loop exit
PB: predicated region body
PF: predicated region fallthrough
CT: control target
= control target key end

     0   :  { %vm70_vm0 = vcmask 523264   ;;  %s228_s1 = inlined_call_operand.vmem [shape: bf16[64,256], index: 1, kind: input, shape index: {}]   ;;  %s229_s0 = inlined_call_operand.vmem [shape: bf16[8,64], index: 0, kind: input, shape index: {}]   ;;  %s230_s2 = inlined_call_operand.vmem [shape: f32[1,256], index: 2, kind: input, shape index: {}]   ;;  %s231_s3 = inlined_call_operand.vmem [shape: f32[8,256], index: 3, kind: output, shape index: {}]  }
   0x1   :  { %v132_v0 = vld [vmem:[%s228_s1 + $0x30] sm:$0xf]  ;;  %v147_v1 = vld [vmem:[%s228_s1 + $0x34] sm:$0xf0]  ;;  %v146_v2 = vld [vmem:[%s228_s1 + $0x34] sm:$0xf] }
   0x2   :  { %v133_v3 = vor.u32 %v147_v1, %v132_v0  ;;  %v134_v4 = vld [vmem:[%s228_s1 + $0x38] sm:$0xf0]  ;;  %v124_v5 = vld [vmem:[%s228_s1 + $0x20] sm:$0xf]  ;;  %v145_v6 = vld [vmem:[%s228_s1 + $0x24] sm:$0xf0] }
   0x3   :  { %v137_v7 = vor.u32 %v146_v2, %v134_v4  ;;  %v144_v8 = vld [vmem:[%s228_s1 + $0x24] sm:$0xf]  ;;  %v126_v9 = vld [vmem:[%s228_s1 + $0x28] sm:$0xf0]  ;;  %v125_v10 = vor.u32 %v145_v6, %v124_v5  ;;  %v116_v12 = vld [vmem:[%s228_s1 + $0x10] sm:$0xf] }
   0x4   :  { %78 = vmatpush.bf16.msra.mxu0 %v133_v3  ;;  %v129_v11 = vor.u32 %v144_v8, %v126_v9  ;;  %v143_v13 = vld [vmem:[%s228_s1 + $0x14] sm:$0xf0]  ;;  %v142_v14 = vld [vmem:[%s228_s1 + $0x14] sm:$0xf]  ;;  %v118_v15 = vld [vmem:[%s228_s1 + $0x18] sm:$0xf0] }
   0x5   :  { %91 = vmatpush.bf16.msra.mxu1 %v137_v7  ;;  %v117_v16 = vor.u32 %v143_v13, %v116_v12  ;;  %v121_v17 = vor.u32 %v142_v14, %v118_v15  ;;  %v108_v18 = vld [vmem:[%s228_s1] sm:$0xf]  ;;  %v141_v19 = vld [vmem:[%s228_s1 + $0x4] sm:$0xf0]  ;;  %v140_v20 = vld [vmem:[%s228_s1 + $0x4] sm:$0xf] }
   0x6   :  { %v110_v21 = vld [vmem:[%s228_s1 + $0x8] sm:$0xf0]  ;;  %v109_v22 = vor.u32 %v141_v19, %v108_v18  ;;  %v15_v24 = vld [vmem:[%s229_s0] sm:$0xf] }
   0x7   :  { %v113_v23 = vor.u32 %v140_v20, %v110_v21  ;;  %v24_v25 = vld [vmem:[%s230_s2] sm:$0x3] }
   0x8   :  { %79 = vmatpush.bf16.msra.mxu0 %v125_v10  ;;  %v26_v26 = vperm.slane %v24_v25, 0  ;;  %v27_v27 = vperm.slane %v24_v25, 1 }
   0x9   :  { %92 = vmatpush.bf16.msra.mxu1 %v129_v11 }
   0xc   :  { %80 = vmatpush.bf16.msra.mxu0 %v117_v16 }
   0xd   :  { %93 = vmatpush.bf16.msra.mxu1 %v121_v17 }
  0x10   :  { %81 = vmatpush.bf16.msra.mxu0 %v109_v22 }
  0x11   :  { %94 = vmatpush.bf16.msra.mxu1 %v113_v23 }
  0x13   :  { %138 = vmatmul.msk.bf16.vlgmr.msra.gmra.mxu0 %vm70_vm0, %v15_v24 }
  0x14   :  { %139 = vmatmul.msk.bf16.vlgmr.msra.gmra.mxu1 %vm70_vm0, %v15_v24 }
  0x90   :  { %v83_v28 = vpop.f32.mrf.mxu0 }
  0x91   :  { %v84_v29 = vadd.f32 %v83_v28, %v26_v26  ;;  %v96_v30 = vpop.f32.mrf.mxu1 }
  0x92   :  { %v97_v31 = vadd.f32 %v96_v30, %v27_v27 }
  0x93   :  { %100 = vst [vmem:[%s231_s3] sm:$0xff] %v84_v29 }
  0x94   :  { %101 = vst [vmem:[%s231_s3 + $0x8] sm:$0xff] %v97_v31 }
  0x98   :  { %v85_v32 = vpop.f32.mrf.mxu0 }
  0x99   :  { %v98_v33 = vpop.f32.mrf.mxu1 }

// kernel: _lambda_.31
= control target key start
LH: loop header
LB: loop body
LE: loop exit
PB: predicated region body
PF: predicated region fallthrough
CT: control target
= control target key end

     0   :  { %s442_s12 = smov 0   ;;  %s488_s0 = inlined_call_operand.vmem [shape: bf16[2,8,32], index: 0, kind: input, shape index: {}]   ;;  %s489_s1 = inlined_call_operand.vmem [shape: bf16[3,32,32], index: 1, kind: input, shape index: {}]   ;;  %s490_s2 = inlined_call_operand.vmem [shape: f32[1,32], index: 2, kind: input, shape index: {}]   ;;  %s491_s3 = inlined_call_operand.vmem [shape: f32[2,8,32], index: 3, kind: output, shape index: {}]  }
   0x1 LB: > { %s355_s13 = sadd.s32 4294967295, %s420_s12   ;;  %p359_p0 = scmp.ge.s32.totalorder %s420_s12, 1  ;;  %s420_s12 = sphi %s442_s12, %s13_s12  }
   0x2   : > { %p136_p1 = scmp.lt.s32.totalorder %s420_s12, 3 }
   0x4   : > { %p137_p2 = pnand %p359_p0, %p136_p1 }
   0x5   : > { %p158_p3 = scmp.lt.s32.totalorder (!%p137_p2), %s355_s13, 1 }
   0x6   : > { %140 = sbr.rel (%p137_p2) target bundleno = 169 (0xa9), region = 32 }
   0xb   : > { %v400_v0 = vld [vmem:[%s489_s1 + $0x8] sm:$0xff]  ;;  %v402_v2 = vld [vmem:[%s489_s1 + $0x18] sm:$0xff]  ;;  %v399_v3 = vld [vmem:[%s489_s1] sm:$0xff]  ;;  %s493_s13 = smov (!%p158_p3, %s355_s13), 1  ;;  %vm179_vm0 = vcmask 1040384   ;;  %vm183_vm2 = vcmask 1044480  }
   0xc   : > { %v404_v1 = vld [vmem:[%s489_s1 + $0x28] sm:$0xff]  ;;  %252 = vmatpush.bf16.msra.mxu1 %v400_v0  ;;  %v403_v4 = vld [vmem:[%s489_s1 + $0x20] sm:$0xff]  ;;  %225 = vmatpush.bf16.msra.mxu0 %v402_v2  ;;  %v401_v5 = vld [vmem:[%s489_s1 + $0x10] sm:$0xff]  ;;  %s360_s26 = sshll.u32 %s493_s13, 2  ;;  %vm180_vm1 = vsmask.f32 256 }
   0xd   : > { %287 = vmatpush.bf16.msra.mxu2 %v404_v1  ;;  %s161_s29 = scalar_lea.vmem %s488_s0, %s360_s26  ;;  %vm184_vm3 = vsmask.f32 4352  ;;  %vm181_vm4 = vmand %vm179_vm0, %vm180_vm1  ;;  %vm215_vm6 = vcmask 261120   ;;  %v413_v23 = vld [vmem:[%s490_s2] ss:$0 sm:$0xff]  ;;  %s361_s5 = sshll.u32 %s493_s13, 3 }
   0xe   : > { %v167_v6 = vld [vmem:[%s161_s29] sm:$0xf]  ;;  %vm185_vm5 = vmand %vm183_vm2, %vm184_vm3  ;;  %s165_s8 = scalar_lea.vmem %s491_s3, %s361_s5 }
   0xf   : > { %v169_v7 = vunpack.c.l.b16 %v167_v6 }
  0x10   : > { %253 = vmatpush.bf16.msra.mxu1 %v399_v3  ;;  %226 = vmatpush.bf16.msra.mxu0 %v401_v5 }
  0x11   : > { %288 = vmatpush.bf16.msra.mxu2 %v403_v4  ;;  %v170_v8 = vpack.c.b16 %v169_v7, %v169_v7 }
  0x13   : > { %v172_v9 = vshrl.u32 %v170_v8, 16  ;;  %v175_v10 = vshll.u32 %v170_v8, 16 }
  0x15   : > { %v174_v11 = vrot.slane %v172_v9, 7 }
  0x17   : > { %v177_v12 = vor.u32 %v175_v10, %v174_v11 }
  0x19   : > { %v182_v13 = vsel %vm181_vm4, 0, %v177_v12 }
  0x1a   : > { %v186_v14 = vsel %vm185_vm5, %v182_v13, 0 }
  0x1b   : > { %383 = vmatmul.msk.bf16.vlgmr.msra.gmra.mxu1 %vm215_vm6, %v186_v14  ;;  %v265_v15 = vrot.slane %v186_v14, 1  ;;  %v197_v16 = vshrl.u32 %v186_v14, 16  ;;  %v199_v17 = vshll.u32 %v186_v14, 16 }
  0x1d   : > { %396 = vmatmul.msk.bf16.vlgmr.msra.gmra.mxu2 %vm215_vm6, %v265_v15  ;;  %v201_v18 = vrot.slane %v199_v17, 1 }
  0x1f   : > { %v202_v19 = vor.u32 %v201_v18, %v197_v16 }
  0x21   : > { %374 = vmatmul.msk.bf16.vlgmr.msra.gmra.mxu0 %vm215_vm6, %v202_v19 }
  0x98   : > { %v255_v20 = vpop.f32.mrf.mxu1 }
  0x9e   : > { %v228_v21 = vpop.f32.mrf.mxu0 }
  0x9f   : > { %v256_v22 = vadd.f32 %v255_v20, %v228_v21 }
  0xa0   : > { %v257_v24 = vpop.f32.mrf.mxu1  ;;  %v290_v25 = vpop.f32.mrf.mxu2 }
  0xa1   : > { %v294_v26 = vadd.f32 %v290_v25, %v256_v22 }
  0xa3   : > { %v299_v27 = vadd.f32 %v413_v23, %v294_v26 }
  0xa5   : > { %v300_v28 = vmax.f32 %v299_v27, 0.0 }
  0xa6   : > { %v230_v29 = vpop.f32.mrf.mxu0 }
  0xa7   : > { %301 = vst.msk [vmem:[%s165_s8] sm:$0xff] %vm215_vm6, %v300_v28 }
  0xa8   : > { %v292_v30 = vpop.f32.mrf.mxu2 }
  0xa9 PF: > { %s13_s12 = sadd.s32 1, %s420_s12  }
  0xaa   : > { %p10_p4 = scmp.ge.s32.totalorder %s13_s12, 4  }
  0xac   :  { %12 = sbr.rel (!%p10_p4) target bundleno = 1 (0x1), region = 64 }

// kernel: _lambda_.30
= control target key start
LH: loop header
LB: loop body
LE: loop exit
PB: predicated region body
PF: predicated region fallthrough
CT: control target
= control target key end

     0   :  { %s873_s18 = smov 0   ;;  %s980_s0 = inlined_call_operand.vmem [shape: bf16[2,8,64], index: 0, kind: input, shape index: {}]   ;;  %s981_s1 = inlined_call_operand.vmem [shape: bf16[2,8,64], index: 1, kind: input, shape index: {}]   ;;  %s982_s2 = inlined_call_operand.vmem [shape: bf16[3,64,32], index: 2, kind: input, shape index: {}]   ;;  %s983_s3 = inlined_call_operand.vmem [shape: bf16[3,64,32], index: 3, kind: input, shape index: {}]   ;;  %s984_s4 = inlined_call_operand.vmem [shape: f32[1,32], index: 4, kind: input, shape index: {}]   ;;  %s985_s5 = inlined_call_operand.vmem [shape: f32[2,8,32], index: 5, kind: output, shape index: {}]  }
   0x1 LB: > { %s658_s19 = sadd.s32 4294967295, %s841_s18   ;;  %p662_p0 = scmp.ge.s32.totalorder %s841_s18, 1  ;;  %s841_s18 = sphi %s873_s18, %s15_s18  }
   0x2   : > { %p195_p1 = scmp.lt.s32.totalorder %s841_s18, 3 }
   0x4   : > { %p196_p2 = pnand %p662_p0, %p195_p1 }
   0x5   : > { %p225_p3 = scmp.lt.s32.totalorder (!%p196_p2), %s658_s19, 1 }
   0x6   : > { %199 = sbr.rel (%p196_p2) target bundleno = 184 (0xb8), region = 40 }
   0xb   : > { %v805_v0 = vld [vmem:[%s982_s2 + $0x18] sm:$0xff]  ;;  %v804_v4 = vld [vmem:[%s982_s2 + $0x10] sm:$0xff]  ;;  %s987_s19 = smov (!%p225_p3, %s658_s19), 1  ;;  %v803_v8 = vld [vmem:[%s982_s2 + $0x8] sm:$0xff]  ;;  %vm250_vm0 = vcmask 1040384   ;;  %vm254_vm2 = vcmask 1044480  }
   0xc   : > { %v813_v1 = vld [vmem:[%s982_s2 + $0x58] sm:$0xff]  ;;  %353 = vmatpush.bf16.msra.mxu1 %v805_v0  ;;  %v812_v5 = vld [vmem:[%s982_s2 + $0x50] sm:$0xff]  ;;  %s663_s11 = sshll.u32 %s987_s19, 2  ;;  %v811_v9 = vld [vmem:[%s982_s2 + $0x48] sm:$0xff]  ;;  %vm251_vm1 = vsmask.f32 256 }
   0xd   : > { %v817_v2 = vld [vmem:[%s983_s3 + $0x18] sm:$0xff]  ;;  %404 = vmatpush.bf16.msra.mxu2 %v813_v1  ;;  %v816_v6 = vld [vmem:[%s983_s3 + $0x10] sm:$0xff]  ;;  %s228_s16 = scalar_lea.vmem %s980_s0, %s663_s11  ;;  %s232_s21 = scalar_lea.vmem %s981_s1, %s663_s11  ;;  %v815_v12 = vld [vmem:[%s983_s3 + $0x8] sm:$0xff]  ;;  %vm255_vm3 = vsmask.f32 4352  ;;  %vm306_vm6 = vcmask 523264  }
   0xe   : > { %v809_v3 = vld [vmem:[%s982_s2 + $0x38] sm:$0xff]  ;;  %467 = vmatpush.bf16.msra.mxu3 %v817_v2  ;;  %v808_v7 = vld [vmem:[%s982_s2 + $0x30] sm:$0xff]  ;;  %v238_v10 = vld [vmem:[%s228_s16] sm:$0xf]  ;;  %s665_s6 = sshll.u32 %s987_s19, 3  ;;  %vm591_vm7 = vcmask 261120  }
   0xf   : > { %314 = vmatpush.bf16.msra.mxu0 %v809_v3  ;;  %v414_v11 = vld [vmem:[%s232_s21] sm:$0xf]  ;;  %v807_v13 = vld [vmem:[%s982_s2 + $0x28] sm:$0xff]  ;;  %v240_v14 = vunpack.c.l.b16 %v238_v10  ;;  %v825_v23 = vld [vmem:[%s983_s3 + $0x58] sm:$0xff]  ;;  %s236_s9 = scalar_lea.vmem %s985_s5, %s665_s6 }
  0x10   : > { %354 = vmatpush.bf16.msra.mxu1 %v804_v4  ;;  %v416_v15 = vunpack.c.l.b16 %v414_v11  ;;  %v802_v18 = vld [vmem:[%s982_s2] sm:$0xff]  ;;  %v821_v29 = vld [vmem:[%s983_s3 + $0x38] sm:$0xff]  ;;  %vm252_vm4 = vmand %vm250_vm0, %vm251_vm1 }
  0x11   : > { %405 = vmatpush.bf16.msra.mxu2 %v812_v5  ;;  %v241_v16 = vpack.c.b16 %v240_v14, %v240_v14  ;;  %v810_v19 = vld [vmem:[%s982_s2 + $0x40] sm:$0xff]  ;;  %vm256_vm5 = vmand %vm254_vm2, %vm255_vm3  ;;  %v824_v32 = vld [vmem:[%s983_s3 + $0x50] sm:$0xff] }
  0x12   : > { %468 = vmatpush.bf16.msra.mxu3 %v816_v6  ;;  %v417_v17 = vpack.c.b16 %v416_v15, %v416_v15  ;;  %v814_v22 = vld [vmem:[%s983_s3] sm:$0xff]  ;;  %v820_v35 = vld [vmem:[%s983_s3 + $0x30] sm:$0xff]  ;;  %v823_v41 = vld [vmem:[%s983_s3 + $0x48] sm:$0xff] }
  0x13   : > { %315 = vmatpush.bf16.msra.mxu0 %v808_v7  ;;  %v243_v20 = vshrl.u32 %v241_v16, 16  ;;  %v246_v21 = vshll.u32 %v241_v16, 16  ;;  %v806_v26 = vld [vmem:[%s982_s2 + $0x20] sm:$0xff]  ;;  %v819_v42 = vld [vmem:[%s983_s3 + $0x28] sm:$0xff] }
  0x14   : > { %355 = vmatpush.bf16.msra.mxu1 %v803_v8  ;;  %v419_v24 = vshrl.u32 %v417_v17, 16  ;;  %v422_v25 = vshll.u32 %v417_v17, 16  ;;  %v822_v45 = vld [vmem:[%s983_s3 + $0x40] sm:$0xff] }
  0x15   : > { %406 = vmatpush.bf16.msra.mxu2 %v811_v9  ;;  %v245_v27 = vrot.slane %v243_v20, 7  ;;  %v818_v46 = vld [vmem:[%s983_s3 + $0x20] sm:$0xff] }
  0x16   : > { %469 = vmatpush.bf16.msra.mxu3 %v815_v12  ;;  %v421_v28 = vrot.slane %v419_v24, 7  ;;  %v834_v2 = vld [vmem:[%s984_s4] ss:$0 sm:$0xff] }
  0x17   : > { %316 = vmatpush.bf16.msra.mxu0 %v807_v13  ;;  %v248_v30 = vor.u32 %v246_v21, %v245_v27 }
  0x18   : > { %356 = vmatpush.bf16.msra.mxu1 %v802_v18  ;;  %v424_v31 = vor.u32 %v422_v25, %v421_v28 }
  0x19   : > { %407 = vmatpush.bf16.msra.mxu2 %v810_v19  ;;  %v253_v33 = vsel %vm252_vm4, 0, %v248_v30 }
  0x1a   : > { %470 = vmatpush.bf16.msra.mxu3 %v814_v22  ;;  %v426_v34 = vsel %vm252_vm4, 0, %v424_v31  ;;  %v257_v36 = vsel %vm256_vm5, %v253_v33, 0 }
  0x1b   : > { %317 = vmatpush.bf16.msra.mxu0 %v806_v26  ;;  %v427_v37 = vsel %vm256_vm5, %v426_v34, 0  ;;  %707 = vmatmul.msk.bf16.vlgmr.msra.gmra.mxu1 %vm306_vm6, %v257_v36  ;;  %v372_v38 = vrot.slane %v257_v36, 1  ;;  %v276_v39 = vshrl.u32 %v257_v36, 16  ;;  %v278_v40 = vshll.u32 %v257_v36, 16 }
  0x1c   : > { %575 = vmatpush.bf16.msrb.mxu1 %v825_v23  ;;  %v488_v47 = vshll.u32 %v427_v37, 16  ;;  %v543_v48 = vrot.slane %v427_v37, 1  ;;  %v486_v49 = vshrl.u32 %v427_v37, 16 }
  0x1d   : > { %749 = vmatmul.msk.bf16.vlgmr.msra.gmra.mxu3 %vm306_vm6, %v427_v37  ;;  %732 = vmatmul.msk.bf16.vlgmr.msra.gmra.mxu2 %vm306_vm6, %v372_v38  ;;  %v280_v43 = vrot.slane %v278_v40, 1 }
  0x1e   : > { %v490_v50 = vrot.slane %v488_v47, 1 }
  0x1f   : > { %523 = vmatpush.bf16.msrb.mxu0 %v821_v29  ;;  %v281_v44 = vor.u32 %v280_v43, %v276_v39 }
  0x20   : > { %576 = vmatpush.bf16.msrb.mxu1 %v824_v32  ;;  %v491_v51 = vor.u32 %v490_v50, %v486_v49 }
  0x21   : > { %690 = vmatmul.msk.bf16.vlgmr.msra.gmra.mxu0 %vm306_vm6, %v281_v44 }
  0x23   : > { %524 = vmatpush.bf16.msrb.mxu0 %v820_v35 }
  0x24   : > { %577 = vmatpush.bf16.msrb.mxu1 %v823_v41 }
  0x27   : > { %525 = vmatpush.bf16.msrb.mxu0 %v819_v42 }
  0x28   : > { %578 = vmatpush.bf16.msrb.mxu1 %v822_v45 }
  0x2b   : > { %526 = vmatpush.bf16.msrb.mxu0 %v818_v46  ;;  %799 = vmatmul.msk.bf16.vlgmr.msrb.gmra.mxu1 %vm306_vm6, %v543_v48 }
  0x31   : > { %774 = vmatmul.msk.bf16.vlgmr.msrb.gmra.mxu0 %vm306_vm6, %v491_v51 }
  0x98   : > { %v358_v52 = vpop.f32.mrf.mxu1 }
  0x9e   : > { %v319_v54 = vpop.f32.mrf.mxu0 }
  0x9f   : > { %v359_v57 = vadd.f32 %v358_v52, %v319_v54 }
  0xa0   : > { %v472_v53 = vpop.f32.mrf.mxu3  ;;  %v360_v55 = vpop.f32.mrf.mxu1 }
  0xa1   : > { %v409_v56 = vpop.f32.mrf.mxu2 }
  0xa2   : > { %v413_v62 = vadd.f32 %v409_v56, %v359_v57 }
  0xa4   : > { %v476_v63 = vadd.f32 %v472_v53, %v413_v62 }
  0xa6   : > { %v321_v59 = vpop.f32.mrf.mxu0 }
  0xa8   : > { %v474_v58 = vpop.f32.mrf.mxu3  ;;  %v580_v60 = vpop.f32.mrf.mxu1 }
  0xa9   : > { %v411_v61 = vpop.f32.mrf.mxu2 }
  0xae   : > { %v528_v0 = vpop.f32.mrf.mxu0 }
  0xaf   : > { %v532_v1 = vadd.f32 %v528_v0, %v476_v63 }
  0xb0   : > { %v582_v3 = vpop.f32.mrf.mxu1 }
  0xb1   : > { %v584_v4 = vadd.f32 %v580_v60, %v532_v1 }
  0xb3   : > { %v589_v5 = vadd.f32 %v834_v2, %v584_v4 }
  0xb5   : > { %v590_v6 = vmax.f32 %v589_v5, 0.0 }
  0xb6   : > { %v530_v7 = vpop.f32.mrf.mxu0 }
  0xb7   : > { %592 = vst.msk [vmem:[%s236_s9] sm:$0xff] %vm591_vm7, %v590_v6 }
  0xb8 PF: > { %s15_s18 = sadd.s32 1, %s841_s18  }
  0xb9   : > { %p12_p4 = scmp.ge.s32.totalorder %s15_s18, 4  }
  0xbb   :  { %14 = sbr.rel (!%p12_p4) target bundleno = 1 (0x1), region = 77 }

// kernel: _lambda_.32
= control target key start
LH: loop header
LB: loop body
LE: loop exit
PB: predicated region body
PF: predicated region fallthrough
CT: control target
= control target key end

     0   :  { %vm42_vm0 = vcmask 261120   ;;  %s121_s1 = inlined_call_operand.vmem [shape: bf16[32,128], index: 1, kind: input, shape index: {}]   ;;  %s122_s2 = inlined_call_operand.vmem [shape: f32[1,128], index: 2, kind: input, shape index: {}]   ;;  %s123_s0 = inlined_call_operand.vmem [shape: bf16[16,32], index: 0, kind: input, shape index: {}]   ;;  %s124_s3 = inlined_call_operand.vmem [shape: f32[16,128], index: 3, kind: output, shape index: {}]  }
   0x1   :  { %v81_v0 = vld [vmem:[%s121_s1 + $0x8] sm:$0xff]  ;;  %v80_v1 = vld [vmem:[%s121_s1] sm:$0xff] }
   0x2   :  { %52 = vmatpush.bf16.msra.mxu0 %v81_v0  ;;  %v79_v2 = vld [vmem:[%s123_s0] sm:$0xff] }
   0x3   :  { %v82_v3 = vld [vmem:[%s122_s2] ss:$0 sm:$0xff] }
   0x6   :  { %53 = vmatpush.bf16.msra.mxu0 %v80_v1 }
   0x9   :  { %78 = vmatmul.msk.bf16.vlgmr.msra.gmra.mxu0 %vm42_vm0, %v79_v2 }
  0x86   :  { %v55_v4 = vpop.f32.mrf.mxu0 }
  0x87   :  { %v56_v5 = vadd.f32 %v82_v3, %v55_v4 }
  0x89   :  { %60 = vst [vmem:[%s124_s3] sm:$0xff] %v56_v5 }
  0x8e   :  { %v57_v6 = vpop.f32.mrf.mxu0 }
  0x8f   :  { %v58_v7 = vadd.f32 %v82_v3, %v57_v6 }
  0x91   :  { %61 = vst [vmem:[%s124_s3 + $0x8] sm:$0xff] %v58_v7 }

// kernel: _lambda_.34
= control target key start
LH: loop header
LB: loop body
LE: loop exit
PB: predicated region body
PF: predicated region fallthrough
CT: control target
= control target key end

     0   :  { %s433_s12 = smov 0   ;;  %s471_s0 = inlined_call_operand.vmem [shape: bf16[2,16,16], index: 0, kind: input, shape index: {}]   ;;  %s472_s1 = inlined_call_operand.vmem [shape: bf16[3,16,16], index: 1, kind: input, shape index: {}]   ;;  %s473_s2 = inlined_call_operand.vmem [shape: f32[1,16], index: 2, kind: input, shape index: {}]   ;;  %s474_s3 = inlined_call_operand.vmem [shape: f32[2,16,16], index: 3, kind: output, shape index: {}]  }
   0x1 LB: > { %s356_s13 = sadd.s32 4294967295, %s411_s12   ;;  %p360_p0 = scmp.ge.s32.totalorder %s411_s12, 1  ;;  %s411_s12 = sphi %s433_s12, %s13_s12  }
   0x2   : > { %p137_p1 = scmp.lt.s32.totalorder %s411_s12, 3 }
   0x4   : > { %p138_p2 = pnand %p360_p0, %p137_p1 }
   0x5   : > { %p161_p3 = scmp.lt.s32.totalorder (!%p138_p2), %s356_s13, 1 }
   0x6   : > { %141 = sbr.rel (%p138_p2) target bundleno = 172 (0xac), region = 32 }
   0xb   : > { %v393_v0 = vld [vmem:[%s472_s1] sm:$0xff]  ;;  %v395_v1 = vld [vmem:[%s472_s1 + $0x10] sm:$0xff]  ;;  %v394_v2 = vld [vmem:[%s472_s1 + $0x8] sm:$0xff]  ;;  %s476_s13 = smov (!%p161_p3, %s356_s13), 1  ;;  %vm188_vm0 = vcmask 1040384   ;;  %vm217_vm3 = vcmask 130048  }
   0xc   : > { %250 = vmatpush.bf16.msra.mxu1 %v393_v0  ;;  %282 = vmatpush.bf16.msra.mxu2 %v395_v1  ;;  %s390_s20 = sshll.u32 %s476_s13, 3  ;;  %vm189_vm1 = vsmask.f32 256  ;;  %vm262_vm4 = vcmask 1046528   ;;  %vm198_vm5 = vsmask.f32 7424 }
   0xd   : > { %228 = vmatpush.bf16.msra.mxu0 %v394_v2  ;;  %s165_s23 = scalar_lea.vmem %s471_s0, %s390_s20  ;;  %vm190_vm2 = vmand %vm188_vm0, %vm189_vm1  ;;  %v404_v23 = vld [vmem:[%s473_s2] ss:$0 sm:$0xff]  ;;  %s391_s26 = sshll.u32 %s476_s13, 4 }
   0xe   : > { %v392_v3 = vld [vmem:[%s165_s23] sm:$0xff]  ;;  %s170_s29 = scalar_lea.vmem %s474_s3, %s391_s26 }
   0xf   : > { %v180_v4 = vshrl.u32 %v392_v3, 16  ;;  %v183_v5 = vshll.u32 %v392_v3, 16 }
  0x11   : > { %v182_v6 = vrot.slane %v180_v4, 7 }
  0x13   : > { %v185_v7 = vor.u32 %v183_v5, %v182_v6  ;;  %v192_v8 = vsel %vm190_vm2, %v182_v6, 0 }
  0x14   : > { %v207_v9 = vshll.u32 %v192_v8, 16  ;;  %v264_v10 = vrot.slane %v192_v8, 1 }
  0x15   : > { %v191_v11 = vsel %vm190_vm2, 0, %v185_v7 }
  0x16   : > { %v200_v12 = vshrl.u32 %v191_v11, 16  ;;  %v202_v13 = vshll.u32 %v191_v11, 16  ;;  %380 = vmatmul.msk.bf16.vlgmr.msra.gmra.mxu1 %vm217_vm3, %v191_v11  ;;  %v263_v14 = vrot.slane %v191_v11, 1  ;;  %v209_v17 = vrot.slane %v207_v9, 1 }
  0x18   : > { %v204_v15 = vrot.slane %v202_v13, 1  ;;  %v265_v16 = vsel %vm262_vm4, %v263_v14, %v264_v10 }
  0x19   : > { %387 = vmatmul.msk.bf16.vlgmr.msra.gmra.mxu2 %vm217_vm3, %v265_v16 }
  0x1a   : > { %v205_v18 = vor.u32 %v204_v15, %v200_v12 }
  0x1c   : > { %v210_v19 = vsel %vm198_vm5, %v205_v18, %v209_v17 }
  0x1d   : > { %375 = vmatmul.msk.bf16.vlgmr.msra.gmra.mxu0 %vm217_vm3, %v210_v19 }
  0x93   : > { %v252_v20 = vpop.f32.mrf.mxu1 }
  0x9a   : > { %v230_v21 = vpop.f32.mrf.mxu0 }
  0x9b   : > { %v253_v22 = vadd.f32 %v252_v20, %v230_v21  ;;  %v254_v28 = vpop.f32.mrf.mxu1 }
  0x9c   : > { %v284_v24 = vpop.f32.mrf.mxu2 }
  0x9d   : > { %v289_v25 = vadd.f32 %v284_v24, %v253_v22 }
  0x9f   : > { %v295_v26 = vadd.f32 %v404_v23, %v289_v25 }
  0xa1   : > { %v297_v27 = vmax.f32 %v295_v26, 0.0 }
  0xa2   : > { %v232_v29 = vpop.f32.mrf.mxu0 }
  0xa3   : > { %299 = vst.msk [vmem:[%s170_s29] sm:$0xff] %vm217_vm3, %v297_v27  ;;  %v255_v30 = vadd.f32 %v254_v28, %v232_v29 }
  0xa4   : > { %v286_v31 = vpop.f32.mrf.mxu2 }
  0xa5   : > { %v290_v32 = vadd.f32 %v286_v31, %v255_v30 }
  0xa7   : > { %v296_v33 = vadd.f32 %v404_v23, %v290_v32 }
  0xa9   : > { %v298_v34 = vmax.f32 %v296_v33, 0.0 }
  0xab   : > { %300 = vst.msk [vmem:[%s170_s29 + $0x8] sm:$0xff] %vm217_vm3, %v298_v34 }
  0xac PF: > { %s13_s12 = sadd.s32 1, %s411_s12  }
  0xad   : > { %p10_p4 = scmp.ge.s32.totalorder %s13_s12, 4  }
  0xaf   :  { %12 = sbr.rel (!%p10_p4) target bundleno = 1 (0x1), region = 64 }

// kernel: _lambda_.35
= control target key start
LH: loop header
LB: loop body
LE: loop exit
PB: predicated region body
PF: predicated region fallthrough
CT: control target
= control target key end

     0   :  { %vm41_vm0 = vcmask 130048   ;;  %vm71_vm1 = vcmask 261120   ;;  %s143_s1 = inlined_call_operand.vmem [shape: bf16[16,32], index: 1, kind: input, shape index: {}]   ;;  %s144_s0 = inlined_call_operand.vmem [shape: bf16[32,16], index: 0, kind: input, shape index: {}]   ;;  %s145_s2 = inlined_call_operand.vmem [shape: f32[1,32], index: 2, kind: input, shape index: {}]   ;;  %s146_s3 = inlined_call_operand.vmem [shape: f32[32,32], index: 3, kind: output, shape index: {}]  }
   0x1   :  { %v96_v0 = vld [vmem:[%s143_s1] sm:$0xff]  ;;  %v95_v2 = vld [vmem:[%s144_s0 + $0x8] sm:$0xff] }
   0x2   :  { %v94_v1 = vld [vmem:[%s144_s0] sm:$0xff]  ;;  %55 = vmatpush.bf16.msra.mxu0 %v96_v0  ;;  %97 = vmatpush.bf16.msra.mxu1 %v96_v0 }
   0x3   :  { %v98_v3 = vld [vmem:[%s145_s2] ss:$0 sm:$0xff] }
   0x5   :  { %92 = vmatmul.msk.bf16.vlgmr.msra.gmra.mxu0 %vm41_vm0, %v94_v1  ;;  %93 = vmatmul.msk.bf16.vlgmr.msra.gmra.mxu1 %vm41_vm0, %v95_v2 }
  0x82   :  { %v57_v4 = vpop.f32.mrf.mxu0  ;;  %v62_v5 = vpop.f32.mrf.mxu1 }
  0x83   :  { %v58_v6 = vadd.f32 %v98_v3, %v57_v4  ;;  %v63_v7 = vadd.f32 %v98_v3, %v62_v5 }
  0x85   :  { %v67_v8 = vmax.f32 %v58_v6, 0.0  ;;  %v69_v9 = vmax.f32 %v63_v7, 0.0 }
  0x87   :  { %72 = vst.msk [vmem:[%s146_s3] sm:$0xff] %vm71_vm1, %v67_v8 }
  0x88   :  { %74 = vst.msk [vmem:[%s146_s3 + $0x10] sm:$0xff] %vm71_vm1, %v69_v9 }
  0x8a   :  { %v59_v10 = vpop.f32.mrf.mxu0  ;;  %v64_v11 = vpop.f32.mrf.mxu1 }
  0x8b   :  { %v60_v12 = vadd.f32 %v98_v3, %v59_v10  ;;  %v65_v13 = vadd.f32 %v98_v3, %v64_v11 }
  0x8d   :  { %v68_v14 = vmax.f32 %v60_v12, 0.0  ;;  %v70_v15 = vmax.f32 %v65_v13, 0.0 }
  0x8f   :  { %73 = vst.msk [vmem:[%s146_s3 + $0x8] sm:$0xff] %vm71_vm1, %v68_v14 }
  0x90   :  { %75 = vst.msk [vmem:[%s146_s3 + $0x18] sm:$0xff] %vm71_vm1, %v70_v15 }

// kernel: _lambda_.33
= control target key start
LH: loop header
LB: loop body
LE: loop exit
PB: predicated region body
PF: predicated region fallthrough
CT: control target
= control target key end

     0   :  { %s763_s18 = smov 0   ;;  %s846_s0 = inlined_call_operand.vmem [shape: bf16[2,16,32], index: 0, kind: input, shape index: {}]   ;;  %s847_s1 = inlined_call_operand.vmem [shape: bf16[2,16,32], index: 1, kind: input, shape index: {}]   ;;  %s848_s2 = inlined_call_operand.vmem [shape: bf16[3,32,16], index: 2, kind: input, shape index: {}]   ;;  %s849_s3 = inlined_call_operand.vmem [shape: bf16[3,32,16], index: 3, kind: input, shape index: {}]   ;;  %s850_s4 = inlined_call_operand.vmem [shape: f32[1,16], index: 4, kind: input, shape index: {}]   ;;  %s851_s5 = inlined_call_operand.vmem [shape: f32[2,16,16], index: 5, kind: output, shape index: {}]  }
   0x1 LB: > { %s608_s19 = sadd.s32 4294967295, %s731_s18   ;;  %p612_p0 = scmp.ge.s32.totalorder %s731_s18, 1  ;;  %s731_s18 = sphi %s763_s18, %s15_s18  }
   0x2   : > { %p197_p1 = scmp.lt.s32.totalorder %s731_s18, 3 }
   0x4   : > { %p198_p2 = pnand %p612_p0, %p197_p1 }
   0x5   : > { %p230_p3 = scmp.lt.s32.totalorder (!%p198_p2), %s608_s19, 1 }
   0x6   : > { %201 = sbr.rel (%p198_p2) target bundleno = 188 (0xbc), region = 40 }
   0xb   : > { %v704_v0 = vld [vmem:[%s848_s2 + $0x8] sm:$0xff]  ;;  %v706_v3 = vld [vmem:[%s848_s2 + $0x18] sm:$0xff]  ;;  %v703_v4 = vld [vmem:[%s848_s2] sm:$0xff]  ;;  %s855_s19 = smov (!%p230_p3, %s608_s19), 1  ;;  %vm262_vm0 = vcmask 1040384   ;;  %vm301_vm3 = vcmask 261120  }
   0xc   : > { %v708_v1 = vld [vmem:[%s848_s2 + $0x28] sm:$0xff]  ;;  %339 = vmatpush.bf16.msra.mxu1 %v704_v0  ;;  %v707_v5 = vld [vmem:[%s848_s2 + $0x20] sm:$0xff]  ;;  %311 = vmatpush.bf16.msra.mxu0 %v706_v3  ;;  %v705_v7 = vld [vmem:[%s848_s2 + $0x10] sm:$0xff]  ;;  %s699_s11 = sshll.u32 %s855_s19, 3  ;;  %vm263_vm1 = vsmask.f32 256 }
   0xd   : > { %v711_v2 = vld [vmem:[%s849_s3 + $0x8] sm:$0xff]  ;;  %379 = vmatpush.bf16.msra.mxu2 %v708_v1  ;;  %v710_v6 = vld [vmem:[%s849_s3] sm:$0xff]  ;;  %v713_v8 = vld [vmem:[%s849_s3 + $0x18] sm:$0xff]  ;;  %s234_s20 = scalar_lea.vmem %s846_s0, %s699_s11  ;;  %s239_s23 = scalar_lea.vmem %s847_s1, %s699_s11  ;;  %vm354_vm4 = vcmask 1046528   ;;  %vm276_vm5 = vsmask.f32 7424 }
   0xe   : > { %432 = vmatpush.bf16.msra.mxu3 %v711_v2  ;;  %v715_v9 = vld [vmem:[%s849_s3 + $0x28] sm:$0xff]  ;;  %v702_v10 = vld [vmem:[%s234_s20] sm:$0xff]  ;;  %v712_v17 = vld [vmem:[%s849_s3 + $0x10] sm:$0xff]  ;;  %s701_s30 = sshll.u32 %s855_s19, 4  ;;  %vm538_vm6 = vcmask 130048  }
   0xf   : > { %v709_v11 = vld [vmem:[%s239_s23] sm:$0xff]  ;;  %v254_v12 = vshrl.u32 %v702_v10, 16  ;;  %v257_v13 = vshll.u32 %v702_v10, 16  ;;  %vm816_vm2 = vmand %vm262_vm0, %vm263_vm1  ;;  %s244_s8 = scalar_lea.vmem %s851_s5, %s701_s30 }
  0x10   : > { %340 = vmatpush.bf16.msra.mxu1 %v703_v4  ;;  %312 = vmatpush.bf16.msra.mxu0 %v705_v7  ;;  %v397_v14 = vshrl.u32 %v709_v11, 16  ;;  %v400_v15 = vshll.u32 %v709_v11, 16  ;;  %v714_v16 = vld [vmem:[%s849_s3 + $0x20] sm:$0xff] }
  0x11   : > { %380 = vmatpush.bf16.msra.mxu2 %v707_v5  ;;  %v256_v19 = vrot.slane %v254_v12, 7  ;;  %v724_v61 = vld [vmem:[%s850_s4] ss:$0 sm:$0xff] }
  0x12   : > { %433 = vmatpush.bf16.msra.mxu3 %v710_v6  ;;  %v399_v20 = vrot.slane %v397_v14, 7 }
  0x13   : > { %v259_v21 = vor.u32 %v257_v13, %v256_v19  ;;  %v266_v22 = vsel %vm816_vm2, %v256_v19, 0 }
  0x14   : > { %479 = vmatpush.bf16.msrb.mxu0 %v713_v8  ;;  %520 = vmatpush.bf16.msrb.mxu1 %v715_v9  ;;  %v402_v23 = vor.u32 %v400_v15, %v399_v20  ;;  %v356_v24 = vrot.slane %v266_v22, 1  ;;  %v285_v25 = vshll.u32 %v266_v22, 16  ;;  %v406_v36 = vsel %vm816_vm2, %v399_v20, 0 }
  0x15   : > { %v265_v26 = vsel %vm816_vm2, 0, %v259_v21  ;;  %v497_v39 = vrot.slane %v406_v36, 1  ;;  %v454_v42 = vshll.u32 %v406_v36, 16 }
  0x16   : > { %v405_v27 = vsel %vm816_vm2, 0, %v402_v23  ;;  %v278_v28 = vshrl.u32 %v265_v26, 16  ;;  %v280_v29 = vshll.u32 %v265_v26, 16  ;;  %644 = vmatmul.msk.bf16.vlgmr.msra.gmra.mxu1 %vm301_vm3, %v265_v26  ;;  %v355_v30 = vrot.slane %v265_v26, 1 }
  0x17   : > { %670 = vmatmul.msk.bf16.vlgmr.msra.gmra.mxu3 %vm301_vm3, %v405_v27  ;;  %v287_v33 = vrot.slane %v285_v25, 1  ;;  %v449_v37 = vshll.u32 %v405_v27, 16  ;;  %v496_v38 = vrot.slane %v405_v27, 1  ;;  %v447_v40 = vshrl.u32 %v405_v27, 16 }
  0x18   : > { %521 = vmatpush.bf16.msrb.mxu1 %v714_v16  ;;  %480 = vmatpush.bf16.msrb.mxu0 %v712_v17  ;;  %v282_v31 = vrot.slane %v280_v29, 1  ;;  %v357_v32 = vsel %vm354_vm4, %v355_v30, %v356_v24  ;;  %v456_v45 = vrot.slane %v454_v42, 1 }
  0x19   : > { %657 = vmatmul.msk.bf16.vlgmr.msra.gmra.mxu2 %vm301_vm3, %v357_v32  ;;  %v451_v41 = vrot.slane %v449_v37, 1  ;;  %v498_v43 = vsel %vm354_vm4, %v496_v38, %v497_v39 }
  0x1a   : > { %v283_v34 = vor.u32 %v282_v31, %v278_v28 }
  0x1b   : > { %v452_v44 = vor.u32 %v451_v41, %v447_v40 }
  0x1c   : > { %v288_v35 = vsel %vm276_vm5, %v283_v34, %v287_v33 }
  0x1d   : > { %635 = vmatmul.msk.bf16.vlgmr.msra.gmra.mxu0 %vm301_vm3, %v288_v35  ;;  %v457_v46 = vsel %vm276_vm5, %v452_v44, %v456_v45 }
  0x26   : > { %696 = vmatmul.msk.bf16.vlgmr.msrb.gmra.mxu1 %vm301_vm3, %v498_v43 }
  0x2d   : > { %683 = vmatmul.msk.bf16.vlgmr.msrb.gmra.mxu0 %vm301_vm3, %v457_v46 }
  0x93   : > { %v342_v47 = vpop.f32.mrf.mxu1 }
  0x9a   : > { %v314_v48 = vpop.f32.mrf.mxu0  ;;  %v435_v53 = vpop.f32.mrf.mxu3 }
  0x9b   : > { %v344_v49 = vpop.f32.mrf.mxu1  ;;  %v343_v51 = vadd.f32 %v342_v47, %v314_v48 }
  0x9c   : > { %v382_v50 = vpop.f32.mrf.mxu2 }
  0x9d   : > { %v387_v54 = vadd.f32 %v382_v50, %v343_v51 }
  0x9f   : > { %v440_v55 = vadd.f32 %v435_v53, %v387_v54 }
  0xa2   : > { %v316_v52 = vpop.f32.mrf.mxu0  ;;  %v437_v0 = vpop.f32.mrf.mxu3 }
  0xa3   : > { %v345_v56 = vadd.f32 %v344_v49, %v316_v52  ;;  %v523_v57 = vpop.f32.mrf.mxu1 }
  0xa4   : > { %v384_v58 = vpop.f32.mrf.mxu2 }
  0xa5   : > { %v388_v62 = vadd.f32 %v384_v58, %v345_v56 }
  0xa7   : > { %v441_v2 = vadd.f32 %v437_v0, %v388_v62 }
  0xaa   : > { %v482_v59 = vpop.f32.mrf.mxu0 }
  0xab   : > { %v487_v60 = vadd.f32 %v482_v59, %v440_v55  ;;  %v525_v6 = vpop.f32.mrf.mxu1 }
  0xad   : > { %v528_v63 = vadd.f32 %v523_v57, %v487_v60 }
  0xaf   : > { %v534_v1 = vadd.f32 %v724_v61, %v528_v63 }
  0xb1   : > { %v536_v3 = vmax.f32 %v534_v1, 0.0 }
  0xb2   : > { %v484_v4 = vpop.f32.mrf.mxu0 }
  0xb3   : > { %539 = vst.msk [vmem:[%s244_s8] sm:$0xff] %vm538_vm6, %v536_v3  ;;  %v488_v5 = vadd.f32 %v484_v4, %v441_v2 }
  0xb5   : > { %v529_v7 = vadd.f32 %v525_v6, %v488_v5 }
  0xb7   : > { %v535_v8 = vadd.f32 %v724_v61, %v529_v7 }
  0xb9   : > { %v537_v9 = vmax.f32 %v535_v8, 0.0 }
  0xbb   : > { %540 = vst.msk [vmem:[%s244_s8 + $0x8] sm:$0xff] %vm538_vm6, %v537_v9 }
  0xbc PF: > { %s15_s18 = sadd.s32 1, %s731_s18  }
  0xbd   : > { %p12_p4 = scmp.ge.s32.totalorder %s15_s18, 4  }
  0xbf   :  { %14 = sbr.rel (!%p12_p4) target bundleno = 1 (0x1), region = 77 }

</bundles_post_ra>
